<compile_context>
chip_gen: v6e
topology: v6e:2x2x1
jax: 0.10.0
libtpu: 0.0.40
codegen_flags: <defaults>
</compile_context>

<pallas_src>
import functools

import jax
import jax.numpy as jnp
from jax.experimental import pallas as pl
from jax.experimental.pallas import tpu as pltpu

_VMEM_LIMIT_BYTES = 48 * 1024 * 1024  # explicit budget; safe on v7x's 64 MiB/TC


def recon_block_kernel(x_ref, dlo_ref, dhi_ref, w_ref, bn_ref, out_ref, col_ref):
    # x_ref:   (1, TD, H, W, C)   main tile (auto-pipelined)
    # dlo_ref: (1, 1,  H, W, C)   plane d0-1 (clamped fetch, zero-gated at t==0)
    # dhi_ref: (1, 1,  H, W, C)   plane d0+TD (clamped fetch, zero-gated at last tile)
    # w_ref:   (7*C, 3*Cout)      packed conv weights, bn0/bn0_3 scales folded
    # bn_ref:  (4, Cout)          rows: b0, s02, b02, b03
    # out_ref: (1, TD, H, W, Cout)
    # col_ref: (TD, H, W, 7*C)    VMEM scratch, im2col-lite columns
    t = pl.program_id(1)
    n_t = pl.num_programs(1)
    _, TD, H, W, C = x_ref.shape
    Cout = out_ref.shape[-1]
    N = TD * H * W

    x = x_ref[0]                                               # (TD, H, W, C)

    # +/-1 halo planes along D; clamped fetch is zeroed at the volume edge.
    d_lo = dlo_ref[0] * jnp.where(t == 0, 0.0, 1.0)            # (1, H, W, C)
    d_hi = dhi_ref[0] * jnp.where(t == n_t - 1, 0.0, 1.0)      # (1, H, W, C)

    # ---- im2col-lite: 7 shifted slabs side by side along the channel dim ----
    # column blocks: 0 center | 1 d-1 | 2 d+1 | 3 h-1 | 4 h+1 | 5 w-1 | 6 w+1
    zh = jnp.zeros((TD, 1, W, C), jnp.float32)
    zw = jnp.zeros((TD, H, 1, C), jnp.float32)

    col_ref[:, :, :, 0:C] = x
    col_ref[0:1, :, :, C:2 * C] = d_lo
    col_ref[TD - 1:TD, :, :, 2 * C:3 * C] = d_hi
    if TD > 1:
        col_ref[1:, :, :, C:2 * C] = x[:TD - 1]
        col_ref[:TD - 1, :, :, 2 * C:3 * C] = x[1:]
    col_ref[:, 0:1, :, 3 * C:4 * C] = zh
    col_ref[:, H - 1:H, :, 4 * C:5 * C] = zh
    if H > 1:
        col_ref[:, 1:, :, 3 * C:4 * C] = x[:, :H - 1]
        col_ref[:, :H - 1, :, 4 * C:5 * C] = x[:, 1:]
    col_ref[:, :, 0:1, 5 * C:6 * C] = zw
    col_ref[:, :, W - 1:W, 6 * C:7 * C] = zw
    if W > 1:
        col_ref[:, :, 1:, 5 * C:6 * C] = x[:, :, :W - 1]
        col_ref[:, :, :W - 1, 6 * C:7 * C] = x[:, :, 1:]

    cols = col_ref[...].reshape(N, 7 * C)

    # One MXU pass: (N, 7C) @ (7C, 3*Cout) -> [y1*s0 | y2 | y3*s03]
    y = jnp.dot(cols, w_ref[...], preferred_element_type=jnp.float32)

    bn = bn_ref[...]
    b0, s02, b02, b03 = bn[0:1], bn[1:2], bn[2:3], bn[3:4]     # (1, Cout) each

    y1 = y[:, 0:Cout]
    y2 = y[:, Cout:2 * Cout]
    y3 = y[:, 2 * Cout:3 * Cout]

    sc = jax.nn.sigmoid(y1 + b0)              # bn0 (scale folded) + act1
    sc = jax.nn.sigmoid(sc * s02 + b02)       # bn0_2 + act1_2 on `shortcut` (module quirk)
    sc3 = jax.nn.sigmoid(y3 + b03)            # bn0_3 + act1_3
    xc = cols[:, 0:C]                         # hoisted center slab (Cin == Cout)
    out = (sc + y2 + sc3) * xc
    out_ref[0] = out.reshape(TD, H, W, Cout)


def _pack_weights(w1, w2, w3, s0, s03):
    """(3, C, Cout) taps -> (7*C, 3*Cout) packed matrix with bn scales folded."""
    C, Cout = w1.shape[1], w1.shape[2]
    s0 = jnp.reshape(s0, (1, Cout)).astype(jnp.float32)
    s03 = jnp.reshape(s03, (1, Cout)).astype(jnp.float32)
    z = jnp.zeros((C, Cout), jnp.float32)
    # row blocks:         center  d-1    d+1    h-1    h+1    w-1    w+1
    y1c = jnp.concatenate([w1[1], w1[0], w1[2], z,     z,     z,     z], axis=0) * s0
    y2c = jnp.concatenate([w2[1], z,     z,     w2[0], w2[2], z,     z], axis=0)
    y3c = jnp.concatenate([w3[1], z,     z,     z,     z,     w3[0], w3[2]], axis=0) * s03
    return jnp.concatenate([y1c, y2c, y3c], axis=1).astype(jnp.float32)


def _choose_td(D, H, W, C, Cout, budget_bytes=16 * 1024 * 1024):
    """Largest divisor of D whose per-step VMEM working set fits the budget."""
    # double-buffered in/out tiles + im2col scratch + matmul result + epilogue temps
    per_plane = 4 * H * W * (2 * C + 2 * Cout + 7 * C + 3 * Cout + 4 * Cout + 2 * C)
    best = 1
    for cand in range(1, D + 1):
        if D % cand == 0 and cand * per_plane <= budget_bytes:
            best = cand
    return best


@functools.partial(jax.jit, static_argnames=("td",))
def recon_block(x, w1, w2, w3, s0, b0, s02, b02, s03, b03, td=None):
    """x: (B, D, H, W, Cin) f32 -> (B, D, H, W, Cout) f32 (dense/eval ReconBlock)."""
    B, D, H, W, C = x.shape
    Cout = w1.shape[-1]
    assert C == Cout, "ReconBlock needs in_filters == out_filters (final x * shortcut)"
    if td is None:
        td = _choose_td(D, H, W, C, Cout)
    assert D % td == 0, f"D={D} must be divisible by td={td}"
    n_t = D // td

    w_packed = _pack_weights(w1, w2, w3, s0, s03)                       # (7C, 3Cout)
    bn_packed = jnp.concatenate(
        [jnp.reshape(v, (1, Cout)) for v in (b0, s02, b02, b03)], axis=0
    ).astype(jnp.float32)                                               # (4, Cout)

    main_spec = pl.BlockSpec((1, td, H, W, C), lambda b, t: (b, t, 0, 0, 0))
    dlo_spec = pl.BlockSpec(
        (1, 1, H, W, C), lambda b, t: (b, jnp.maximum(t * td - 1, 0), 0, 0, 0))
    dhi_spec = pl.BlockSpec(
        (1, 1, H, W, C), lambda b, t: (b, jnp.minimum((t + 1) * td, D - 1), 0, 0, 0))

    return pl.pallas_call(
        recon_block_kernel,
        out_shape=jax.ShapeDtypeStruct((B, D, H, W, Cout), jnp.float32),
        grid=(B, n_t),
        in_specs=[
            main_spec,
            dlo_spec,
            dhi_spec,
            pl.BlockSpec((7 * C, 3 * Cout), lambda b, t: (0, 0)),
            pl.BlockSpec((4, Cout), lambda b, t: (0, 0)),
        ],
        out_specs=pl.BlockSpec((1, td, H, W, Cout), lambda b, t: (b, t, 0, 0, 0)),
        scratch_shapes=[pltpu.VMEM((td, H, W, 7 * C), jnp.float32)],
        compiler_params=pltpu.CompilerParams(
            dimension_semantics=("parallel", "parallel"),
            vmem_limit_bytes=_VMEM_LIMIT_BYTES),
    )(x, x, x, w_packed, bn_packed)


def recon_block_ref(x, w1, w2, w3, s0, b0, s02, b02, s03, b03):
    """Pure-JAX reference (same dense/eval semantics), highest precision."""
    B, D, H, W, C = x.shape
    xp = jnp.pad(x, ((0, 0), (1, 1), (1, 1), (1, 1), (0, 0)))

    def conv(axis, w):
        y = 0.0
        for k in range(3):
            if axis == 1:
                xs = xp[:, k:k + D, 1:H + 1, 1:W + 1, :]
            elif axis == 2:
                xs = xp[:, 1:D + 1, k:k + H, 1:W + 1, :]
            else:
                xs = xp[:, 1:D + 1, 1:H + 1, k:k + W, :]
            y = y + jnp.einsum('bdhwc,co->bdhwo', xs, w[k],
                               precision=jax.lax.Precision.HIGHEST)
        return y

    y1, y2, y3 = conv(1, w1), conv(2, w2), conv(3, w3)
    sc = jax.nn.sigmoid(y1 * s0 + b0)
    sc = jax.nn.sigmoid(sc * s02 + b02)     # module quirk: applied to shortcut again
    sc3 = jax.nn.sigmoid(y3 * s03 + b03)
    return (sc + y2 + sc3) * x


def make_bn_params(cout, idx, eps=1e-3):
    """Deterministic eval-mode BN folded into (scale, bias), shape (1, cout)."""
    r = jnp.arange(cout, dtype=jnp.float32)
    gamma = 1.0 + 0.1 * (r + idx) / cout
    beta = 0.05 * (r - idx)
    mean = 0.02 * (r + 2 * idx)
    var = 1.0 + 0.03 * r
    scale = gamma / jnp.sqrt(var + eps)
    bias = beta - mean * scale
    return scale.reshape(1, cout), bias.reshape(1, cout)


if __name__ == "__main__":
    B, D, H, W = 2, 8, 8, 8
    Cin = Cout = 8   # in_filters == out_filters (required by the final x * shortcut)

    key = jax.random.PRNGKey(0)
    kx, k1, k2, k3 = jax.random.split(key, 4)
    x = jax.random.normal(kx, (B, D, H, W, Cin), dtype=jnp.float32)
    w1 = 0.3 * jax.random.normal(k1, (3, Cin, Cout), dtype=jnp.float32)  # conv3x1x1
    w2 = 0.3 * jax.random.normal(k2, (3, Cin, Cout), dtype=jnp.float32)  # conv1x3x1
    w3 = 0.3 * jax.random.normal(k3, (3, Cin, Cout), dtype=jnp.float32)  # conv1x1x3

    s0, b0 = make_bn_params(Cout, 0)
    s02, b02 = make_bn_params(Cout, 1)
    s03, b03 = make_bn_params(Cout, 2)

    # td=4 -> grid (B, 2): exercises the D-tiling + halo-plane path explicitly.
    out = recon_block(x, w1, w2, w3, s0, b0, s02, b02, s03, b03, td=4)
    out = jax.block_until_ready(out)

    ref = recon_block_ref(x, w1, w2, w3, s0, b0, s02, b02, s03, b03)
    assert out.shape == (B, D, H, W, Cout)
    assert jnp.allclose(out, ref, rtol=1e-3, atol=1e-3), "mismatch vs reference"

    print("KERNEL_OK")
</pallas_src>

<mosaic_0001>
module attributes {stable_mosaic.version = 11 : i64} {
  func.func @recon_block_kernel(%arg0: i32, %arg1: i32, %arg2: memref<1x4x8x8x8xf32, #tpu.memory_space<vmem>>, %arg3: memref<1x1x8x8x8xf32, #tpu.memory_space<vmem>>, %arg4: memref<1x1x8x8x8xf32, #tpu.memory_space<vmem>>, %arg5: memref<56x24xf32, #tpu.memory_space<vmem>>, %arg6: memref<4x8xf32, #tpu.memory_space<vmem>>, %arg7: memref<1x4x8x8x8xf32, #tpu.memory_space<vmem>>, %arg8: memref<4x8x8x56xf32, #tpu.memory_space<vmem>>) attributes {dimension_semantics = [#tpu.dimension_semantics<parallel>, #tpu.dimension_semantics<parallel>], iteration_bounds = array<i64: 2, 2>, scalar_prefetch = 0 : i64, scratch_operands = 1 : i64, tpu.core_type = #tpu.core_type<tc>, window_params = [{transform_indices = @transform_0, window_bounds = array<i64: 1, 4, 8, 8, 8>}, {transform_indices = @transform_1, window_bounds = array<i64: 1, 1, 8, 8, 8>}, {transform_indices = @transform_2, window_bounds = array<i64: 1, 1, 8, 8, 8>}, {pipeline_mode = #tpu.pipeline_mode<synchronous>, transform_indices = @transform_3, window_bounds = array<i64: 56, 24>}, {pipeline_mode = #tpu.pipeline_mode<synchronous>, transform_indices = @transform_4, window_bounds = array<i64: 4, 8>}, {transform_indices = @transform_5, window_bounds = array<i64: 1, 4, 8, 8, 8>}]} {
    %c0 = arith.constant 0 : index
    %c0_0 = arith.constant 0 : index
    %c0_1 = arith.constant 0 : index
    %c0_2 = arith.constant 0 : index
    %c0_3 = arith.constant 0 : index
    %0 = vector.load %arg2[%c0, %c0_0, %c0_1, %c0_2, %c0_3] : memref<1x4x8x8x8xf32, #tpu.memory_space<vmem>>, vector<1x4x8x8x8xf32>
    %1 = vector.shape_cast %0 : vector<1x4x8x8x8xf32> to vector<4x8x8x8xf32>
    %c0_4 = arith.constant 0 : index
    %c0_5 = arith.constant 0 : index
    %c0_6 = arith.constant 0 : index
    %c0_7 = arith.constant 0 : index
    %c0_8 = arith.constant 0 : index
    %2 = vector.load %arg3[%c0_4, %c0_5, %c0_6, %c0_7, %c0_8] : memref<1x1x8x8x8xf32, #tpu.memory_space<vmem>>, vector<1x1x8x8x8xf32>
    %3 = vector.shape_cast %2 : vector<1x1x8x8x8xf32> to vector<1x8x8x8xf32>
    %c0_i32 = arith.constant 0 : i32
    %4 = arith.cmpi eq, %arg1, %c0_i32 : i32
    %cst = arith.constant 0.000000e+00 : f32
    %cst_9 = arith.constant 1.000000e+00 : f32
    %5 = arith.select %4, %cst, %cst_9 : f32
    %6 = vector.broadcast %5 : f32 to vector<1x8x8x8xf32>
    %7 = arith.mulf %3, %6 : vector<1x8x8x8xf32>
    %c0_10 = arith.constant 0 : index
    %c0_11 = arith.constant 0 : index
    %c0_12 = arith.constant 0 : index
    %c0_13 = arith.constant 0 : index
    %c0_14 = arith.constant 0 : index
    %8 = vector.load %arg4[%c0_10, %c0_11, %c0_12, %c0_13, %c0_14] : memref<1x1x8x8x8xf32, #tpu.memory_space<vmem>>, vector<1x1x8x8x8xf32>
    %9 = vector.shape_cast %8 : vector<1x1x8x8x8xf32> to vector<1x8x8x8xf32>
    %c1_i32 = arith.constant 1 : i32
    %10 = arith.cmpi eq, %arg1, %c1_i32 : i32
    %cst_15 = arith.constant 0.000000e+00 : f32
    %cst_16 = arith.constant 1.000000e+00 : f32
    %11 = arith.select %10, %cst_15, %cst_16 : f32
    %12 = vector.broadcast %11 : f32 to vector<1x8x8x8xf32>
    %13 = arith.mulf %9, %12 : vector<1x8x8x8xf32>
    %cst_17 = arith.constant 0.000000e+00 : f32
    %14 = vector.broadcast %cst_17 : f32 to vector<4x1x8x8xf32>
    %cst_18 = arith.constant 0.000000e+00 : f32
    %15 = vector.broadcast %cst_18 : f32 to vector<4x8x1x8xf32>
    %c0_19 = arith.constant 0 : index
    %c0_20 = arith.constant 0 : index
    %c0_21 = arith.constant 0 : index
    %c0_22 = arith.constant 0 : index
    %16 = vector.load %arg8[%c0_19, %c0_20, %c0_21, %c0_22] : memref<4x8x8x56xf32, #tpu.memory_space<vmem>>, vector<4x8x8x8xf32>
    tpu.vector_store %arg8[%c0_19, %c0_20, %c0_21, %c0_22], %1 {strides = array<i32>} : memref<4x8x8x56xf32, #tpu.memory_space<vmem>>, vector<4x8x8x8xf32>,
    %c0_23 = arith.constant 0 : index
    %c0_24 = arith.constant 0 : index
    %c0_25 = arith.constant 0 : index
    %c8 = arith.constant 8 : index
    %17 = vector.load %arg8[%c0_23, %c0_24, %c0_25, %c8] : memref<4x8x8x56xf32, #tpu.memory_space<vmem>>, vector<1x8x8x8xf32>
    tpu.vector_store %arg8[%c0_23, %c0_24, %c0_25, %c8], %7 {strides = array<i32>} : memref<4x8x8x56xf32, #tpu.memory_space<vmem>>, vector<1x8x8x8xf32>,
    %c3 = arith.constant 3 : index
    %c0_26 = arith.constant 0 : index
    %c0_27 = arith.constant 0 : index
    %c16 = arith.constant 16 : index
    %18 = vector.load %arg8[%c3, %c0_26, %c0_27, %c16] : memref<4x8x8x56xf32, #tpu.memory_space<vmem>>, vector<1x8x8x8xf32>
    tpu.vector_store %arg8[%c3, %c0_26, %c0_27, %c16], %13 {strides = array<i32>} : memref<4x8x8x56xf32, #tpu.memory_space<vmem>>, vector<1x8x8x8xf32>,
    %19 = vector.extract_strided_slice %1 {offsets = [0, 0, 0, 0], sizes = [3, 8, 8, 8], strides = [1, 1, 1, 1]} : vector<4x8x8x8xf32> to vector<3x8x8x8xf32>
    %c1 = arith.constant 1 : index
    %c0_28 = arith.constant 0 : index
    %c0_29 = arith.constant 0 : index
    %c8_30 = arith.constant 8 : index
    %20 = vector.load %arg8[%c1, %c0_28, %c0_29, %c8_30] : memref<4x8x8x56xf32, #tpu.memory_space<vmem>>, vector<3x8x8x8xf32>
    tpu.vector_store %arg8[%c1, %c0_28, %c0_29, %c8_30], %19 {strides = array<i32>} : memref<4x8x8x56xf32, #tpu.memory_space<vmem>>, vector<3x8x8x8xf32>,
    %21 = vector.extract_strided_slice %1 {offsets = [1, 0, 0, 0], sizes = [3, 8, 8, 8], strides = [1, 1, 1, 1]} : vector<4x8x8x8xf32> to vector<3x8x8x8xf32>
    %c0_31 = arith.constant 0 : index
    %c0_32 = arith.constant 0 : index
    %c0_33 = arith.constant 0 : index
    %c16_34 = arith.constant 16 : index
    %22 = vector.load %arg8[%c0_31, %c0_32, %c0_33, %c16_34] : memref<4x8x8x56xf32, #tpu.memory_space<vmem>>, vector<3x8x8x8xf32>
    tpu.vector_store %arg8[%c0_31, %c0_32, %c0_33, %c16_34], %21 {strides = array<i32>} : memref<4x8x8x56xf32, #tpu.memory_space<vmem>>, vector<3x8x8x8xf32>,
    %c0_35 = arith.constant 0 : index
    %c0_36 = arith.constant 0 : index
    %c0_37 = arith.constant 0 : index
    %c24 = arith.constant 24 : index
    %23 = vector.load %arg8[%c0_35, %c0_36, %c0_37, %c24] : memref<4x8x8x56xf32, #tpu.memory_space<vmem>>, vector<4x1x8x8xf32>
    tpu.vector_store %arg8[%c0_35, %c0_36, %c0_37, %c24], %14 {strides = array<i32>} : memref<4x8x8x56xf32, #tpu.memory_space<vmem>>, vector<4x1x8x8xf32>,
    %c0_38 = arith.constant 0 : index
    %c7 = arith.constant 7 : index
    %c0_39 = arith.constant 0 : index
    %c32 = arith.constant 32 : index
    %24 = vector.load %arg8[%c0_38, %c7, %c0_39, %c32] : memref<4x8x8x56xf32, #tpu.memory_space<vmem>>, vector<4x1x8x8xf32>
    tpu.vector_store %arg8[%c0_38, %c7, %c0_39, %c32], %14 {strides = array<i32>} : memref<4x8x8x56xf32, #tpu.memory_space<vmem>>, vector<4x1x8x8xf32>,
    %25 = vector.extract_strided_slice %1 {offsets = [0, 0, 0, 0], sizes = [4, 7, 8, 8], strides = [1, 1, 1, 1]} : vector<4x8x8x8xf32> to vector<4x7x8x8xf32>
    %c0_40 = arith.constant 0 : index
    %c1_41 = arith.constant 1 : index
    %c0_42 = arith.constant 0 : index
    %c24_43 = arith.constant 24 : index
    %26 = vector.load %arg8[%c0_40, %c1_41, %c0_42, %c24_43] : memref<4x8x8x56xf32, #tpu.memory_space<vmem>>, vector<4x7x8x8xf32>
    tpu.vector_store %arg8[%c0_40, %c1_41, %c0_42, %c24_43], %25 {strides = array<i32>} : memref<4x8x8x56xf32, #tpu.memory_space<vmem>>, vector<4x7x8x8xf32>,
    %27 = vector.extract_strided_slice %1 {offsets = [0, 1, 0, 0], sizes = [4, 7, 8, 8], strides = [1, 1, 1, 1]} : vector<4x8x8x8xf32> to vector<4x7x8x8xf32>
    %c0_44 = arith.constant 0 : index
    %c0_45 = arith.constant 0 : index
    %c0_46 = arith.constant 0 : index
    %c32_47 = arith.constant 32 : index
    %28 = vector.load %arg8[%c0_44, %c0_45, %c0_46, %c32_47] : memref<4x8x8x56xf32, #tpu.memory_space<vmem>>, vector<4x7x8x8xf32>
    tpu.vector_store %arg8[%c0_44, %c0_45, %c0_46, %c32_47], %27 {strides = array<i32>} : memref<4x8x8x56xf32, #tpu.memory_space<vmem>>, vector<4x7x8x8xf32>,
    %c0_48 = arith.constant 0 : index
    %c0_49 = arith.constant 0 : index
    %c0_50 = arith.constant 0 : index
    %c40 = arith.constant 40 : index
    %29 = vector.load %arg8[%c0_48, %c0_49, %c0_50, %c40] : memref<4x8x8x56xf32, #tpu.memory_space<vmem>>, vector<4x8x1x8xf32>
    tpu.vector_store %arg8[%c0_48, %c0_49, %c0_50, %c40], %15 {strides = array<i32>} : memref<4x8x8x56xf32, #tpu.memory_space<vmem>>, vector<4x8x1x8xf32>,
    %c0_51 = arith.constant 0 : index
    %c0_52 = arith.constant 0 : index
    %c7_53 = arith.constant 7 : index
    %c48 = arith.constant 48 : index
    %30 = vector.load %arg8[%c0_51, %c0_52, %c7_53, %c48] : memref<4x8x8x56xf32, #tpu.memory_space<vmem>>, vector<4x8x1x8xf32>
    tpu.vector_store %arg8[%c0_51, %c0_52, %c7_53, %c48], %15 {strides = array<i32>} : memref<4x8x8x56xf32, #tpu.memory_space<vmem>>, vector<4x8x1x8xf32>,
    %31 = vector.extract_strided_slice %1 {offsets = [0, 0, 0, 0], sizes = [4, 8, 7, 8], strides = [1, 1, 1, 1]} : vector<4x8x8x8xf32> to vector<4x8x7x8xf32>
    %c0_54 = arith.constant 0 : index
    %c0_55 = arith.constant 0 : index
    %c1_56 = arith.constant 1 : index
    %c40_57 = arith.constant 40 : index
    %32 = vector.load %arg8[%c0_54, %c0_55, %c1_56, %c40_57] : memref<4x8x8x56xf32, #tpu.memory_space<vmem>>, vector<4x8x7x8xf32>
    tpu.vector_store %arg8[%c0_54, %c0_55, %c1_56, %c40_57], %31 {strides = array<i32>} : memref<4x8x8x56xf32, #tpu.memory_space<vmem>>, vector<4x8x7x8xf32>,
    %33 = vector.extract_strided_slice %1 {offsets = [0, 0, 1, 0], sizes = [4, 8, 7, 8], strides = [1, 1, 1, 1]} : vector<4x8x8x8xf32> to vector<4x8x7x8xf32>
    %c0_58 = arith.constant 0 : index
    %c0_59 = arith.constant 0 : index
    %c0_60 = arith.constant 0 : index
    %c48_61 = arith.constant 48 : index
    %34 = vector.load %arg8[%c0_58, %c0_59, %c0_60, %c48_61] : memref<4x8x8x56xf32, #tpu.memory_space<vmem>>, vector<4x8x7x8xf32>
    tpu.vector_store %arg8[%c0_58, %c0_59, %c0_60, %c48_61], %33 {strides = array<i32>} : memref<4x8x8x56xf32, #tpu.memory_space<vmem>>, vector<4x8x7x8xf32>,
    %c0_62 = arith.constant 0 : index
    %c0_63 = arith.constant 0 : index
    %c0_64 = arith.constant 0 : index
    %c0_65 = arith.constant 0 : index
    %35 = vector.load %arg8[%c0_62, %c0_63, %c0_64, %c0_65] : memref<4x8x8x56xf32, #tpu.memory_space<vmem>>, vector<4x8x8x56xf32>
    %36 = vector.shape_cast %35 : vector<4x8x8x56xf32> to vector<256x56xf32>
    %c0_66 = arith.constant 0 : index
    %c0_67 = arith.constant 0 : index
    %37 = vector.load %arg5[%c0_66, %c0_67] : memref<56x24xf32, #tpu.memory_space<vmem>>, vector<56x24xf32>
    %cst_68 = arith.constant dense<0.000000e+00> : vector<256x24xf32>
    %38 = tpu.matmul %36, %37, %cst_68 {dimension_numbers = #tpu.dot_dimension_numbers<[1], [0], [0], [1], [0, 0, 1, 1], [], []>} : vector<256x56xf32>, vector<56x24xf32>, vector<256x24xf32> -> vector<256x24xf32>
    %c0_69 = arith.constant 0 : index
    %c0_70 = arith.constant 0 : index
    %39 = vector.load %arg6[%c0_69, %c0_70] : memref<4x8xf32, #tpu.memory_space<vmem>>, vector<4x8xf32>
    %40 = vector.extract_strided_slice %39 {offsets = [0, 0], sizes = [1, 8], strides = [1, 1]} : vector<4x8xf32> to vector<1x8xf32>
    %41 = vector.extract_strided_slice %39 {offsets = [1, 0], sizes = [1, 8], strides = [1, 1]} : vector<4x8xf32> to vector<1x8xf32>
    %42 = vector.extract_strided_slice %39 {offsets = [2, 0], sizes = [1, 8], strides = [1, 1]} : vector<4x8xf32> to vector<1x8xf32>
    %43 = vector.extract_strided_slice %39 {offsets = [3, 0], sizes = [1, 8], strides = [1, 1]} : vector<4x8xf32> to vector<1x8xf32>
    %44 = vector.extract_strided_slice %38 {offsets = [0, 0], sizes = [256, 8], strides = [1, 1]} : vector<256x24xf32> to vector<256x8xf32>
    %45 = vector.extract_strided_slice %38 {offsets = [0, 8], sizes = [256, 8], strides = [1, 1]} : vector<256x24xf32> to vector<256x8xf32>
    %46 = vector.extract_strided_slice %38 {offsets = [0, 16], sizes = [256, 8], strides = [1, 1]} : vector<256x24xf32> to vector<256x8xf32>
    %47 = vector.broadcast %40 : vector<1x8xf32> to vector<256x8xf32>
    %48 = arith.addf %44, %47 : vector<256x8xf32>
    %49 = arith.negf %48 : vector<256x8xf32>
    %50 = math.exp %49 : vector<256x8xf32>
    %cst_71 = arith.constant 1.000000e+00 : f32
    %51 = vector.broadcast %cst_71 : f32 to vector<256x8xf32>
    %52 = arith.addf %51, %50 : vector<256x8xf32>
    %53 = arith.divf %51, %52 : vector<256x8xf32>
    %54 = vector.broadcast %41 : vector<1x8xf32> to vector<256x8xf32>
    %55 = arith.mulf %53, %54 : vector<256x8xf32>
    %56 = vector.broadcast %42 : vector<1x8xf32> to vector<256x8xf32>
    %57 = arith.addf %55, %56 : vector<256x8xf32>
    %58 = arith.negf %57 : vector<256x8xf32>
    %59 = math.exp %58 : vector<256x8xf32>
    %cst_72 = arith.constant 1.000000e+00 : f32
    %60 = vector.broadcast %cst_72 : f32 to vector<256x8xf32>
    %61 = arith.addf %60, %59 : vector<256x8xf32>
    %62 = arith.divf %60, %61 : vector<256x8xf32>
    %63 = vector.broadcast %43 : vector<1x8xf32> to vector<256x8xf32>
    %64 = arith.addf %46, %63 : vector<256x8xf32>
    %65 = arith.negf %64 : vector<256x8xf32>
    %66 = math.exp %65 : vector<256x8xf32>
    %cst_73 = arith.constant 1.000000e+00 : f32
    %67 = vector.broadcast %cst_73 : f32 to vector<256x8xf32>
    %68 = arith.addf %67, %66 : vector<256x8xf32>
    %69 = arith.divf %67, %68 : vector<256x8xf32>
    %70 = vector.extract_strided_slice %36 {offsets = [0, 0], sizes = [256, 8], strides = [1, 1]} : vector<256x56xf32> to vector<256x8xf32>
    %71 = arith.addf %62, %45 : vector<256x8xf32>
    %72 = arith.addf %71, %69 : vector<256x8xf32>
    %73 = arith.mulf %72, %70 : vector<256x8xf32>
    %74 = vector.shape_cast %73 : vector<256x8xf32> to vector<4x8x8x8xf32>
    %c0_74 = arith.constant 0 : index
    %c0_75 = arith.constant 0 : index
    %c0_76 = arith.constant 0 : index
    %c0_77 = arith.constant 0 : index
    %c0_78 = arith.constant 0 : index
    %75 = vector.load %arg7[%c0_74, %c0_75, %c0_76, %c0_77, %c0_78] : memref<1x4x8x8x8xf32, #tpu.memory_space<vmem>>, vector<1x4x8x8x8xf32>
    %76 = vector.shape_cast %75 : vector<1x4x8x8x8xf32> to vector<4x8x8x8xf32>
    %77 = vector.shape_cast %74 : vector<4x8x8x8xf32> to vector<1x4x8x8x8xf32>
    tpu.vector_store %arg7[%c0_74, %c0_75, %c0_76, %c0_77, %c0_78], %77 {strides = array<i32>} : memref<1x4x8x8x8xf32, #tpu.memory_space<vmem>>, vector<1x4x8x8x8xf32>,
    return
  }
  func.func @transform_0(%arg0: i32, %arg1: i32) -> (i32, i32, i32, i32, i32) {
    %c0_i32 = arith.constant 0 : i32
    %c0_i32_0 = arith.constant 0 : i32
    %c0_i32_1 = arith.constant 0 : i32
    %c0_i32_2 = arith.constant 0 : i32
    return %arg0, %arg1, %c0_i32, %c0_i32_0, %c0_i32_1 : i32, i32, i32, i32, i32
  }
  func.func @transform_1(%arg0: i32, %arg1: i32) -> (i32, i32, i32, i32, i32) {
    %c4_i32 = arith.constant 4 : i32
    %0 = arith.muli %arg1, %c4_i32 : i32
    %c1_i32 = arith.constant 1 : i32
    %1 = arith.subi %0, %c1_i32 : i32
    %c0_i32 = arith.constant 0 : i32
    %2 = arith.maxsi %1, %c0_i32 : i32
    %c0_i32_0 = arith.constant 0 : i32
    %c0_i32_1 = arith.constant 0 : i32
    %c0_i32_2 = arith.constant 0 : i32
    %c0_i32_3 = arith.constant 0 : i32
    return %arg0, %2, %c0_i32_0, %c0_i32_1, %c0_i32_2 : i32, i32, i32, i32, i32
  }
  func.func @transform_2(%arg0: i32, %arg1: i32) -> (i32, i32, i32, i32, i32) {
    %c1_i32 = arith.constant 1 : i32
    %0 = arith.addi %arg1, %c1_i32 : i32
    %c4_i32 = arith.constant 4 : i32
    %1 = arith.muli %0, %c4_i32 : i32
    %c7_i32 = arith.constant 7 : i32
    %2 = arith.minsi %1, %c7_i32 : i32
    %c0_i32 = arith.constant 0 : i32
    %c0_i32_0 = arith.constant 0 : i32
    %c0_i32_1 = arith.constant 0 : i32
    %c0_i32_2 = arith.constant 0 : i32
    return %arg0, %2, %c0_i32, %c0_i32_0, %c0_i32_1 : i32, i32, i32, i32, i32
  }
  func.func @transform_3(%arg0: i32, %arg1: i32) -> (i32, i32) {
    %c0_i32 = arith.constant 0 : i32
    %c0_i32_0 = arith.constant 0 : i32
    %c0_i32_1 = arith.constant 0 : i32
    return %c0_i32, %c0_i32_0 : i32, i32
  }
  func.func @transform_4(%arg0: i32, %arg1: i32) -> (i32, i32) {
    %c0_i32 = arith.constant 0 : i32
    %c0_i32_0 = arith.constant 0 : i32
    %c0_i32_1 = arith.constant 0 : i32
    return %c0_i32, %c0_i32_0 : i32, i32
  }
  func.func @transform_5(%arg0: i32, %arg1: i32) -> (i32, i32, i32, i32, i32) {
    %c0_i32 = arith.constant 0 : i32
    %c0_i32_0 = arith.constant 0 : i32
    %c0_i32_1 = arith.constant 0 : i32
    %c0_i32_2 = arith.constant 0 : i32
    return %arg0, %arg1, %c0_i32, %c0_i32_0, %c0_i32_1 : i32, i32, i32, i32, i32
  }
}

</mosaic_0001>

<bundles_post_ra>
// kernel: recon_block.1
= control target key start
LH: loop header
LB: loop body
LE: loop exit
PB: predicated region body
PF: predicated region fallthrough
CT: control target
= control target key end

     0   :  { %s6045_s0 = inlined_call_operand.hbm [shape: f32[2,8,8,8,8], index: 0, kind: input, shape index: {}, may-alias: {0,1,2}]   ;;  %s6046_s1 = inlined_call_operand.hbm [shape: f32[2,8,8,8,8], index: 1, kind: input, shape index: {}, may-alias: {0,1,2}]   ;;  %s6047_s2 = inlined_call_operand.hbm [shape: f32[2,8,8,8,8], index: 2, kind: input, shape index: {}, may-alias: {0,1,2}]   ;;  %s6048_s3 = inlined_call_operand.vmem [shape: f32[56,24], index: 3, kind: input, shape index: {}]   ;;  %s6049_s4 = inlined_call_operand.vmem [shape: f32[4,8], index: 4, kind: input, shape index: {}]   ;;  %s6050_s5 = inlined_call_operand.hbm [shape: f32[2,8,8,8,8], index: 5, kind: output, shape index: {}]  }
   0x1   :  { %6073 = sst [smem:[#allocation32_spill]] %s6045_s0 }
   0x2   :  { %6074 = sst [smem:[#allocation33_spill]] %s6046_s1 }
   0x3   :  { %6075 = sst [smem:[#allocation34_spill]] %s6047_s2 }
   0x4   :  { %6076 = sst [smem:[#allocation35_spill]] %s6048_s3 }
   0x5   :  { %6077 = sst [smem:[#allocation36_spill]] %s6049_s4 }
   0x6   :  { %6078 = sst [smem:[#allocation37_spill]] %s6050_s5 }
   0x7   :  { %10 = vsyncpa [#allocation4], 0 }
   0x8   :  { %12 = vsyncpa [#allocation4 + $0x1], 0 }
   0x9   :  { %13 = vsyncpa [#allocation7], 0 }
   0xa   :  { %15 = vsyncpa [#allocation7 + $0x1], 0 }
   0xb   :  { %16 = vsyncpa [#allocation5], 0 }
   0xc   :  { %18 = vsyncpa [#allocation5 + $0x1], 0  ;;  %s4115_s18 = smov 0   ;;  %s4117_s19 = smov 0  }
   0xd   :  { %s4119_s20 = smov 0   ;;  %s4121_s21 = smov 0  }
   0xe   :  { %s4123_s22 = smov 0   ;;  %s4125_s23 = smov 0  }
   0xf   :  { %s4127_s24 = smov 0   ;;  %s4129_s25 = smov 0  }
  0x10   :  { %s4131_s26 = smov 0   ;;  %s4133_s27 = smov 0  }
  0x11   :  { %s4135_s28 = smov 0   ;;  %s4137_s29 = smov 0  }
  0x12   :  { %s4139_s30 = smov 0   ;;  %s4141_s6 = smov 0  }
  0x13 LB: > { %6079 = sst [smem:[#allocation14_spill]] %s4031_s22  ;;  %s4186_s7 = sadd.s32 4294967295, %s4067_s6   ;;  %s4067_s6 = sphi %s4141_s6, %s24_s6   ;;  %s4063_s30 = sphi %s4139_s30, %s6147_s30   ;;  %s4059_s29 = sphi %s4137_s29, %s6146_s29   ;;  %s4055_s28 = sphi %s4135_s28, %s6145_s28   ;;  %s4051_s27 = sphi %s4133_s27, %s6144_s27   ;;  %s4047_s26 = sphi %s4131_s26, %s6143_s26   ;;  %s4043_s25 = sphi %s4129_s25, %s6152_s25   ;;  %s4039_s24 = sphi %s4127_s24, %s6151_s24   ;;  %s4035_s23 = sphi %s4125_s23, %s6141_s23   ;;  %s4031_s22 = sphi %s4123_s22, %s6140_s22   ;;  %s4027_s21 = sphi %s4121_s21, %s6139_s21   ;;  %s4023_s20 = sphi %s4119_s20, %s6150_s20   ;;  %s4019_s19 = sphi %s4117_s19, %s6149_s19   ;;  %s4015_s18 = sphi %s4115_s18, %s6148_s18  }
  0x14   : > { %6080 = sst [smem:[#allocation15_spill]] %s4035_s23  ;;  %s33_s8 = sadd.s32 1, %s4059_s29 }
  0x15   : > { %6081 = sst [smem:[#allocation16_spill]] %s4047_s26  ;;  %p34_p0 = scmp.ge.s32.totalorder %s33_s8, 2 }
  0x16   : > { %6082 = sst [smem:[#allocation17_spill]] %s4051_s27  ;;  %s36_s9 = sadd.s32 1, %s4063_s30 }
  0x17   : > { %6083 = sst [smem:[#allocation18_spill]] %s4055_s28  ;;  %p6069_p1 = scmp.eq.s32.totalorder %s4067_s6, 0 }
  0x18   : > { %6084 = sst [smem:[#allocation19_spill]] %s4059_s29  ;;  %p6061_p2 = scmp.eq.s32.totalorder %s4186_s7, 0 }
  0x19   : > { %6085 = sst [smem:[#allocation20_spill]] %s4063_s30  ;;  %s6154_s8 = smov (%p34_p0, %s33_s8), 0 }
  0x1a   : > { %6086 = sst [smem:[#allocation21_spill]] %s6154_s8  ;;  %s6156_s9 = smov (!%p34_p0, %s36_s9), %s4063_s30 }
  0x1b   : > { %s41_s10 = ssub.s32 %s4059_s29, %s6154_s8  ;;  %s2980_s11 = sshll.u32 %s4059_s29, 2 }
  0x1c   : > { %p38_p3 = scmp.ge.s32.totalorder %s6156_s9, 2  ;;  %s2981_s12 = sadd.s32 4294967295, %s2980_s11 }
  0x1d   : > { %p70_p4 = scmp.gt.s32.totalorder %s2981_s12, 0  ;;  %s2982_s13 = sshll.u32 %s6154_s8, 2 }
  0x1e   : > { %s6158_s9 = smov (%p38_p3, %s6156_s9), 0  ;;  %s2983_s15 = sadd.s32 4294967295, %s2982_s13 }
  0x1f   : > { %6087 = sst [smem:[#allocation22_spill]] %s6158_s9  ;;  %s6160_s12 = smov (!%p70_p4, %s2981_s12), 0 }
  0x20   : > { %s4203_s14 = ssub.s32 %s4063_s30, %s6158_s9  ;;  %p74_p5 = scmp.gt.s32.totalorder %s2983_s15, 0 }
  0x21   : > { %6088 = sst [smem:[#allocation23_spill]] %s4203_s14  ;;  %s4206_s16 = sor.u32 %s41_s10, %s4203_s14 }
  0x22   : > { %p43_p6 = scmp.eq.s32.totalorder %s4206_s16, 0  ;;  %s81_s17 = sadd.s32 1, %s4035_s23 }
  0x23   : > { %s6162_s15 = smov (!%p74_p5, %s2983_s15), 0  ;;  %p88_p7 = scmp.ne.s32.totalorder %s4035_s23, %s4031_s22 }
  0x24   : > { %p94_p8 = scmp.ne.s32.totalorder %s4031_s22, %s4027_s21  ;;  %s77_s8 = ssub.s32 %s6160_s12, %s6162_s15 }
  0x25   : > { %s4214_s9 = sadd.s32 4, %s2980_s11  ;;  %s78_s5 = sor.u32 %s77_s8, %s4203_s14 }
  0x26   : > { %p4219_p9 = por %p88_p7, %p6069_p1  ;;  %p79_p10 = scmp.eq.s32.totalorder %s78_s5, 0 }
  0x27   : > { %p4225_p11 = por %p94_p8, %p6061_p2  ;;  %s4230_s21 = sadd.s32 4, %s2982_s13 }
  0x28   : > { %s4233_s11 = scalar_select %p79_p10, %s4035_s23, %s81_s17  }
  0x29   : > { %s6090_s28 = scalar_select %p4225_p11, 1, 0 }
  0x2a   : > { %6092 = sst [smem:[#allocation25_spill]] %s4233_s11  ;;  %p6060_p0 = scmp.lt.s32.totalorder %s4067_s6, 4 }
  0x2b   : > { %6091 = sst [smem:[#allocation24_spill]] %s6090_s28  ;;  %s4238_s8 = sshll.u32 %s4063_s30, 6 }
  0x2c   : > { %s254_s5 = sand.u32 1, %s4067_s6   ;;  %s256_s15 = sand.u32 1, %s4035_s23  }
  0x2d   : > { %s2993_s4 = sshll.u32 %s256_s15, 6  ;;  %s2996_s3 = sshll.u32 %s6160_s12, 3 }
  0x2e   : > { %s268_s27 = sadd.s32 %s2996_s3, %s4238_s8  ;;  %s258_s28 = scalar_lea.vmem [#allocation6], %s2993_s4 }
  0x2f   : > { %s271_s22 = sshll.u32 %s258_s28, 4  ;;  %s2998_s2 = sshll.u32 %s268_s27, 7  ;;  %s272_s22 = int_to_ptr.vmem [resolvable:$true] %s271_s22 }
  0x30   : > { %s6093_s1 = sld [smem:[#allocation33_spill]]  ;;  %p4250_p3 = pnand %p6060_p0, %p4219_p9 }
  0x31   : > { %p3004_p4 = scmp.ge.s32.totalorder %s4067_s6, 1  ;;  %p306_p5 = scmp.lt.s32.totalorder %s4067_s6, 5 }
  0x32   : > { %s4256_s15 = scalar_lea.sflag [#allocation7], %s254_s5  ;;  %p3833_p7 = pneg %p4250_p3 }
  0x33   : > { %s3844_s3 = scalar_lea.vmem %s272_s22, 1024  ;;  %s4069_s4 = smov [#allocation6]  }
  0x34   : > { %p3845_p8 = scmp.ne.s32.totalorder %s272_s22, %s3844_s3  ;;  %s3849_s27 = sshll.u32 %s4069_s4, 4  ;;  %s3850_s27 = int_to_ptr.vmem [resolvable:$false] %s3849_s27 }
  0x35   : > { %p3852_p12 = scmp.lt.s32.totalorder %s272_s22, %s3850_s27 }
  0x36   : > { %s270_s17 = scalar_lea.hbm %s6093_s1, %s2998_s2  ;;  %p3847_p10 = pnand %p3845_p8, %p3833_p7 }
  0x37   : > { %s3851_s2 = scalar_lea.vmem %s3850_s27, 2048 }
  0x38   : > { %p3848_p13 = pneg %p3847_p10  ;;  %p3853_p9 = scmp.lt.s32.totalorder %s3851_s2, %s3844_s3 }
  0x3a   : > { %p3854_p0 = por %p3853_p9, %p3852_p12 }
  0x3c   : > { %p3855_p2 = pnand %p3854_p0, %p3848_p13 }
  0x3e   : > { %3858 = shalt.err (!%p3855_p2)
}
  0x3f   : > { %s6062_s28 = smov 128   ;;  %s6064_s12 = smov 8  }
  0x40   : > { %3281 = dma.hbm_to_vmem [thread:$0]  (!%p4250_p3), %s270_s17, 1024, %s272_s22, %s4256_s15, %s6062_s28, %s6062_s28, %s6064_s12  }
  0x41   : > { %p4270_p2 = pnand %p3004_p4, %p306_p5  ;;  %s2979_s10 = sadd.s32 4294967294, %s4067_s6  }
  0x42   : > { %s45_s5 = sadd.s32 1, %s4047_s26  ;;  %p52_p12 = scmp.ne.s32.totalorder %s4047_s26, %s4043_s25 }
  0x43   : > { %s4279_s13 = scalar_select %p43_p6, %s4047_s26, %s45_s5  }
  0x44   : > { %p58_p13 = scmp.ne.s32.totalorder %s4043_s25, %s4039_s24  ;;  %p198_p0 = scmp.eq.s32.totalorder %s4186_s7, 3 }
  0x45   : > { %6096 = sst [smem:[#allocation26_spill]] %s4279_s13  ;;  %p204_p7 = scmp.eq.s32.totalorder %s2979_s10, 3 }
  0x46   : > { %p4288_p8 = por %p6069_p1, %p52_p12  ;;  %p6098_p3 = scmp.eq.s32.totalorder %s4186_s7, 0 }
  0x47   : > { %p4298_p5 = por %p198_p0, %p52_p12  ;;  %p4302_p6 = por %p204_p7, %p58_p13 }
  0x48   : > { %p4294_p4 = por %p6098_p3, %p58_p13  ;;  %s230_s3 = sand.u32 1, %s4047_s26  }
  0x49   : > { %s6100_s16 = scalar_select %p4298_p5, 1, 0 }
  0x4a   : > { %s6101_s17 = scalar_select %p4302_p6, 1, 0 }
  0x4b   : > { %s3148_s4 = sshll.u32 %s4059_s29, 5  ;;  %s2988_s27 = sshll.u32 %s230_s3, 8 }
  0x4c   : > { %s241_s2 = sadd.s32 %s3148_s4, %s4238_s8  ;;  %s234_s5 = scalar_lea.vmem [#allocation3], %s2988_s27 }
  0x4d   : > { %s2992_s10 = sshll.u32 %s241_s2, 7  ;;  %s244_s28 = sshll.u32 %s234_s5, 4  ;;  %s245_s28 = int_to_ptr.vmem [resolvable:$true] %s244_s28 }
  0x4e   : > { %s6102_s0 = sld [smem:[#allocation32_spill]]  ;;  %p6103_p10 = scmp.lt.s32.totalorder %s4067_s6, 4 }
  0x4f   : > { %s231_s23 = scalar_lea.sflag [#allocation4], %s230_s3  ;;  %s3872_s29 = scalar_lea.vmem %s245_s28, 4096 }
  0x50   : > { %p4316_p9 = pnand %p6103_p10, %p4288_p8  ;;  %p3873_p13 = scmp.ne.s32.totalorder %s245_s28, %s3872_s29 }
  0x51   : > { %s4072_s4 = smov [#allocation3]  }
  0x52   : > { %p3861_p12 = pneg %p4316_p9  ;;  %s3877_s27 = sshll.u32 %s4072_s4, 4  ;;  %s3878_s27 = int_to_ptr.vmem [resolvable:$false] %s3877_s27 }
  0x53   : > { %s3879_s1 = scalar_lea.vmem %s3878_s27, 8192  ;;  %p3880_p3 = scmp.lt.s32.totalorder %s245_s28, %s3878_s27 }
  0x54   : > { %s243_s30 = scalar_lea.hbm %s6102_s0, %s2992_s10  ;;  %p3875_p0 = pnand %p3873_p13, %p3861_p12 }
  0x55   : > { %p3881_p1 = scmp.lt.s32.totalorder %s3879_s1, %s3872_s29 }
  0x56   : > { %p3876_p7 = pneg %p3875_p0 }
  0x57   : > { %p3882_p6 = por %p3881_p1, %p3880_p3 }
  0x59   : > { %p3883_p5 = pnand %p3882_p6, %p3876_p7 }
  0x5b   : > { %3886 = shalt.err (!%p3883_p5)
}
  0x5c   : > { %s6105_s12 = smov 8   ;;  %s6106_s22 = smov 128  }
  0x5d   : > { %s6107_s3 = sld [smem:[#allocation23_spill]]  ;;  %p6108_p1 = scmp.lt.s32.totalorder %s4214_s9, 7 }
  0x5e   : > { %3278 = dma.hbm_to_vmem [thread:$0]  (!%p4316_p9), %s243_s30, 4096, %s245_s28, %s231_s23, %s6106_s22, %s6106_s22, %s6105_s12  }
  0x5f   : > { %s6164_s9 = smov (!%p6108_p1, %s4214_s9), 7  ;;  %p6109_p8 = scmp.lt.s32.totalorder %s4230_s21, 7 }
  0x60   : > { %s117_s29 = sadd.s32 1, %s4023_s20  ;;  %p124_p5 = scmp.ne.s32.totalorder %s4023_s20, %s4019_s19 }
  0x61   : > { %s6166_s21 = smov (!%p6109_p8, %s4230_s21), 7  ;;  %p130_p6 = scmp.ne.s32.totalorder %s4019_s19, %s4015_s18 }
  0x62   : > { %s113_s13 = ssub.s32 %s6164_s9, %s6166_s21  ;;  %p6110_p10 = scmp.eq.s32.totalorder %s4067_s6, 0 }
  0x63   : > { %s114_s2 = sor.u32 %s113_s13, %s6107_s3  ;;  %p6112_p0 = scmp.eq.s32.totalorder %s4186_s7, 0 }
  0x64   : > { %p4341_p12 = por %p124_p5, %p6110_p10  ;;  %p115_p13 = scmp.eq.s32.totalorder %s114_s2, 0 }
  0x65   : > { %p4347_p7 = por %p130_p6, %p6112_p0  ;;  %s283_s30 = sand.u32 1, %s4023_s20  }
  0x66   : > { %s3001_s28 = sshll.u32 %s6164_s9, 3  ;;  %s2999_s21 = sshll.u32 %s283_s30, 6 }
  0x67   : > { %s6113_s23 = scalar_select %p4347_p7, 1, 0 }
  0x68   : > { %s4353_s5 = scalar_select %p115_p13, %s4023_s20, %s117_s29  }
  0x69   : > { %s295_s4 = sadd.s32 %s3001_s28, %s4238_s8  ;;  %s6114_s3 = sld [smem:[#allocation34_spill]] }
  0x6a   : > { %s3003_s18 = sshll.u32 %s295_s4, 7  ;;  %s285_s0 = scalar_lea.vmem [#allocation8], %s2999_s21 }
  0x6b   : > { %s298_s26 = sshll.u32 %s285_s0, 4  ;;  %p6115_p9 = scmp.lt.s32.totalorder %s4067_s6, 4  ;;  %s299_s26 = int_to_ptr.vmem [resolvable:$true] %s298_s26 }
  0x6c   : > { %s3900_s9 = scalar_lea.vmem %s299_s26, 1024  ;;  %s4073_s8 = smov [#allocation8]  }
  0x6d   : > { %p4363_p3 = pnand %p6115_p9, %p4341_p12  ;;  %p3901_p8 = scmp.ne.s32.totalorder %s299_s26, %s3900_s9 }
  0x6e   : > { %s3905_s29 = sshll.u32 %s4073_s8, 4  ;;  %s3906_s29 = int_to_ptr.vmem [resolvable:$false] %s3905_s29 }
  0x6f   : > { %s297_s13 = scalar_lea.hbm %s6114_s3, %s3003_s18  ;;  %p3889_p1 = pneg %p4363_p3 }
  0x70   : > { %s3907_s30 = scalar_lea.vmem %s3906_s29, 2048  ;;  %p3908_p10 = scmp.lt.s32.totalorder %s299_s26, %s3906_s29 }
  0x71   : > { %p3903_p5 = pnand %p3901_p8, %p3889_p1  ;;  %p3909_p13 = scmp.lt.s32.totalorder %s3907_s30, %s3900_s9 }
  0x73   : > { %p3904_p6 = pneg %p3903_p5  ;;  %p3910_p0 = por %p3909_p13, %p3908_p10 }
  0x75   : > { %p3911_p7 = pnand %p3910_p0, %p3904_p6 }
  0x77   : > { %3914 = shalt.err (!%p3911_p7)
}
  0x78   : > { %3284 = dma.hbm_to_vmem [thread:$0]  (!%p4363_p3), %s297_s13, 1024, %s299_s26, %s4256_s15, %s6106_s22, %s6106_s22, %s6105_s12  }
  0x79   : > { %310 = sbr.rel (%p4270_p2) target bundleno = 1069 (0x42d), region = 40 }
  0x7e   : > { %s4378_s0 = sand.u32 1, %s4043_s25  }
  0x7f   : > { %s3005_s10 = sshll.u32 %s4378_s0, 8  ;;  %s313_s28 = scalar_lea.sflag [#allocation4], %s4378_s0 }
  0x80   : > { %s4384_s21 = scalar_lea.vmem [#allocation3], %s3005_s10 }
  0x81   : > { %3998 = dma.done.wait (%p4294_p4), %s313_s28, 4096  }
  0x82   : > { %4000 = vsyncadd (%p4294_p4), %s313_s28, 4294963200  ;;  %s6117_s26 = sld [smem:[#allocation14_spill]]  ;;  %s321_s14 = sand.u32 1, %s4186_s7  }
  0x83   : > { %s322_s4 = scalar_lea.sflag [#allocation7], %s321_s14 }
  0x88   : > { %s323_s12 = sand.u32 1, %s6117_s26  }
  0x89   : > { %s3006_s22 = sshll.u32 %s323_s12, 6 }
  0x8a   : > { %s325_s18 = scalar_lea.vmem [#allocation6], %s3006_s22 }
  0x8b   : > { %4002 = dma.done.wait (%p4225_p11), %s322_s4, 1024  }
  0x8c   : > { %4004 = vsyncadd (%p4225_p11), %s322_s4, 4294966272  ;;  %s332_s27 = sand.u32 1, %s4019_s19   ;;  %p6119_p2 = scmp.ne.s32.totalorder %s6113_s23, 0 }
  0x8d   : > { %s3007_s1 = sshll.u32 %s332_s27, 6 }
  0x8e   : > { %s4397_s3 = scalar_lea.vmem [#allocation8], %s3007_s1 }
  0x8f   : > { %4006 = dma.done.wait (%p6119_p2), %s322_s4, 1024  }
  0x90   : > { %4008 = vsyncadd (%p6119_p2), %s322_s4, 4294966272  ;;  %s6120_s7 = sld [smem:[#allocation17_spill]]  ;;  %v415_v1 = vld [vmem:[%s325_s18 + $0x10] sm:$0xff]  ;;  %v413_v2 = vld [vmem:[%s325_s18] sm:$0xff]  ;;  %s4074_s13 = smov 8   ;;  %vm451_vm0 = vcmask 64512  }
  0x91   : > { %v416_v3 = vld [vmem:[%s325_s18 + $0x18] sm:$0xff]  ;;  %v414_v6 = vld [vmem:[%s325_s18 + $0x8] sm:$0xff]  ;;  %v417_v10 = vld [vmem:[%s325_s18 + $0x20] sm:$0xff]  ;;  %s4075_s2 = smov 16   ;;  %s4076_s9 = smov 24   ;;  %vm516_vm1 = vcmask 130112  }
  0x92   : > { %v418_v9 = vld [vmem:[%s325_s18 + $0x28] sm:$0xff]  ;;  %v420_v12 = vld [vmem:[%s325_s18 + $0x38] sm:$0xff]  ;;  %v419_v13 = vld [vmem:[%s325_s18 + $0x30] sm:$0xff]  ;;  %s4077_s8 = smov 32   ;;  %s4078_s29 = smov 40   ;;  %vm558_vm2 = vcmask 195712  }
  0x93   : > { %v4408_v11 = vld [vmem:[%s4384_s21 + $0x8] sm:$0xff]  ;;  %v4411_v14 = vld [vmem:[%s4384_s21] sm:$0xff]  ;;  %v4414_v15 = vld [vmem:[%s4384_s21 + $0x18] sm:$0xff]  ;;  %s4079_s27 = smov 48   ;;  %vm792_vm3 = vcmask 261312   ;;  %vm798_vm4 = vcmask 326912  }
  0x94   : > { %v4417_v16 = vld [vmem:[%s4384_s21 + $0x10] sm:$0xff]  ;;  %453 = vst.msk [vmem:[#allocation2 + $0x8] sm:$0xff] %vm451_vm0, %v4408_v11  ;;  %v4424_v19 = vld [vmem:[%s4384_s21 + $0x28] sm:$0xff]  ;;  %v4427_v20 = vld [vmem:[%s4384_s21 + $0x20] sm:$0xff]  ;;  %vm1028_vm5 = vcmask 385344   ;;  %vm1061_vm6 = vcmask 450944  }
  0x95   : > { %454 = vst.msk [vmem:[#allocation2 + $0x10] sm:$0xff] %vm451_vm0, %v4417_v16  ;;  %452 = vst.msk [vmem:[#allocation2] sm:$0xff] %vm451_vm0, %v4411_v14  ;;  %v4438_v21 = vld [vmem:[%s4384_s21 + $0x38] sm:$0xff]  ;;  %v4441_v22 = vld [vmem:[%s4384_s21 + $0x30] sm:$0xff]  ;;  %vm1190_vm7 = vcmask 391488   ;;  %s6123_s14 = sld [smem:[#allocation36_spill]] }
  0x96   : > { %p421_p4 = scmp.eq.s32.totalorder %s6120_s7, 0  ;;  %p440_p11 = scmp.eq.s32.totalorder %s6120_s7, 1  ;;  %455 = vst.msk [vmem:[#allocation2 + $0x18] sm:$0xff] %vm451_vm0, %v4414_v15  ;;  %v4444_v23 = vld [vmem:[%s4384_s21 + $0x48] sm:$0xff]  ;;  %456 = vst.msk [vmem:[#allocation2 + $0x20] sm:$0xff] %vm451_vm0, %v4427_v20  ;;  %v4451_v24 = vld [vmem:[%s4384_s21 + $0x40] sm:$0xff] }
  0x97   : > { %457 = vst.msk [vmem:[#allocation2 + $0x28] sm:$0xff] %vm451_vm0, %v4424_v19  ;;  %v4454_v25 = vld [vmem:[%s4384_s21 + $0x58] sm:$0xff]  ;;  %v4457_v26 = vld [vmem:[%s4384_s21 + $0x50] sm:$0xff]  ;;  %458 = vst.msk [vmem:[#allocation2 + $0x30] sm:$0xff] %vm451_vm0, %v4441_v22  ;;  %vm1319_vm8 = vcmask 458113   ;;  %vm1391_vm9 = vcmask 457728  }
  0x98   : > { %s422_s11 = scalar_select %p421_p4, 0.0, 1.0  ;;  %459 = vst.msk [vmem:[#allocation2 + $0x38] sm:$0xff] %vm451_vm0, %v4438_v21  ;;  %461 = vst.msk [vmem:[#allocation2 + $0x48] sm:$0xff] %vm451_vm0, %v4444_v23  ;;  %v433_v27 = vld [vmem:[%s4397_s3 + $0x8] sm:$0xff]  ;;  %v432_v28 = vld [vmem:[%s4397_s3] sm:$0xff] }
  0x99   : > { %s441_s23 = scalar_select %p440_p11, 0.0, 1.0  ;;  %v4468_v29 = vld [vmem:[%s4384_s21 + $0x68] sm:$0xff]  ;;  %v4471_v30 = vld [vmem:[%s4384_s21 + $0x60] sm:$0xff]  ;;  %v4474_v31 = vld [vmem:[%s4384_s21 + $0x78] sm:$0xff]  ;;  %460 = vst.msk [vmem:[#allocation2 + $0x40] sm:$0xff] %vm451_vm0, %v4451_v24 }
  0x9a   : > { %v423_v0 = vstv %s422_s11  ;;  %462 = vst.msk [vmem:[#allocation2 + $0x50] sm:$0xff] %vm451_vm0, %v4457_v26  ;;  %463 = vst.msk [vmem:[#allocation2 + $0x58] sm:$0xff] %vm451_vm0, %v4454_v25  ;;  %v4485_v34 = vld [vmem:[%s4384_s21 + $0x70] sm:$0xff]  ;;  %v4488_v35 = vld [vmem:[%s4384_s21 + $0x88] sm:$0xff]  ;;  %s6135_s1 = sld [smem:[#allocation37_spill]]  ;;  %s2823_s11 = scalar_lea.sflag [#allocation5], %s4378_s0 }
  0x9b   : > { %v426_v4 = vmul.f32 %v423_v0, %v415_v1  ;;  %v424_v5 = vmul.f32 %v423_v0, %v413_v2  ;;  %v427_v7 = vmul.f32 %v423_v0, %v416_v3  ;;  %v425_v8 = vmul.f32 %v423_v0, %v414_v6  ;;  %464 = vst.msk [vmem:[#allocation2 + $0x60] sm:$0xff] %vm451_vm0, %v4471_v30  ;;  %v4497_v37 = vld [vmem:[%s4384_s21 + $0x80] sm:$0xff]  ;;  %v4500_v38 = vld [vmem:[%s4384_s21 + $0x98] sm:$0xff]  ;;  %v4503_v39 = vld [vmem:[%s4384_s21 + $0x90] sm:$0xff]  ;;  %p6136_p7 = scmp.ne.s32.totalorder %s6100_s16, 0  ;;  %s4083_s30 = smov [#allocation9]  }
  0x9c   : > { %v429_v17 = vmul.f32 %v423_v0, %v418_v9  ;;  %v428_v18 = vmul.f32 %v423_v0, %v417_v10  ;;  %v431_v32 = vmul.f32 %v423_v0, %v420_v12  ;;  %v430_v33 = vmul.f32 %v423_v0, %v419_v13  ;;  %465 = vst.msk [vmem:[#allocation2 + $0x68] sm:$0xff] %vm451_vm0, %v4468_v29  ;;  %v4510_v40 = vld [vmem:[%s4384_s21 + $0xa8] sm:$0xff]  ;;  %v4513_v41 = vld [vmem:[%s4384_s21 + $0xa0] sm:$0xff]  ;;  %v4516_v42 = vld [vmem:[%s4384_s21 + $0xb8] sm:$0xff]  ;;  %s3919_s28 = sshll.u32 %s4083_s30, 4  ;;  %s3920_s28 = int_to_ptr.vmem [resolvable:$false] %s3919_s28 }
  0x9d   : > { %496 = vrot.lane.b32.xlu1 %v426_v4, %s4074_s13  ;;  %492 = vrot.lane.b32.xlu0 %v424_v5, %s4074_s13  ;;  %467 = vst.msk [vmem:[#allocation2 + $0x78] sm:$0xff] %vm451_vm0, %v4474_v31  ;;  %v442_v36 = vstv %s441_s23  ;;  %466 = vst.msk [vmem:[#allocation2 + $0x70] sm:$0xff] %vm451_vm0, %v4485_v34  ;;  %v435_v43 = vld [vmem:[%s4397_s3 + $0x18] sm:$0xff] }
  0x9e   : > { %469 = vst.msk [vmem:[#allocation2 + $0x88] sm:$0xff] %vm451_vm0, %v4488_v35  ;;  %468 = vst.msk [vmem:[#allocation2 + $0x80] sm:$0xff] %vm451_vm0, %v4497_v37  ;;  %v434_v44 = vld [vmem:[%s4397_s3 + $0x10] sm:$0xff]  ;;  %v4530_v46 = vld [vmem:[%s4384_s21 + $0xc0] sm:$0xff]  ;;  %v444_v48 = vmul.f32 %v442_v36, %v433_v27  ;;  %v443_v49 = vmul.f32 %v442_v36, %v432_v28  ;;  %v446_v56 = vmul.f32 %v442_v36, %v435_v43 }
  0x9f   : > { %470 = vst.msk [vmem:[#allocation2 + $0x90] sm:$0xff] %vm451_vm0, %v4503_v39  ;;  %471 = vst.msk [vmem:[#allocation2 + $0x98] sm:$0xff] %vm451_vm0, %v4500_v38  ;;  %v4527_v45 = vld [vmem:[%s4384_s21 + $0xb0] sm:$0xff]  ;;  %v4533_v47 = vld [vmem:[%s4384_s21 + $0xc8] sm:$0xff]  ;;  %v445_v57 = vmul.f32 %v442_v36, %v434_v44 }
  0xa0   : > { %472 = vst.msk [vmem:[#allocation2 + $0xa0] sm:$0xff] %vm451_vm0, %v4513_v41  ;;  %473 = vst.msk [vmem:[#allocation2 + $0xa8] sm:$0xff] %vm451_vm0, %v4510_v40  ;;  %v4550_v50 = vld [vmem:[%s4384_s21 + $0xd0] sm:$0xff]  ;;  %v4553_v51 = vld [vmem:[%s4384_s21 + $0xd8] sm:$0xff] }
  0xa1   : > { %498 = vrot.lane.b32.xlu1 %v427_v7, %s4074_s13  ;;  %494 = vrot.lane.b32.xlu0 %v425_v8, %s4074_s13  ;;  %475 = vst.msk [vmem:[#allocation2 + $0xb8] sm:$0xff] %vm451_vm0, %v4516_v42  ;;  %474 = vst.msk [vmem:[#allocation2 + $0xb0] sm:$0xff] %vm451_vm0, %v4527_v45  ;;  %v4560_v52 = vld [vmem:[%s4384_s21 + $0xe8] sm:$0xff]  ;;  %v4563_v53 = vld [vmem:[%s4384_s21 + $0xe0] sm:$0xff] }
  0xa2   : > { %476 = vst.msk [vmem:[#allocation2 + $0xc0] sm:$0xff] %vm451_vm0, %v4530_v46  ;;  %477 = vst.msk [vmem:[#allocation2 + $0xc8] sm:$0xff] %vm451_vm0, %v4533_v47  ;;  %v4566_v54 = vld [vmem:[%s4384_s21 + $0xf0] sm:$0xff]  ;;  %v4573_v55 = vld [vmem:[%s4384_s21 + $0xf8] sm:$0xff]  ;;  %s6121_s21 = sld [smem:[#allocation35_spill]] }
  0xa3   : > { %478 = vst.msk [vmem:[#allocation2 + $0xd0] sm:$0xff] %vm451_vm0, %v4550_v50  ;;  %479 = vst.msk [vmem:[#allocation2 + $0xd8] sm:$0xff] %vm451_vm0, %v4553_v51  ;;  %v437_v58 = vld [vmem:[%s4397_s3 + $0x28] sm:$0xff]  ;;  %v436_v59 = vld [vmem:[%s4397_s3 + $0x20] sm:$0xff] }
  0xa4   : > { %481 = vst.msk [vmem:[#allocation2 + $0xe8] sm:$0xff] %vm451_vm0, %v4560_v52  ;;  %480 = vst.msk [vmem:[#allocation2 + $0xe0] sm:$0xff] %vm451_vm0, %v4563_v53  ;;  %v448_v60 = vmul.f32 %v442_v36, %v437_v58  ;;  %v447_v61 = vmul.f32 %v442_v36, %v436_v59  ;;  %v439_v62 = vld [vmem:[%s4397_s3 + $0x38] sm:$0xff]  ;;  %v438_v63 = vld [vmem:[%s4397_s3 + $0x30] sm:$0xff] }
  0xa5   : > { %502 = vrot.lane.b32.xlu1 %v429_v17, %s4074_s13  ;;  %500 = vrot.lane.b32.xlu0 %v428_v18, %s4074_s13  ;;  %482 = vst.msk [vmem:[#allocation2 + $0xf0] sm:$0xff] %vm451_vm0, %v4566_v54  ;;  %483 = vst.msk [vmem:[#allocation2 + $0xf8] sm:$0xff] %vm451_vm0, %v4573_v55  ;;  %v450_v0 = vmul.f32 %v442_v36, %v439_v62  ;;  %v449_v1 = vmul.f32 %v442_v36, %v438_v63 }
  0xa8   : > { %s6122_s15 = smov %s6121_s21  ;;  %v1390_v10 = vld [vmem:[%s6121_s21 + $0x30] sm:$0xff]  ;;  %s3921_s21 = scalar_lea.vmem %s3920_s28, 8192 }
  0xa9   : > { %506 = vrot.lane.b32.xlu1 %v431_v32, %s4074_s13  ;;  %504 = vrot.lane.b32.xlu0 %v430_v33, %s4074_s13  ;;  %v1389_v17 = vld [vmem:[%s6122_s15 + $0x28] sm:$0xff]  ;;  %v1388_v18 = vld [vmem:[%s6122_s15 + $0x20] sm:$0xff] }
  0xaa   : > { %3191 = vmatprep.subr.mxu0 %v1390_v10  ;;  %3253 = vmatprep.subr.mxu1 %v1390_v10  ;;  %v1387_v32 = vld [vmem:[%s6122_s15 + $0x18] sm:$0xff]  ;;  %v1386_v33 = vld [vmem:[%s6122_s15 + $0x10] sm:$0xff] }
  0xab   : > { %3192 = vmatpush3.msra.mxu0 %v1390_v10  ;;  %3260 = vmatpush3.msra.mxu1 %v1390_v10 }
  0xac   : > { %3193 = vmatprep.subr.mxu0 %v1389_v17  ;;  %3254 = vmatprep.subr.mxu1 %v1389_v17 }
  0xad   : > { %535 = vrot.lane.b32.xlu1 %v444_v48, %s4075_s2  ;;  %533 = vrot.lane.b32.xlu0 %v443_v49, %s4075_s2  ;;  %v1384_v49 = vld [vmem:[%s6122_s15] sm:$0xff] }
  0xae   : > { %3194 = vmatpush3.msra.mxu0 %v1389_v17  ;;  %3261 = vmatpush3.msra.mxu1 %v1389_v17 }
  0xaf   : > { %3195 = vmatprep.subr.mxu0 %v1388_v18  ;;  %3255 = vmatprep.subr.mxu1 %v1388_v18 }
  0xb0   : > { %3196 = vmatpush3.msra.mxu0 %v1388_v18  ;;  %3262 = vmatpush3.msra.mxu1 %v1388_v18 }
  0xb1   : > { %539 = vrot.lane.b32.xlu1 %v446_v56, %s4075_s2  ;;  %537 = vrot.lane.b32.xlu0 %v445_v57, %s4075_s2 }
  0xb2   : > { %3197 = vmatprep.subr.mxu0 %v1387_v32  ;;  %3256 = vmatprep.subr.mxu1 %v1387_v32 }
  0xb3   : > { %3198 = vmatpush3.msra.mxu0 %v1387_v32  ;;  %3263 = vmatpush3.msra.mxu1 %v1387_v32 }
  0xb4   : > { %3199 = vmatprep.subr.mxu0 %v1386_v33  ;;  %3257 = vmatprep.subr.mxu1 %v1386_v33 }
  0xb5   : > { %543 = vrot.lane.b32.xlu1 %v448_v60, %s4075_s2  ;;  %541 = vrot.lane.b32.xlu0 %v447_v61, %s4075_s2 }
  0xb6   : > { %3200 = vmatpush3.msra.mxu0 %v1386_v33  ;;  %3264 = vmatpush3.msra.mxu1 %v1386_v33 }
  0xb9   : > { %547 = vrot.lane.b32.xlu1 %v450_v0, %s4075_s2  ;;  %545 = vrot.lane.b32.xlu0 %v449_v1, %s4075_s2 }
  0xbd   : > { %593 = vrot.lane.b32.xlu1 %v4408_v11, %s4074_s13  ;;  %591 = vrot.lane.b32.xlu0 %v4411_v14, %s4074_s13 }
  0xc1   : > { %597 = vrot.lane.b32.xlu1 %v4414_v15, %s4074_s13  ;;  %595 = vrot.lane.b32.xlu0 %v4417_v16, %s4074_s13 }
  0xc5   : > { %601 = vrot.lane.b32.xlu1 %v4424_v19, %s4074_s13  ;;  %599 = vrot.lane.b32.xlu0 %v4427_v20, %s4074_s13 }
  0xc9   : > { %605 = vrot.lane.b32.xlu1 %v4438_v21, %s4074_s13  ;;  %603 = vrot.lane.b32.xlu0 %v4441_v22, %s4074_s13 }
  0xcd   : > { %609 = vrot.lane.b32.xlu1 %v4444_v23, %s4074_s13  ;;  %607 = vrot.lane.b32.xlu0 %v4451_v24, %s4074_s13 }
  0xd1   : > { %613 = vrot.lane.b32.xlu1 %v4454_v25, %s4074_s13  ;;  %611 = vrot.lane.b32.xlu0 %v4457_v26, %s4074_s13 }
  0xd5   : > { %617 = vrot.lane.b32.xlu1 %v4468_v29, %s4074_s13  ;;  %615 = vrot.lane.b32.xlu0 %v4471_v30, %s4074_s13 }
  0xd9   : > { %621 = vrot.lane.b32.xlu1 %v4474_v31, %s4074_s13  ;;  %619 = vrot.lane.b32.xlu0 %v4485_v34, %s4074_s13 }
  0xdd   : > { %625 = vrot.lane.b32.xlu1 %v4488_v35, %s4074_s13  ;;  %623 = vrot.lane.b32.xlu0 %v4497_v37, %s4074_s13 }
  0xe1   : > { %629 = vrot.lane.b32.xlu1 %v4500_v38, %s4074_s13  ;;  %627 = vrot.lane.b32.xlu0 %v4503_v39, %s4074_s13 }
  0xe5   : > { %633 = vrot.lane.b32.xlu1 %v4510_v40, %s4074_s13  ;;  %631 = vrot.lane.b32.xlu0 %v4513_v41, %s4074_s13 }
  0xe9   : > { %637 = vrot.lane.b32.xlu1 %v4516_v42, %s4074_s13  ;;  %635 = vrot.lane.b32.xlu0 %v4527_v45, %s4074_s13 }
  0xed   : > { %698 = vrot.lane.b32.xlu1 %v4444_v23, %s4075_s2  ;;  %696 = vrot.lane.b32.xlu0 %v4451_v24, %s4075_s2 }
  0xf1   : > { %702 = vrot.lane.b32.xlu1 %v4454_v25, %s4075_s2  ;;  %700 = vrot.lane.b32.xlu0 %v4457_v26, %s4075_s2 }
  0xf5   : > { %706 = vrot.lane.b32.xlu1 %v4468_v29, %s4075_s2  ;;  %704 = vrot.lane.b32.xlu0 %v4471_v30, %s4075_s2 }
  0xf9   : > { %710 = vrot.lane.b32.xlu1 %v4474_v31, %s4075_s2  ;;  %708 = vrot.lane.b32.xlu0 %v4485_v34, %s4075_s2 }
  0xfd   : > { %714 = vrot.lane.b32.xlu1 %v4488_v35, %s4075_s2  ;;  %712 = vrot.lane.b32.xlu0 %v4497_v37, %s4075_s2 }
 0x101   : > { %718 = vrot.lane.b32.xlu1 %v4500_v38, %s4075_s2  ;;  %716 = vrot.lane.b32.xlu0 %v4503_v39, %s4075_s2 }
 0x105   : > { %728 = vrot.lane.b32.xlu1 %v4530_v46, %s4075_s2  ;;  %720 = vrot.lane.b32.xlu0 %v4513_v41, %s4075_s2 }
 0x109   : > { %803 = vrot.lane.b32.xlu1 %v4411_v14, %s4076_s9  ;;  %730 = vrot.lane.b32.xlu0 %v4533_v47, %s4075_s2 }
 0x10d   : > { %916 = vrot.lane.b32.xlu1 %v4408_v11, %s4077_s8  ;;  %831 = vrot.lane.b32.xlu0 %v4497_v37, %s4076_s9 }
 0x10f   : > { %v497_v2 = vpop.permute.xlu1 %496  ;;  %v493_v3 = vpop.permute.xlu0 %492 }
 0x110   : > { %519 = vst.msk [vmem:[#allocation2 + $0x10] sm:$0xff] %vm516_vm1, %v497_v2  ;;  %517 = vst.msk [vmem:[#allocation2] sm:$0xff] %vm516_vm1, %v493_v3 }
 0x111   : > { %918 = vrot.lane.b32.xlu1 %v4417_v16, %s4077_s8  ;;  %944 = vrot.lane.b32.xlu0 %v4488_v35, %s4077_s8 }
 0x113   : > { %v499_v4 = vpop.permute.xlu1 %498  ;;  %v495_v5 = vpop.permute.xlu0 %494 }
 0x114   : > { %520 = vst.msk [vmem:[#allocation2 + $0x18] sm:$0xff] %vm516_vm1, %v499_v4  ;;  %518 = vst.msk [vmem:[#allocation2 + $0x8] sm:$0xff] %vm516_vm1, %v495_v5 }
 0x115   : > { %732 = vrot.lane.b32.xlu1 %v4550_v50, %s4075_s2  ;;  %946 = vrot.lane.b32.xlu0 %v4503_v39, %s4077_s8 }
 0x117   : > { %v503_v6 = vpop.permute.xlu1 %502  ;;  %v501_v7 = vpop.permute.xlu0 %500 }
 0x118   : > { %522 = vst.msk [vmem:[#allocation2 + $0x28] sm:$0xff] %vm516_vm1, %v503_v6  ;;  %521 = vst.msk [vmem:[#allocation2 + $0x20] sm:$0xff] %vm516_vm1, %v501_v7 }
 0x119   : > { %1126 = vrot.lane.b32.xlu1 %v4497_v37, %s4078_s29  ;;  %1094 = vrot.lane.b32.xlu0 %v4411_v14, %s4078_s29 }
 0x11b   : > { %v507_v8 = vpop.permute.xlu1 %506  ;;  %v505_v9 = vpop.permute.xlu0 %504 }
 0x11c   : > { %524 = vst.msk [vmem:[#allocation2 + $0x38] sm:$0xff] %vm516_vm1, %v507_v8  ;;  %523 = vst.msk [vmem:[#allocation2 + $0x30] sm:$0xff] %vm516_vm1, %v505_v9 }
 0x11d   : > { %805 = vrot.lane.b32.xlu1 %v4408_v11, %s4076_s9  ;;  %734 = vrot.lane.b32.xlu0 %v4553_v51, %s4075_s2 }
 0x11f   : > { %v536_v12 = vpop.permute.xlu1 %535  ;;  %v534_v13 = vpop.permute.xlu0 %533 }
 0x120   : > { %560 = vst.msk [vmem:[#allocation2 + $0xc8] sm:$0xff] %vm558_vm2, %v536_v12  ;;  %559 = vst.msk [vmem:[#allocation2 + $0xc0] sm:$0xff] %vm558_vm2, %v534_v13 }
 0x121   : > { %1096 = vrot.lane.b32.xlu1 %v4408_v11, %s4078_s29  ;;  %833 = vrot.lane.b32.xlu0 %v4488_v35, %s4076_s9 }
 0x123   : > { %v540_v27 = vpop.permute.xlu1 %539  ;;  %v538_v28 = vpop.permute.xlu0 %537 }
 0x124   : > { %562 = vst.msk [vmem:[#allocation2 + $0xd8] sm:$0xff] %vm558_vm2, %v540_v27  ;;  %561 = vst.msk [vmem:[#allocation2 + $0xd0] sm:$0xff] %vm558_vm2, %v538_v28 }
 0x125   : > { %1223 = vrot.lane.b32.xlu1 %v4411_v14, %s4079_s27  ;;  %1128 = vrot.lane.b32.xlu0 %v4488_v35, %s4078_s29  ;;  %v1385_v14 = vld [vmem:[%s6122_s15 + $0x8] sm:$0xff] }
 0x126   : > { %3201 = vmatprep.subr.mxu0 %v1385_v14  ;;  %3258 = vmatprep.subr.mxu1 %v1385_v14 }
 0x127   : > { %v544_v36 = vpop.permute.xlu1 %543  ;;  %v542_v43 = vpop.permute.xlu0 %541  ;;  %3202 = vmatpush3.msra.mxu0 %v1385_v14  ;;  %3265 = vmatpush3.msra.mxu1 %v1385_v14 }
 0x128   : > { %564 = vst.msk [vmem:[#allocation2 + $0xe8] sm:$0xff] %vm558_vm2, %v544_v36  ;;  %563 = vst.msk [vmem:[#allocation2 + $0xe0] sm:$0xff] %vm558_vm2, %v542_v43  ;;  %3203 = vmatprep.subr.mxu0 %v1384_v49  ;;  %3259 = vmatprep.subr.mxu1 %v1384_v49 }
 0x129   : > { %807 = vrot.lane.b32.xlu1 %v4417_v16, %s4076_s9  ;;  %1255 = vrot.lane.b32.xlu0 %v4497_v37, %s4079_s27 }
 0x12a   : > { %3204 = vmatpush3.msra.mxu0 %v1384_v49  ;;  %3266 = vmatpush3.msra.mxu1 %v1384_v49 }
 0x12b   : > { %v548_v44 = vpop.permute.xlu1 %547  ;;  %v546_v48 = vpop.permute.xlu0 %545 }
 0x12c   : > { %566 = vst.msk [vmem:[#allocation2 + $0xf8] sm:$0xff] %vm558_vm2, %v548_v44  ;;  %565 = vst.msk [vmem:[#allocation2 + $0xf0] sm:$0xff] %vm558_vm2, %v546_v48 }
 0x12d   : > { %920 = vrot.lane.b32.xlu1 %v4414_v15, %s4077_s8  ;;  %835 = vrot.lane.b32.xlu0 %v4503_v39, %s4076_s9 }
 0x12f   : > { %v594_v37 = vpop.permute.xlu1 %593  ;;  %v592_v56 = vpop.permute.xlu0 %591 }
 0x130   : > { %665 = vst.msk [vmem:[#allocation2 + $0x48] sm:$0xff] %vm516_vm1, %v594_v37  ;;  %664 = vst.msk [vmem:[#allocation2 + $0x40] sm:$0xff] %vm516_vm1, %v592_v56 }
 0x131   : > { %1225 = vrot.lane.b32.xlu1 %v4408_v11, %s4079_s27  ;;  %948 = vrot.lane.b32.xlu0 %v4500_v38, %s4077_s8 }
 0x133   : > { %v598_v57 = vpop.permute.xlu1 %597  ;;  %v596_v58 = vpop.permute.xlu0 %595 }
 0x134   : > { %667 = vst.msk [vmem:[#allocation2 + $0x58] sm:$0xff] %vm516_vm1, %v598_v57  ;;  %666 = vst.msk [vmem:[#allocation2 + $0x50] sm:$0xff] %vm516_vm1, %v596_v58 }
 0x135   : > { %922 = vrot.lane.b32.xlu1 %v4427_v20, %s4077_s8  ;;  %1257 = vrot.lane.b32.xlu0 %v4488_v35, %s4079_s27 }
 0x137   : > { %v602_v59 = vpop.permute.xlu1 %601  ;;  %v600_v60 = vpop.permute.xlu0 %599 }
 0x138   : > { %669 = vst.msk [vmem:[#allocation2 + $0x68] sm:$0xff] %vm516_vm1, %v602_v59  ;;  %668 = vst.msk [vmem:[#allocation2 + $0x60] sm:$0xff] %vm516_vm1, %v600_v60  ;;  %v1714_v59 = vlaneseq }
 0x139   : > { %736 = vrot.lane.b32.xlu1 %v4563_v53, %s4075_s2  ;;  %950 = vrot.lane.b32.xlu0 %v4513_v41, %s4077_s8 }
 0x13b   : > { %v606_v11 = vpop.permute.xlu1 %605  ;;  %v604_v61 = vpop.permute.xlu0 %603 }
 0x13c   : > { %671 = vst.msk [vmem:[#allocation2 + $0x78] sm:$0xff] %vm516_vm1, %v606_v11  ;;  %670 = vst.msk [vmem:[#allocation2 + $0x70] sm:$0xff] %vm516_vm1, %v604_v61  ;;  %v4910_v11 = vshrl.u32 %v1714_v59, 7 }
 0x13d   : > { %1130 = vrot.lane.b32.xlu1 %v4503_v39, %s4078_s29  ;;  %1098 = vrot.lane.b32.xlu0 %v4417_v16, %s4078_s29 }
 0x13e   : > { %v1716_v61 = vsub.s32 0, %v4910_v11 }
 0x13f   : > { %v610_v35 = vpop.permute.xlu1 %609  ;;  %v608_v62 = vpop.permute.xlu0 %607 }
 0x140   : > { %673 = vst.msk [vmem:[#allocation2 + $0x88] sm:$0xff] %vm516_vm1, %v610_v35  ;;  %672 = vst.msk [vmem:[#allocation2 + $0x80] sm:$0xff] %vm516_vm1, %v608_v62  ;;  %v1944_v35 = vsub.s32 1, %v4910_v11  ;;  %v1980_v62 = vsub.s32 2, %v4910_v11 }
 0x141   : > { %809 = vrot.lane.b32.xlu1 %v4414_v15, %s4076_s9  ;;  %738 = vrot.lane.b32.xlu0 %v4560_v52, %s4075_s2 }
 0x143   : > { %v614_v63 = vpop.permute.xlu1 %613  ;;  %v612_v0 = vpop.permute.xlu0 %611 }
 0x144   : > { %675 = vst.msk [vmem:[#allocation2 + $0x98] sm:$0xff] %vm516_vm1, %v614_v63  ;;  %674 = vst.msk [vmem:[#allocation2 + $0x90] sm:$0xff] %vm516_vm1, %v612_v0  ;;  %v4924_v63 = vld [vmem:[%s6123_s14] sm:$0xf] }
 0x145   : > { %1100 = vrot.lane.b32.xlu1 %v4414_v15, %s4078_s29  ;;  %837 = vrot.lane.b32.xlu0 %v4500_v38, %s4076_s9 }
 0x147   : > { %v618_v1 = vpop.permute.xlu1 %617  ;;  %v616_v2 = vpop.permute.xlu0 %615 }
 0x148   : > { %677 = vst.msk [vmem:[#allocation2 + $0xa8] sm:$0xff] %vm516_vm1, %v618_v1  ;;  %676 = vst.msk [vmem:[#allocation2 + $0xa0] sm:$0xff] %vm516_vm1, %v616_v2  ;;  %v4927_v2 = vrot.slane %v4924_v63, %v1716_v61 }
 0x149   : > { %1227 = vrot.lane.b32.xlu1 %v4417_v16, %s4079_s27  ;;  %1132 = vrot.lane.b32.xlu0 %v4500_v38, %s4078_s29  ;;  %v4080_v16 = vmov 0.0  }
 0x14b   : > { %v622_v3 = vpop.permute.xlu1 %621  ;;  %v620_v4 = vpop.permute.xlu0 %619 }
 0x14c   : > { %679 = vst.msk [vmem:[#allocation2 + $0xb8] sm:$0xff] %vm516_vm1, %v622_v3  ;;  %678 = vst.msk [vmem:[#allocation2 + $0xb0] sm:$0xff] %vm516_vm1, %v620_v4  ;;  %v4930_v3 = vrot.slane %v4924_v63, %v1944_v35  ;;  %v4933_v4 = vrot.slane %v4924_v63, %v1980_v62 }
 0x14d   : > { %811 = vrot.lane.b32.xlu1 %v4427_v20, %s4076_s9  ;;  %1259 = vrot.lane.b32.xlu0 %v4503_v39, %s4079_s27 }
 0x14f   : > { %v626_v5 = vpop.permute.xlu1 %625  ;;  %v624_v6 = vpop.permute.xlu0 %623 }
 0x150   : > { %681 = vst.msk [vmem:[#allocation2 + $0xc8] sm:$0xff] %vm516_vm1, %v626_v5  ;;  %680 = vst.msk [vmem:[#allocation2 + $0xc0] sm:$0xff] %vm516_vm1, %v624_v6 }
 0x151   : > { %924 = vrot.lane.b32.xlu1 %v4424_v19, %s4077_s8  ;;  %839 = vrot.lane.b32.xlu0 %v4513_v41, %s4076_s9  ;;  %796 = vst.msk [vmem:[#allocation2 + $0xc0] sm:$0xff] %vm792_vm3, %v4080_v16 }
 0x153   : > { %v630_v7 = vpop.permute.xlu1 %629  ;;  %v628_v8 = vpop.permute.xlu0 %627 }
 0x154   : > { %683 = vst.msk [vmem:[#allocation2 + $0xd8] sm:$0xff] %vm516_vm1, %v630_v7  ;;  %682 = vst.msk [vmem:[#allocation2 + $0xd0] sm:$0xff] %vm516_vm1, %v628_v8 }
 0x155   : > { %1229 = vrot.lane.b32.xlu1 %v4414_v15, %s4079_s27  ;;  %952 = vrot.lane.b32.xlu0 %v4510_v40, %s4077_s8 }
 0x157   : > { %v634_v39 = vpop.permute.xlu1 %633  ;;  %v632_v9 = vpop.permute.xlu0 %631 }
 0x158   : > { %685 = vst.msk [vmem:[#allocation2 + $0xe8] sm:$0xff] %vm516_vm1, %v634_v39  ;;  %684 = vst.msk [vmem:[#allocation2 + $0xe0] sm:$0xff] %vm516_vm1, %v632_v9 }
 0x159   : > { %926 = vrot.lane.b32.xlu1 %v4441_v22, %s4077_s8  ;;  %1261 = vrot.lane.b32.xlu0 %v4500_v38, %s4079_s27 }
 0x15b   : > { %v638_v10 = vpop.permute.xlu1 %637  ;;  %v636_v12 = vpop.permute.xlu0 %635 }
 0x15c   : > { %687 = vst.msk [vmem:[#allocation2 + $0xf8] sm:$0xff] %vm516_vm1, %v638_v10  ;;  %686 = vst.msk [vmem:[#allocation2 + $0xf0] sm:$0xff] %vm516_vm1, %v636_v12 }
 0x15d   : > { %740 = vrot.lane.b32.xlu1 %v4566_v54, %s4075_s2  ;;  %954 = vrot.lane.b32.xlu0 %v4527_v45, %s4077_s8  ;;  %802 = vst.msk [vmem:[#allocation2 + $0xf8] sm:$0xff] %vm798_vm4, %v4080_v16 }
 0x15f   : > { %v699_v15 = vpop.permute.xlu1 %698  ;;  %v697_v13 = vpop.permute.xlu0 %696 }
 0x160   : > { %769 = vst.msk [vmem:[#allocation2 + $0x8] sm:$0xff] %vm558_vm2, %v699_v15  ;;  %768 = vst.msk [vmem:[#allocation2] sm:$0xff] %vm558_vm2, %v697_v13 }
 0x161   : > { %1134 = vrot.lane.b32.xlu1 %v4513_v41, %s4078_s29  ;;  %1102 = vrot.lane.b32.xlu0 %v4427_v20, %s4078_s29  ;;  %793 = vst.msk [vmem:[#allocation2] sm:$0xff] %vm792_vm3, %v4080_v16 }
 0x163   : > { %v703_v38 = vpop.permute.xlu1 %702  ;;  %v701_v17 = vpop.permute.xlu0 %700 }
 0x164   : > { %771 = vst.msk [vmem:[#allocation2 + $0x18] sm:$0xff] %vm558_vm2, %v703_v38  ;;  %770 = vst.msk [vmem:[#allocation2 + $0x10] sm:$0xff] %vm558_vm2, %v701_v17 }
 0x165   : > { %813 = vrot.lane.b32.xlu1 %v4424_v19, %s4076_s9  ;;  %742 = vrot.lane.b32.xlu0 %v4573_v55, %s4075_s2 }
 0x167   : > { %v707_v18 = vpop.permute.xlu1 %706  ;;  %v705_v27 = vpop.permute.xlu0 %704 }
 0x168   : > { %773 = vst.msk [vmem:[#allocation2 + $0x28] sm:$0xff] %vm558_vm2, %v707_v18  ;;  %772 = vst.msk [vmem:[#allocation2 + $0x20] sm:$0xff] %vm558_vm2, %v705_v27 }
 0x169   : > { %1104 = vrot.lane.b32.xlu1 %v4424_v19, %s4078_s29  ;;  %841 = vrot.lane.b32.xlu0 %v4510_v40, %s4076_s9 }
 0x16b   : > { %v711_v28 = vpop.permute.xlu1 %710  ;;  %v709_v32 = vpop.permute.xlu0 %708 }
 0x16c   : > { %775 = vst.msk [vmem:[#allocation2 + $0x38] sm:$0xff] %vm558_vm2, %v711_v28  ;;  %774 = vst.msk [vmem:[#allocation2 + $0x30] sm:$0xff] %vm558_vm2, %v709_v32 }
 0x16d   : > { %1231 = vrot.lane.b32.xlu1 %v4427_v20, %s4079_s27  ;;  %1136 = vrot.lane.b32.xlu0 %v4510_v40, %s4078_s29  ;;  %799 = vst.msk [vmem:[#allocation2 + $0x38] sm:$0xff] %vm798_vm4, %v4080_v16 }
 0x16f   : > { %v715_v33 = vpop.permute.xlu1 %714  ;;  %v713_v36 = vpop.permute.xlu0 %712 }
 0x170   : > { %777 = vst.msk [vmem:[#allocation2 + $0x48] sm:$0xff] %vm558_vm2, %v715_v33  ;;  %776 = vst.msk [vmem:[#allocation2 + $0x40] sm:$0xff] %vm558_vm2, %v713_v36 }
 0x171   : > { %928 = vrot.lane.b32.xlu1 %v4438_v21, %s4077_s8  ;;  %1263 = vrot.lane.b32.xlu0 %v4513_v41, %s4079_s27  ;;  %794 = vst.msk [vmem:[#allocation2 + $0x40] sm:$0xff] %vm792_vm3, %v4080_v16 }
 0x173   : > { %v719_v20 = vpop.permute.xlu1 %718  ;;  %v717_v43 = vpop.permute.xlu0 %716 }
 0x174   : > { %779 = vst.msk [vmem:[#allocation2 + $0x58] sm:$0xff] %vm558_vm2, %v719_v20  ;;  %778 = vst.msk [vmem:[#allocation2 + $0x50] sm:$0xff] %vm558_vm2, %v717_v43 }
 0x175   : > { %1233 = vrot.lane.b32.xlu1 %v4424_v19, %s4079_s27  ;;  %956 = vrot.lane.b32.xlu0 %v4516_v42, %s4077_s8 }
 0x177   : > { %v729_v14 = vpop.permute.xlu1 %728  ;;  %v721_v44 = vpop.permute.xlu0 %720 }
 0x178   : > { %784 = vst.msk [vmem:[#allocation2 + $0x80] sm:$0xff] %vm558_vm2, %v729_v14  ;;  %780 = vst.msk [vmem:[#allocation2 + $0x60] sm:$0xff] %vm558_vm2, %v721_v44 }
 0x179   : > { %815 = vrot.lane.b32.xlu1 %v4441_v22, %s4076_s9  ;;  %1265 = vrot.lane.b32.xlu0 %v4510_v40, %s4079_s27  ;;  %795 = vst.msk [vmem:[#allocation2 + $0x80] sm:$0xff] %vm792_vm3, %v4080_v16 }
 0x17b   : > { %v804_v41 = vpop.permute.xlu1 %803  ;;  %v731_v19 = vpop.permute.xlu0 %730 }
 0x17c   : > { %888 = vst.msk [vmem:[#allocation2 + $0x8] sm:$0xff] %vm792_vm3, %v804_v41 }
 0x17d   : > { %785 = vst.msk [vmem:[#allocation2 + $0x88] sm:$0xff] %vm558_vm2, %v731_v19  ;;  %1106 = vrot.lane.b32.xlu1 %v4441_v22, %s4078_s29  ;;  %843 = vrot.lane.b32.xlu0 %v4527_v45, %s4076_s9 }
 0x17f   : > { %v917_v48 = vpop.permute.xlu1 %916  ;;  %v832_v49 = vpop.permute.xlu0 %831 }
 0x180   : > { %1000 = vst.msk [vmem:[#allocation2] sm:$0xff] %vm798_vm4, %v917_v48 }
 0x181   : > { %902 = vst.msk [vmem:[#allocation2 + $0x88] sm:$0xff] %vm792_vm3, %v832_v49  ;;  %1108 = vrot.lane.b32.xlu1 %v4438_v21, %s4078_s29  ;;  %1138 = vrot.lane.b32.xlu0 %v4527_v45, %s4078_s29 }
 0x182   : > { %1029 = vst.msk [vmem:[#allocation2] sm:$0x1] %vm1028_vm5, %v4080_v16 }
 0x183   : > { %1062 = vst.msk [vmem:[#allocation2 + $0x7] sm:$0x1] %vm1061_vm6, %v4080_v16  ;;  %v919_v37 = vpop.permute.xlu1 %918  ;;  %v945_v56 = vpop.permute.xlu0 %944 }
 0x184   : > { %1001 = vst.msk [vmem:[#allocation2 + $0x8] sm:$0xff] %vm798_vm4, %v919_v37  ;;  %1014 = vst.msk [vmem:[#allocation2 + $0x80] sm:$0xff] %vm798_vm4, %v945_v56 }
 0x185   : > { %1030 = vst.msk [vmem:[#allocation2 + $0x8] sm:$0x1] %vm1028_vm5, %v4080_v16  ;;  %1045 = vst.msk [vmem:[#allocation2 + $0x80] sm:$0x1] %vm1028_vm5, %v4080_v16  ;;  %1235 = vrot.lane.b32.xlu1 %v4441_v22, %s4079_s27  ;;  %1140 = vrot.lane.b32.xlu0 %v4516_v42, %s4078_s29 }
 0x186   : > { %1063 = vst.msk [vmem:[#allocation2 + $0xf] sm:$0x1] %vm1061_vm6, %v4080_v16  ;;  %1078 = vst.msk [vmem:[#allocation2 + $0x87] sm:$0x1] %vm1061_vm6, %v4080_v16 }
 0x187   : > { %v733_v57 = vpop.permute.xlu1 %732  ;;  %v947_v58 = vpop.permute.xlu0 %946 }
 0x188   : > { %786 = vst.msk [vmem:[#allocation2 + $0x90] sm:$0xff] %vm558_vm2, %v733_v57 }
 0x189   : > { %1015 = vst.msk [vmem:[#allocation2 + $0x88] sm:$0xff] %vm798_vm4, %v947_v58  ;;  %817 = vrot.lane.b32.xlu1 %v4451_v24, %s4076_s9  ;;  %1267 = vrot.lane.b32.xlu0 %v4527_v45, %s4079_s27 }
 0x18a   : > { %1046 = vst.msk [vmem:[#allocation2 + $0x88] sm:$0x1] %vm1028_vm5, %v4080_v16 }
 0x18b   : > { %1079 = vst.msk [vmem:[#allocation2 + $0x8f] sm:$0x1] %vm1061_vm6, %v4080_v16  ;;  %v1127_v22 = vpop.permute.xlu1 %1126  ;;  %v1095_v60 = vpop.permute.xlu0 %1094 }
 0x18c   : > { %1207 = vst.msk [vmem:[#allocation2 + $0x81] sm:$0x7f] %vm1190_vm7, %v1127_v22  ;;  %1191 = vst.msk [vmem:[#allocation2 + $0x1] sm:$0x7f] %vm1190_vm7, %v1095_v60 }
 0x18d   : > { %930 = vrot.lane.b32.xlu1 %v4444_v23, %s4077_s8  ;;  %845 = vrot.lane.b32.xlu0 %v4530_v46, %s4076_s9 }
 0x18f   : > { %v806_v0 = vpop.permute.xlu1 %805  ;;  %v735_v1 = vpop.permute.xlu0 %734 }
 0x190   : > { %889 = vst.msk [vmem:[#allocation2 + $0x10] sm:$0xff] %vm792_vm3, %v806_v0 }
 0x191   : > { %787 = vst.msk [vmem:[#allocation2 + $0x98] sm:$0xff] %vm558_vm2, %v735_v1  ;;  %1237 = vrot.lane.b32.xlu1 %v4438_v21, %s4079_s27  ;;  %958 = vrot.lane.b32.xlu0 %v4533_v47, %s4077_s8 }
 0x193   : > { %v1097_v5 = vpop.permute.xlu1 %1096  ;;  %v834_v6 = vpop.permute.xlu0 %833 }
 0x194   : > { %1192 = vst.msk [vmem:[#allocation2 + $0x9] sm:$0x7f] %vm1190_vm7, %v1097_v5 }
 0x195   : > { %903 = vst.msk [vmem:[#allocation2 + $0x90] sm:$0xff] %vm792_vm3, %v834_v6  ;;  %932 = vrot.lane.b32.xlu1 %v4457_v26, %s4077_s8  ;;  %1269 = vrot.lane.b32.xlu0 %v4516_v42, %s4079_s27 }
 0x197   : > { %v1224_v7 = vpop.permute.xlu1 %1223  ;;  %v1129_v8 = vpop.permute.xlu0 %1128 }
 0x198   : > { %1320 = vst.msk [vmem:[#allocation2 - $0x1] sm:$0xfe] %vm1319_vm8, %v1224_v7 }
 0x199   : > { %1208 = vst.msk [vmem:[#allocation2 + $0x89] sm:$0x7f] %vm1190_vm7, %v1129_v8  ;;  %1110 = vrot.lane.b32.xlu1 %v4451_v24, %s4078_s29  ;;  %960 = vrot.lane.b32.xlu0 %v4550_v50, %s4077_s8 }
 0x19b   : > { %v808_v21 = vpop.permute.xlu1 %807  ;;  %v1256_v39 = vpop.permute.xlu0 %1255 }
 0x19c   : > { %890 = vst.msk [vmem:[#allocation2 + $0x18] sm:$0xff] %vm792_vm3, %v808_v21 }
 0x19d   : > { %1336 = vst.msk [vmem:[#allocation2 + $0x7f] sm:$0xfe] %vm1319_vm8, %v1256_v39  ;;  %819 = vrot.lane.b32.xlu1 %v4444_v23, %s4076_s9  ;;  %1142 = vrot.lane.b32.xlu0 %v4530_v46, %s4078_s29 }
 0x19f   : > { %v921_v9 = vpop.permute.xlu1 %920  ;;  %v836_v10 = vpop.permute.xlu0 %835  ;;  %v1352_v12 = vld [vmem:[#allocation2] sm:$0xff] }
 0x1a0   : > { %1002 = vst.msk [vmem:[#allocation2 + $0x10] sm:$0xff] %vm798_vm4, %v921_v9  ;;  %3205 = vmatprep.mubr.msk.f32.mxu0 %vm1391_vm9, %v1352_v12 }
 0x1a1   : > { %904 = vst.msk [vmem:[#allocation2 + $0x98] sm:$0xff] %vm792_vm3, %v836_v10  ;;  %1112 = vrot.lane.b32.xlu1 %v4444_v23, %s4078_s29  ;;  %847 = vrot.lane.b32.xlu0 %v4533_v47, %s4076_s9 }
 0x1a2   : > { %1031 = vst.msk [vmem:[#allocation2 + $0x10] sm:$0x1] %vm1028_vm5, %v4080_v16 }
 0x1a3   : > { %1064 = vst.msk [vmem:[#allocation2 + $0x17] sm:$0x1] %vm1061_vm6, %v4080_v16  ;;  %v1226_v15 = vpop.permute.xlu1 %1225  ;;  %v949_v13 = vpop.permute.xlu0 %948 }
 0x1a4   : > { %v1368_v38 = vld [vmem:[#allocation2 + $0x80] sm:$0xff]  ;;  %1321 = vst.msk [vmem:[#allocation2 + $0x7] sm:$0xfe] %vm1319_vm8, %v1226_v15 }
 0x1a5   : > { %1016 = vst.msk [vmem:[#allocation2 + $0x90] sm:$0xff] %vm798_vm4, %v949_v13  ;;  %3229 = vmatprep.mubr.msk.f32.mxu1 %vm1391_vm9, %v1368_v38  ;;  %1239 = vrot.lane.b32.xlu1 %v4451_v24, %s4079_s27 }
 0x1a6   : > { %1047 = vst.msk [vmem:[#allocation2 + $0x90] sm:$0x1] %vm1028_vm5, %v4080_v16  ;;  %1144 = vrot.lane.b32.xlu0 %v4533_v47, %s4078_s29 }
 0x1a7   : > { %1080 = vst.msk [vmem:[#allocation2 + $0x97] sm:$0x1] %vm1061_vm6, %v4080_v16  ;;  %v923_v17 = vpop.permute.xlu1 %922  ;;  %v1258_v18 = vpop.permute.xlu0 %1257 }
 0x1a8   : > { %1003 = vst.msk [vmem:[#allocation2 + $0x18] sm:$0xff] %vm798_vm4, %v923_v17 }
 0x1a9   : > { %1337 = vst.msk [vmem:[#allocation2 + $0x87] sm:$0xfe] %vm1319_vm8, %v1258_v18  ;;  %821 = vrot.lane.b32.xlu1 %v4457_v26, %s4076_s9 }
 0x1aa   : > { %1032 = vst.msk [vmem:[#allocation2 + $0x18] sm:$0x1] %vm1028_vm5, %v4080_v16  ;;  %1271 = vrot.lane.b32.xlu0 %v4530_v46, %s4079_s27 }
 0x1ab   : > { %1065 = vst.msk [vmem:[#allocation2 + $0x1f] sm:$0x1] %vm1061_vm6, %v4080_v16  ;;  %v737_v24 = vpop.permute.xlu1 %736  ;;  %v951_v27 = vpop.permute.xlu0 %950  ;;  %v1353_v28 = vld [vmem:[#allocation2 + $0x8] sm:$0xff] }
 0x1ac   : > { %788 = vst.msk [vmem:[#allocation2 + $0xa0] sm:$0xff] %vm558_vm2, %v737_v24  ;;  %3206 = vmatmul.mubr.msk.f32.vlgmr.msra.gmra.mxu0 %vm1391_vm9, %v1353_v28 }
 0x1ad   : > { %1017 = vst.msk [vmem:[#allocation2 + $0x98] sm:$0xff] %vm798_vm4, %v951_v27  ;;  %934 = vrot.lane.b32.xlu1 %v4454_v25, %s4077_s8 }
 0x1ae   : > { %1048 = vst.msk [vmem:[#allocation2 + $0x98] sm:$0x1] %vm1028_vm5, %v4080_v16  ;;  %849 = vrot.lane.b32.xlu0 %v4550_v50, %s4076_s9 }
 0x1af   : > { %1081 = vst.msk [vmem:[#allocation2 + $0x9f] sm:$0x1] %vm1061_vm6, %v4080_v16  ;;  %v1131_v46 = vpop.permute.xlu1 %1130  ;;  %v1099_v32 = vpop.permute.xlu0 %1098 }
 0x1b0   : > { %v1369_v33 = vld [vmem:[#allocation2 + $0x88] sm:$0xff]  ;;  %1209 = vst.msk [vmem:[#allocation2 + $0x91] sm:$0x7f] %vm1190_vm7, %v1131_v46  ;;  %1193 = vst.msk [vmem:[#allocation2 + $0x11] sm:$0x7f] %vm1190_vm7, %v1099_v32  ;;  %v2208_v32 = vsub.s32 3, %v4910_v11 }
 0x1b1   : > { %3230 = vmatmul.mubr.msk.f32.vlgmr.msra.gmra.mxu1 %vm1391_vm9, %v1369_v33  ;;  %1241 = vrot.lane.b32.xlu1 %v4444_v23, %s4079_s27 }
 0x1b2   : > { %962 = vrot.lane.b32.xlu0 %v4553_v51, %s4077_s8 }
 0x1b3   : > { %v810_v36 = vpop.permute.xlu1 %809  ;;  %v739_v20 = vpop.permute.xlu0 %738 }
 0x1b4   : > { %891 = vst.msk [vmem:[#allocation2 + $0x20] sm:$0xff] %vm792_vm3, %v810_v36 }
 0x1b5   : > { %789 = vst.msk [vmem:[#allocation2 + $0xa8] sm:$0xff] %vm558_vm2, %v739_v20  ;;  %936 = vrot.lane.b32.xlu1 %v4471_v30, %s4077_s8 }
 0x1b6   : > { %1273 = vrot.lane.b32.xlu0 %v4533_v47, %s4079_s27 }
 0x1b7   : > { %v1101_v43 = vpop.permute.xlu1 %1100  ;;  %v838_v14 = vpop.permute.xlu0 %837 }
 0x1b8   : > { %1194 = vst.msk [vmem:[#allocation2 + $0x19] sm:$0x7f] %vm1190_vm7, %v1101_v43 }
 0x1b9   : > { %905 = vst.msk [vmem:[#allocation2 + $0xa0] sm:$0xff] %vm792_vm3, %v838_v14  ;;  %1114 = vrot.lane.b32.xlu1 %v4457_v26, %s4078_s29 }
 0x1ba   : > { %964 = vrot.lane.b32.xlu0 %v4563_v53, %s4077_s8 }
 0x1bb   : > { %v1228_v23 = vpop.permute.xlu1 %1227  ;;  %v1133_v44 = vpop.permute.xlu0 %1132 }
 0x1bc   : > { %1322 = vst.msk [vmem:[#allocation2 + $0xf] sm:$0xfe] %vm1319_vm8, %v1228_v23 }
 0x1bd   : > { %1210 = vst.msk [vmem:[#allocation2 + $0x99] sm:$0x7f] %vm1190_vm7, %v1133_v44  ;;  %722 = vrot.lane.b32.xlu1 %v4510_v40, %s4075_s2 }
 0x1be   : > { %1146 = vrot.lane.b32.xlu0 %v4550_v50, %s4078_s29 }
 0x1bf   : > { %v812_v47 = vpop.permute.xlu1 %811  ;;  %v1260_v41 = vpop.permute.xlu0 %1259 }
 0x1c0   : > { %892 = vst.msk [vmem:[#allocation2 + $0x28] sm:$0xff] %vm792_vm3, %v812_v47 }
 0x1c1   : > { %1338 = vst.msk [vmem:[#allocation2 + $0x8f] sm:$0xfe] %vm1319_vm8, %v1260_v41  ;;  %851 = vrot.lane.b32.xlu1 %v4553_v51, %s4076_s9 }
 0x1c2   : > { %823 = vrot.lane.b32.xlu0 %v4454_v25, %s4076_s9 }
 0x1c3   : > { %v925_v19 = vpop.permute.xlu1 %924  ;;  %v840_v48 = vpop.permute.xlu0 %839  ;;  %v1354_v49 = vld [vmem:[#allocation2 + $0x10] sm:$0xff] }
 0x1c4   : > { %1004 = vst.msk [vmem:[#allocation2 + $0x20] sm:$0xff] %vm798_vm4, %v925_v19  ;;  %3208 = vmatprep.mubr.msk.f32.mxu0 %vm1391_vm9, %v1354_v49 }
 0x1c5   : > { %906 = vst.msk [vmem:[#allocation2 + $0xa8] sm:$0xff] %vm792_vm3, %v840_v48  ;;  %1148 = vrot.lane.b32.xlu1 %v4553_v51, %s4078_s29 }
 0x1c6   : > { %1033 = vst.msk [vmem:[#allocation2 + $0x20] sm:$0x1] %vm1028_vm5, %v4080_v16  ;;  %1116 = vrot.lane.b32.xlu0 %v4454_v25, %s4078_s29 }
 0x1c7   : > { %1066 = vst.msk [vmem:[#allocation2 + $0x27] sm:$0x1] %vm1061_vm6, %v4080_v16  ;;  %v1230_v40 = vpop.permute.xlu1 %1229  ;;  %v953_v37 = vpop.permute.xlu0 %952 }
 0x1c8   : > { %v1370_v56 = vld [vmem:[#allocation2 + $0x90] sm:$0xff]  ;;  %1323 = vst.msk [vmem:[#allocation2 + $0x17] sm:$0xfe] %vm1319_vm8, %v1230_v40 }
 0x1c9   : > { %1018 = vst.msk [vmem:[#allocation2 + $0xa0] sm:$0xff] %vm798_vm4, %v953_v37  ;;  %3232 = vmatprep.mubr.msk.f32.mxu1 %vm1391_vm9, %v1370_v56  ;;  %1275 = vrot.lane.b32.xlu1 %v4550_v50, %s4079_s27 }
 0x1ca   : > { %1049 = vst.msk [vmem:[#allocation2 + $0xa0] sm:$0x1] %vm1028_vm5, %v4080_v16  ;;  %1243 = vrot.lane.b32.xlu0 %v4457_v26, %s4079_s27 }
 0x1cb   : > { %1082 = vst.msk [vmem:[#allocation2 + $0xa7] sm:$0x1] %vm1061_vm6, %v4080_v16  ;;  %v927_v57 = vpop.permute.xlu1 %926  ;;  %v1262_v58 = vpop.permute.xlu0 %1261 }
 0x1cc   : > { %1005 = vst.msk [vmem:[#allocation2 + $0x28] sm:$0xff] %vm798_vm4, %v927_v57 }
 0x1cd   : > { %1339 = vst.msk [vmem:[#allocation2 + $0x97] sm:$0xfe] %vm1319_vm8, %v1262_v58  ;;  %853 = vrot.lane.b32.xlu1 %v4563_v53, %s4076_s9 }
 0x1ce   : > { %1034 = vst.msk [vmem:[#allocation2 + $0x28] sm:$0x1] %vm1028_vm5, %v4080_v16  ;;  %825 = vrot.lane.b32.xlu0 %v4471_v30, %s4076_s9 }
 0x1cf   : > { %1067 = vst.msk [vmem:[#allocation2 + $0x2f] sm:$0x1] %vm1061_vm6, %v4080_v16  ;;  %v741_v50 = vpop.permute.xlu1 %740  ;;  %v955_v26 = vpop.permute.xlu0 %954  ;;  %v1355_v59 = vld [vmem:[#allocation2 + $0x18] sm:$0xff] }
 0x1d0   : > { %790 = vst.msk [vmem:[#allocation2 + $0xb0] sm:$0xff] %vm558_vm2, %v741_v50  ;;  %3209 = vmatmul.mubr.msk.f32.gmra.mxu0 %vm1391_vm9, %v1355_v59 }
 0x1d1   : > { %1019 = vst.msk [vmem:[#allocation2 + $0xa8] sm:$0xff] %vm798_vm4, %v955_v26  ;;  %966 = vrot.lane.b32.xlu1 %v4560_v52, %s4077_s8 }
 0x1d2   : > { %1050 = vst.msk [vmem:[#allocation2 + $0xa8] sm:$0x1] %vm1028_vm5, %v4080_v16  ;;  %938 = vrot.lane.b32.xlu0 %v4468_v29, %s4077_s8 }
 0x1d3   : > { %1083 = vst.msk [vmem:[#allocation2 + $0xaf] sm:$0x1] %vm1061_vm6, %v4080_v16  ;;  %v1135_v22 = vpop.permute.xlu1 %1134  ;;  %v1103_v60 = vpop.permute.xlu0 %1102 }
 0x1d4   : > { %v1371_v61 = vld [vmem:[#allocation2 + $0x98] sm:$0xff]  ;;  %1211 = vst.msk [vmem:[#allocation2 + $0xa1] sm:$0x7f] %vm1190_vm7, %v1135_v22  ;;  %1195 = vst.msk [vmem:[#allocation2 + $0x21] sm:$0x7f] %vm1190_vm7, %v1103_v60 }
 0x1d5   : > { %3233 = vmatmul.mubr.msk.f32.gmra.mxu1 %vm1391_vm9, %v1371_v61  ;;  %1277 = vrot.lane.b32.xlu1 %v4553_v51, %s4079_s27 }
 0x1d6   : > { %1245 = vrot.lane.b32.xlu0 %v4454_v25, %s4079_s27 }
 0x1d7   : > { %v814_v35 = vpop.permute.xlu1 %813  ;;  %v743_v62 = vpop.permute.xlu0 %742 }
 0x1d8   : > { %893 = vst.msk [vmem:[#allocation2 + $0x30] sm:$0xff] %vm792_vm3, %v814_v35 }
 0x1d9   : > { %791 = vst.msk [vmem:[#allocation2 + $0xb8] sm:$0xff] %vm558_vm2, %v743_v62  ;;  %968 = vrot.lane.b32.xlu1 %v4566_v54, %s4077_s8 }
 0x1da   : > { %801 = vst.msk [vmem:[#allocation2 + $0xb8] sm:$0xff] %vm798_vm4, %v4080_v16  ;;  %940 = vrot.lane.b32.xlu0 %v4485_v34, %s4077_s8 }
 0x1db   : > { %v1105_v0 = vpop.permute.xlu1 %1104  ;;  %v842_v51 = vpop.permute.xlu0 %841 }
 0x1dc   : > { %1196 = vst.msk [vmem:[#allocation2 + $0x29] sm:$0x7f] %vm1190_vm7, %v1105_v0 }
 0x1dd   : > { %907 = vst.msk [vmem:[#allocation2 + $0xb0] sm:$0xff] %vm792_vm3, %v842_v51  ;;  %1118 = vrot.lane.b32.xlu1 %v4471_v30, %s4078_s29 }
 0x1de   : > { %724 = vrot.lane.b32.xlu0 %v4527_v45, %s4075_s2 }
 0x1df   : > { %v1232_v25 = vpop.permute.xlu1 %1231  ;;  %v1137_v1 = vpop.permute.xlu0 %1136 }
 0x1e0   : > { %1324 = vst.msk [vmem:[#allocation2 + $0x1f] sm:$0xfe] %vm1319_vm8, %v1232_v25 }
 0x1e1   : > { %1212 = vst.msk [vmem:[#allocation2 + $0xa9] sm:$0x7f] %vm1190_vm7, %v1137_v1  ;;  %726 = vrot.lane.b32.xlu1 %v4516_v42, %s4075_s2 }
 0x1e2   : > { %1150 = vrot.lane.b32.xlu0 %v4563_v53, %s4078_s29 }
 0x1e3   : > { %v929_v5 = vpop.permute.xlu1 %928  ;;  %v1264_v6 = vpop.permute.xlu0 %1263 }
 0x1e4   : > { %1006 = vst.msk [vmem:[#allocation2 + $0x30] sm:$0xff] %vm798_vm4, %v929_v5 }
 0x1e5   : > { %1340 = vst.msk [vmem:[#allocation2 + $0x9f] sm:$0xfe] %vm1319_vm8, %v1264_v6  ;;  %855 = vrot.lane.b32.xlu1 %v4560_v52, %s4076_s9 }
 0x1e6   : > { %1035 = vst.msk [vmem:[#allocation2 + $0x30] sm:$0x1] %vm1028_vm5, %v4080_v16  ;;  %827 = vrot.lane.b32.xlu0 %v4468_v29, %s4076_s9 }
 0x1e7   : > { %1068 = vst.msk [vmem:[#allocation2 + $0x37] sm:$0x1] %vm1061_vm6, %v4080_v16  ;;  %v1234_v42 = vpop.permute.xlu1 %1233  ;;  %v957_v45 = vpop.permute.xlu0 %956  ;;  %v1356_v7 = vld [vmem:[#allocation2 + $0x20] sm:$0xff] }
 0x1e8   : > { %1325 = vst.msk [vmem:[#allocation2 + $0x27] sm:$0xfe] %vm1319_vm8, %v1234_v42  ;;  %3211 = vmatprep.mubr.msk.f32.mxu0 %vm1391_vm9, %v1356_v7 }
 0x1e9   : > { %1020 = vst.msk [vmem:[#allocation2 + $0xb0] sm:$0xff] %vm798_vm4, %v957_v45  ;;  %1152 = vrot.lane.b32.xlu1 %v4560_v52, %s4078_s29 }
 0x1ea   : > { %1051 = vst.msk [vmem:[#allocation2 + $0xb0] sm:$0x1] %vm1028_vm5, %v4080_v16  ;;  %1120 = vrot.lane.b32.xlu0 %v4468_v29, %s4078_s29 }
 0x1eb   : > { %1084 = vst.msk [vmem:[#allocation2 + $0xb7] sm:$0x1] %vm1061_vm6, %v4080_v16  ;;  %v816_v8 = vpop.permute.xlu1 %815  ;;  %v1266_v21 = vpop.permute.xlu0 %1265 }
 0x1ec   : > { %v1372_v39 = vld [vmem:[#allocation2 + $0xa0] sm:$0xff]  ;;  %894 = vst.msk [vmem:[#allocation2 + $0x38] sm:$0xff] %vm792_vm3, %v816_v8 }
 0x1ed   : > { %1341 = vst.msk [vmem:[#allocation2 + $0xa7] sm:$0xfe] %vm1319_vm8, %v1266_v21  ;;  %3235 = vmatprep.mubr.msk.f32.mxu1 %vm1391_vm9, %v1372_v39  ;;  %1279 = vrot.lane.b32.xlu1 %v4563_v53, %s4079_s27 }
 0x1ee   : > { %1036 = vst.msk [vmem:[#allocation2 + $0x38] sm:$0x1] %vm1028_vm5, %v4080_v16  ;;  %1247 = vrot.lane.b32.xlu0 %v4471_v30, %s4079_s27 }
 0x1ef   : > { %1069 = vst.msk [vmem:[#allocation2 + $0x3f] sm:$0x1] %vm1061_vm6, %v4080_v16  ;;  %v1107_v9 = vpop.permute.xlu1 %1106  ;;  %v844_v10 = vpop.permute.xlu0 %843  ;;  %v1357_v12 = vld [vmem:[#allocation2 + $0x28] sm:$0xff] }
 0x1f0   : > { %1197 = vst.msk [vmem:[#allocation2 + $0x31] sm:$0x7f] %vm1190_vm7, %v1107_v9  ;;  %3212 = vmatmul.mubr.msk.f32.gmra.mxu0 %vm1391_vm9, %v1357_v12 }
 0x1f1   : > { %908 = vst.msk [vmem:[#allocation2 + $0xb8] sm:$0xff] %vm792_vm3, %v844_v10  ;;  %970 = vrot.lane.b32.xlu1 %v4573_v55, %s4077_s8 }
 0x1f2   : > { %1052 = vst.msk [vmem:[#allocation2 + $0xb8] sm:$0x1] %vm1028_vm5, %v4080_v16  ;;  %942 = vrot.lane.b32.xlu0 %v4474_v31, %s4077_s8  ;;  %s5849_s8 = scalar_lea.vmem [#allocation9], %s3005_s10  ;;  %s6134_s10 = sld [smem:[#allocation18_spill]] }
 0x1f3   : > { %1085 = vst.msk [vmem:[#allocation2 + $0xbf] sm:$0x1] %vm1061_vm6, %v4080_v16  ;;  %v1109_v30 = vpop.permute.xlu1 %1108  ;;  %v1139_v53 = vpop.permute.xlu0 %1138  ;;  %s2839_s22 = sshll.u32 %s5849_s8, 4  ;;  %s5958_s22 = int_to_ptr.vmem [resolvable:$true] %s2839_s22 }
 0x1f4   : > { %v1373_v15 = vld [vmem:[#allocation2 + $0xa8] sm:$0xff]  ;;  %1198 = vst.msk [vmem:[#allocation2 + $0x39] sm:$0x7f] %vm1190_vm7, %v1109_v30  ;;  %1213 = vst.msk [vmem:[#allocation2 + $0xb1] sm:$0x7f] %vm1190_vm7, %v1139_v53  ;;  %s3915_s23 = scalar_lea.vmem %s5958_s22, 4096  ;;  %p3922_p1 = scmp.lt.s32.totalorder %s5958_s22, %s3920_s28 }
 0x1f5   : > { %3236 = vmatmul.mubr.msk.f32.gmra.mxu1 %vm1391_vm9, %v1373_v15  ;;  %1281 = vrot.lane.b32.xlu1 %v4560_v52, %s4079_s27  ;;  %p3916_p12 = scmp.ne.s32.totalorder %s5958_s22, %s3915_s23  ;;  %p3923_p8 = scmp.lt.s32.totalorder %s3921_s21, %s3915_s23 }
 0x1f6   : > { %1249 = vrot.lane.b32.xlu0 %v4468_v29, %s4079_s27 }
 0x1f7   : > { %v1236_v13 = vpop.permute.xlu1 %1235  ;;  %v1141_v38 = vpop.permute.xlu0 %1140  ;;  %p3917_p9 = pnand %p3916_p12, %p6136_p7  ;;  %p3924_p5 = por %p3923_p8, %p3922_p1 }
 0x1f8   : > { %1326 = vst.msk [vmem:[#allocation2 + $0x2f] sm:$0xfe] %vm1319_vm8, %v1236_v13  ;;  %s3140_s12 = sshll.u32 %s6134_s10, 6 }
 0x1f9   : > { %1214 = vst.msk [vmem:[#allocation2 + $0xb9] sm:$0x7f] %vm1190_vm7, %v1141_v38  ;;  %857 = vrot.lane.b32.xlu1 %v4566_v54, %s4076_s9  ;;  %p3918_p3 = pneg %p3917_p9 }
 0x1fa   : > { %829 = vrot.lane.b32.xlu0 %v4485_v34, %s4076_s9  ;;  %s4082_s9 = smov 112  }
 0x1fb   : > { %v818_v17 = vpop.permute.xlu1 %817  ;;  %v1268_v18 = vpop.permute.xlu0 %1267  ;;  %p3925_p6 = pnand %p3924_p5, %p3918_p3 }
 0x1fc   : > { %895 = vst.msk [vmem:[#allocation2 + $0x48] sm:$0xff] %vm792_vm3, %v818_v17 }
 0x1fd   : > { %1342 = vst.msk [vmem:[#allocation2 + $0xaf] sm:$0xfe] %vm1319_vm8, %v1268_v18  ;;  %1154 = vrot.lane.b32.xlu1 %v4566_v54, %s4078_s29 }
 0x1fe   : > { %1122 = vrot.lane.b32.xlu0 %v4485_v34, %s4078_s29 }
 0x1ff   : > { %v931_v29 = vpop.permute.xlu1 %930  ;;  %v846_v52 = vpop.permute.xlu0 %845  ;;  %v1358_v24 = vld [vmem:[#allocation2 + $0x30] sm:$0xff] }
 0x200   : > { %1007 = vst.msk [vmem:[#allocation2 + $0x40] sm:$0xff] %vm798_vm4, %v931_v29  ;;  %3214 = vmatprep.mubr.msk.f32.mxu0 %vm1391_vm9, %v1358_v24 }
 0x201   : > { %909 = vst.msk [vmem:[#allocation2 + $0xc8] sm:$0xff] %vm792_vm3, %v846_v52  ;;  %1156 = vrot.lane.b32.xlu1 %v4573_v55, %s4078_s29 }
 0x202   : > { %1037 = vst.msk [vmem:[#allocation2 + $0x40] sm:$0x1] %vm1028_vm5, %v4080_v16  ;;  %1124 = vrot.lane.b32.xlu0 %v4474_v31, %s4078_s29  ;;  %s3151_s29 = sshll.u32 %s6120_s7, 5 }
 0x203   : > { %1070 = vst.msk [vmem:[#allocation2 + $0x47] sm:$0x1] %vm1061_vm6, %v4080_v16  ;;  %v1238_v27 = vpop.permute.xlu1 %1237  ;;  %v959_v28 = vpop.permute.xlu0 %958  ;;  %s2836_s7 = sadd.s32 %s3151_s29, %s3140_s12 }
 0x204   : > { %v1374_v46 = vld [vmem:[#allocation2 + $0xb0] sm:$0xff]  ;;  %1327 = vst.msk [vmem:[#allocation2 + $0x37] sm:$0xfe] %vm1319_vm8, %v1238_v27  ;;  %s3141_s4 = sshll.u32 %s2836_s7, 7 }
 0x205   : > { %1021 = vst.msk [vmem:[#allocation2 + $0xc0] sm:$0xff] %vm798_vm4, %v959_v28  ;;  %3238 = vmatprep.mubr.msk.f32.mxu1 %vm1391_vm9, %v1374_v46  ;;  %1283 = vrot.lane.b32.xlu1 %v4566_v54, %s4079_s27  ;;  %s5965_s3 = scalar_lea.hbm %s6135_s1, %s3141_s4 }
 0x206   : > { %1053 = vst.msk [vmem:[#allocation2 + $0xc0] sm:$0x1] %vm1028_vm5, %v4080_v16  ;;  %1251 = vrot.lane.b32.xlu0 %v4485_v34, %s4079_s27  ;;  %v2209_v34 = vrot.slane %v4924_v63, %v2208_v32 }
 0x207   : > { %1086 = vst.msk [vmem:[#allocation2 + $0xc7] sm:$0x1] %vm1061_vm6, %v4080_v16  ;;  %v933_v33 = vpop.permute.xlu1 %932  ;;  %v1270_v36 = vpop.permute.xlu0 %1269 }
 0x208   : > { %1008 = vst.msk [vmem:[#allocation2 + $0x48] sm:$0xff] %vm798_vm4, %v933_v33 }
 0x209   : > { %1343 = vst.msk [vmem:[#allocation2 + $0xb7] sm:$0xfe] %vm1319_vm8, %v1270_v36  ;;  %1285 = vrot.lane.b32.xlu1 %v4573_v55, %s4079_s27 }
 0x20a   : > { %1038 = vst.msk [vmem:[#allocation2 + $0x48] sm:$0x1] %vm1028_vm5, %v4080_v16  ;;  %1253 = vrot.lane.b32.xlu0 %v4474_v31, %s4079_s27 }
 0x20b   : > { %1071 = vst.msk [vmem:[#allocation2 + $0x4f] sm:$0x1] %vm1061_vm6, %v4080_v16  ;;  %v1111_v54 = vpop.permute.xlu1 %1110  ;;  %v961_v11 = vpop.permute.xlu0 %960  ;;  %v1359_v20 = vld [vmem:[#allocation2 + $0x38] sm:$0xff] }
 0x20c   : > { %1199 = vst.msk [vmem:[#allocation2 + $0x41] sm:$0x7f] %vm1190_vm7, %v1111_v54  ;;  %3215 = vmatmul.mubr.msk.f32.gmra.mxu0 %vm1391_vm9, %v1359_v20 }
 0x20d   : > { %1022 = vst.msk [vmem:[#allocation2 + $0xc8] sm:$0xff] %vm798_vm4, %v961_v11 }
 0x20e   : > { %1054 = vst.msk [vmem:[#allocation2 + $0xc8] sm:$0x1] %vm1028_vm5, %v4080_v16  ;;  %2211 = vrot.lane.b32.xlu0 %v2209_v34, %s4075_s2  ;;  %s4081_s2 = smov 120  }
 0x20f   : > { %1087 = vst.msk [vmem:[#allocation2 + $0xcf] sm:$0x1] %vm1061_vm6, %v4080_v16  ;;  %v820_v31 = vpop.permute.xlu1 %819  ;;  %v1143_v55 = vpop.permute.xlu0 %1142 }
 0x210   : > { %v1375_v63 = vld [vmem:[#allocation2 + $0xb8] sm:$0xff]  ;;  %896 = vst.msk [vmem:[#allocation2 + $0x50] sm:$0xff] %vm792_vm3, %v820_v31 }
 0x211   : > { %1215 = vst.msk [vmem:[#allocation2 + $0xc1] sm:$0x7f] %vm1190_vm7, %v1143_v55  ;;  %3239 = vmatmul.mubr.msk.f32.gmra.mxu1 %vm1391_vm9, %v1375_v63 }
 0x213   : > { %v1113_v43 = vpop.permute.xlu1 %1112  ;;  %v848_v14 = vpop.permute.xlu0 %847 }
 0x214   : > { %1200 = vst.msk [vmem:[#allocation2 + $0x49] sm:$0x7f] %vm1190_vm7, %v1113_v43 }
 0x215   : > { %910 = vst.msk [vmem:[#allocation2 + $0xd0] sm:$0xff] %vm792_vm3, %v848_v14 }
 0x217   : > { %v1240_v23 = vpop.permute.xlu1 %1239 }
 0x218   : > { %v1145_v44 = vpop.permute.xlu0 %1144  ;;  %1328 = vst.msk [vmem:[#allocation2 + $0x3f] sm:$0xfe] %vm1319_vm8, %v1240_v23 }
 0x219   : > { %1216 = vst.msk [vmem:[#allocation2 + $0xc9] sm:$0x7f] %vm1190_vm7, %v1145_v44 }
 0x21b   : > { %v822_v47 = vpop.permute.xlu1 %821 }
 0x21c   : > { %v1272_v41 = vpop.permute.xlu0 %1271  ;;  %897 = vst.msk [vmem:[#allocation2 + $0x58] sm:$0xff] %vm792_vm3, %v822_v47 }
 0x21d   : > { %1344 = vst.msk [vmem:[#allocation2 + $0xbf] sm:$0xfe] %vm1319_vm8, %v1272_v41 }
 0x21f   : > { %v935_v19 = vpop.permute.xlu1 %934  ;;  %v1360_v49 = vld [vmem:[#allocation2 + $0x40] sm:$0xff] }
 0x220   : > { %v850_v48 = vpop.permute.xlu0 %849  ;;  %1009 = vst.msk [vmem:[#allocation2 + $0x50] sm:$0xff] %vm798_vm4, %v935_v19  ;;  %3217 = vmatprep.mubr.msk.f32.mxu0 %vm1391_vm9, %v1360_v49 }
 0x221   : > { %911 = vst.msk [vmem:[#allocation2 + $0xd8] sm:$0xff] %vm792_vm3, %v850_v48 }
 0x222   : > { %1039 = vst.msk [vmem:[#allocation2 + $0x50] sm:$0x1] %vm1028_vm5, %v4080_v16 }
 0x223   : > { %1072 = vst.msk [vmem:[#allocation2 + $0x57] sm:$0x1] %vm1061_vm6, %v4080_v16  ;;  %v1242_v40 = vpop.permute.xlu1 %1241 }
 0x224   : > { %v963_v37 = vpop.permute.xlu0 %962  ;;  %v1376_v56 = vld [vmem:[#allocation2 + $0xc0] sm:$0xff]  ;;  %1329 = vst.msk [vmem:[#allocation2 + $0x47] sm:$0xfe] %vm1319_vm8, %v1242_v40 }
 0x225   : > { %1023 = vst.msk [vmem:[#allocation2 + $0xd0] sm:$0xff] %vm798_vm4, %v963_v37  ;;  %3241 = vmatprep.mubr.msk.f32.mxu1 %vm1391_vm9, %v1376_v56 }
 0x226   : > { %1055 = vst.msk [vmem:[#allocation2 + $0xd0] sm:$0x1] %vm1028_vm5, %v4080_v16 }
 0x227   : > { %1088 = vst.msk [vmem:[#allocation2 + $0xd7] sm:$0x1] %vm1061_vm6, %v4080_v16  ;;  %v937_v57 = vpop.permute.xlu1 %936 }
 0x228   : > { %v1274_v58 = vpop.permute.xlu0 %1273  ;;  %1010 = vst.msk [vmem:[#allocation2 + $0x58] sm:$0xff] %vm798_vm4, %v937_v57 }
 0x229   : > { %1345 = vst.msk [vmem:[#allocation2 + $0xc7] sm:$0xfe] %vm1319_vm8, %v1274_v58 }
 0x22a   : > { %1040 = vst.msk [vmem:[#allocation2 + $0x58] sm:$0x1] %vm1028_vm5, %v4080_v16 }
 0x22b   : > { %1073 = vst.msk [vmem:[#allocation2 + $0x5f] sm:$0x1] %vm1061_vm6, %v4080_v16  ;;  %v1115_v50 = vpop.permute.xlu1 %1114  ;;  %v1361_v59 = vld [vmem:[#allocation2 + $0x48] sm:$0xff] }
 0x22c   : > { %v965_v26 = vpop.permute.xlu0 %964  ;;  %1201 = vst.msk [vmem:[#allocation2 + $0x51] sm:$0x7f] %vm1190_vm7, %v1115_v50  ;;  %3218 = vmatmul.mubr.msk.f32.gmra.mxu0 %vm1391_vm9, %v1361_v59 }
 0x22d   : > { %1024 = vst.msk [vmem:[#allocation2 + $0xd8] sm:$0xff] %vm798_vm4, %v965_v26 }
 0x22e   : > { %1056 = vst.msk [vmem:[#allocation2 + $0xd8] sm:$0x1] %vm1028_vm5, %v4080_v16 }
 0x22f   : > { %1089 = vst.msk [vmem:[#allocation2 + $0xdf] sm:$0x1] %vm1061_vm6, %v4080_v16  ;;  %v723_v22 = vpop.permute.xlu1 %722 }
 0x230   : > { %v1147_v60 = vpop.permute.xlu0 %1146  ;;  %v1377_v61 = vld [vmem:[#allocation2 + $0xc8] sm:$0xff]  ;;  %781 = vst.msk [vmem:[#allocation2 + $0x68] sm:$0xff] %vm558_vm2, %v723_v22 }
 0x231   : > { %1217 = vst.msk [vmem:[#allocation2 + $0xd1] sm:$0x7f] %vm1190_vm7, %v1147_v60  ;;  %3242 = vmatmul.mubr.msk.f32.gmra.mxu1 %vm1391_vm9, %v1377_v61 }
 0x233   : > { %v852_v35 = vpop.permute.xlu1 %851 }
 0x234   : > { %v824_v62 = vpop.permute.xlu0 %823  ;;  %912 = vst.msk [vmem:[#allocation2 + $0xe0] sm:$0xff] %vm792_vm3, %v852_v35 }
 0x235   : > { %898 = vst.msk [vmem:[#allocation2 + $0x60] sm:$0xff] %vm792_vm3, %v824_v62 }
 0x237   : > { %v1149_v0 = vpop.permute.xlu1 %1148 }
 0x238   : > { %v1117_v51 = vpop.permute.xlu0 %1116  ;;  %1218 = vst.msk [vmem:[#allocation2 + $0xd9] sm:$0x7f] %vm1190_vm7, %v1149_v0 }
 0x239   : > { %1202 = vst.msk [vmem:[#allocation2 + $0x59] sm:$0x7f] %vm1190_vm7, %v1117_v51 }
 0x23b   : > { %v1276_v25 = vpop.permute.xlu1 %1275 }
 0x23c   : > { %v1244_v1 = vpop.permute.xlu0 %1243  ;;  %1346 = vst.msk [vmem:[#allocation2 + $0xcf] sm:$0xfe] %vm1319_vm8, %v1276_v25 }
 0x23d   : > { %1330 = vst.msk [vmem:[#allocation2 + $0x4f] sm:$0xfe] %vm1319_vm8, %v1244_v1 }
 0x23f   : > { %v854_v5 = vpop.permute.xlu1 %853 }
 0x240   : > { %v826_v6 = vpop.permute.xlu0 %825  ;;  %913 = vst.msk [vmem:[#allocation2 + $0xe8] sm:$0xff] %vm792_vm3, %v854_v5 }
 0x241   : > { %899 = vst.msk [vmem:[#allocation2 + $0x68] sm:$0xff] %vm792_vm3, %v826_v6 }
 0x243   : > { %v967_v42 = vpop.permute.xlu1 %966  ;;  %v1378_v8 = vld [vmem:[#allocation2 + $0xd0] sm:$0xff] }
 0x244   : > { %v939_v45 = vpop.permute.xlu0 %938  ;;  %v1362_v7 = vld [vmem:[#allocation2 + $0x50] sm:$0xff]  ;;  %1025 = vst.msk [vmem:[#allocation2 + $0xe0] sm:$0xff] %vm798_vm4, %v967_v42  ;;  %3244 = vmatprep.mubr.msk.f32.mxu1 %vm1391_vm9, %v1378_v8 }
 0x245   : > { %1011 = vst.msk [vmem:[#allocation2 + $0x60] sm:$0xff] %vm798_vm4, %v939_v45  ;;  %3220 = vmatprep.mubr.msk.f32.mxu0 %vm1391_vm9, %v1362_v7 }
 0x246   : > { %1057 = vst.msk [vmem:[#allocation2 + $0xe0] sm:$0x1] %vm1028_vm5, %v4080_v16  ;;  %1041 = vst.msk [vmem:[#allocation2 + $0x60] sm:$0x1] %vm1028_vm5, %v4080_v16 }
 0x247   : > { %1090 = vst.msk [vmem:[#allocation2 + $0xe7] sm:$0x1] %vm1061_vm6, %v4080_v16  ;;  %1074 = vst.msk [vmem:[#allocation2 + $0x67] sm:$0x1] %vm1061_vm6, %v4080_v16  ;;  %v1278_v21 = vpop.permute.xlu1 %1277 }
 0x248   : > { %v1246_v39 = vpop.permute.xlu0 %1245  ;;  %1347 = vst.msk [vmem:[#allocation2 + $0xd7] sm:$0xfe] %vm1319_vm8, %v1278_v21 }
 0x249   : > { %1331 = vst.msk [vmem:[#allocation2 + $0x57] sm:$0xfe] %vm1319_vm8, %v1246_v39 }
 0x24b   : > { %v969_v9 = vpop.permute.xlu1 %968 }
 0x24c   : > { %v941_v10 = vpop.permute.xlu0 %940  ;;  %1026 = vst.msk [vmem:[#allocation2 + $0xe8] sm:$0xff] %vm798_vm4, %v969_v9 }
 0x24d   : > { %1012 = vst.msk [vmem:[#allocation2 + $0x68] sm:$0xff] %vm798_vm4, %v941_v10 }
 0x24e   : > { %1058 = vst.msk [vmem:[#allocation2 + $0xe8] sm:$0x1] %vm1028_vm5, %v4080_v16  ;;  %1042 = vst.msk [vmem:[#allocation2 + $0x68] sm:$0x1] %vm1028_vm5, %v4080_v16 }
 0x24f   : > { %1091 = vst.msk [vmem:[#allocation2 + $0xef] sm:$0x1] %vm1061_vm6, %v4080_v16  ;;  %1075 = vst.msk [vmem:[#allocation2 + $0x6f] sm:$0x1] %vm1061_vm6, %v4080_v16  ;;  %v1119_v12 = vpop.permute.xlu1 %1118  ;;  %v1379_v15 = vld [vmem:[#allocation2 + $0xd8] sm:$0xff] }
 0x250   : > { %v725_v30 = vpop.permute.xlu0 %724  ;;  %v1363_v53 = vld [vmem:[#allocation2 + $0x58] sm:$0xff]  ;;  %1203 = vst.msk [vmem:[#allocation2 + $0x61] sm:$0x7f] %vm1190_vm7, %v1119_v12  ;;  %3245 = vmatmul.mubr.msk.f32.gmra.mxu1 %vm1391_vm9, %v1379_v15 }
 0x251   : > { %782 = vst.msk [vmem:[#allocation2 + $0x70] sm:$0xff] %vm558_vm2, %v725_v30  ;;  %3221 = vmatmul.mubr.msk.f32.gmra.mxu0 %vm1391_vm9, %v1363_v53 }
 0x253   : > { %v727_v13 = vpop.permute.xlu1 %726 }
 0x254   : > { %v1151_v38 = vpop.permute.xlu0 %1150  ;;  %783 = vst.msk [vmem:[#allocation2 + $0x78] sm:$0xff] %vm558_vm2, %v727_v13 }
 0x255   : > { %1219 = vst.msk [vmem:[#allocation2 + $0xe1] sm:$0x7f] %vm1190_vm7, %v1151_v38 }
 0x256   : > { %800 = vst.msk [vmem:[#allocation2 + $0x78] sm:$0xff] %vm798_vm4, %v4080_v16 }
 0x257   : > { %v856_v17 = vpop.permute.xlu1 %855 }
 0x258   : > { %v828_v18 = vpop.permute.xlu0 %827  ;;  %914 = vst.msk [vmem:[#allocation2 + $0xf0] sm:$0xff] %vm792_vm3, %v856_v17 }
 0x259   : > { %900 = vst.msk [vmem:[#allocation2 + $0x70] sm:$0xff] %vm792_vm3, %v828_v18 }
 0x25b   : > { %v1153_v29 = vpop.permute.xlu1 %1152 }
 0x25c   : > { %v1121_v52 = vpop.permute.xlu0 %1120  ;;  %1220 = vst.msk [vmem:[#allocation2 + $0xe9] sm:$0x7f] %vm1190_vm7, %v1153_v29 }
 0x25d   : > { %1204 = vst.msk [vmem:[#allocation2 + $0x69] sm:$0x7f] %vm1190_vm7, %v1121_v52 }
 0x25f   : > { %v1280_v24 = vpop.permute.xlu1 %1279 }
 0x260   : > { %v1248_v27 = vpop.permute.xlu0 %1247  ;;  %1348 = vst.msk [vmem:[#allocation2 + $0xdf] sm:$0xfe] %vm1319_vm8, %v1280_v24 }
 0x261   : > { %1332 = vst.msk [vmem:[#allocation2 + $0x5f] sm:$0xfe] %vm1319_vm8, %v1248_v27 }
 0x263   : > { %v971_v46 = vpop.permute.xlu1 %970 }
 0x264   : > { %v943_v28 = vpop.permute.xlu0 %942  ;;  %1027 = vst.msk [vmem:[#allocation2 + $0xf0] sm:$0xff] %vm798_vm4, %v971_v46 }
 0x265   : > { %1013 = vst.msk [vmem:[#allocation2 + $0x70] sm:$0xff] %vm798_vm4, %v943_v28 }
 0x266   : > { %1043 = vst.msk [vmem:[#allocation2 + $0x70] sm:$0x1] %vm1028_vm5, %v4080_v16  ;;  %1059 = vst.msk [vmem:[#allocation2 + $0xf0] sm:$0x1] %vm1028_vm5, %v4080_v16 }
 0x267   : > { %1076 = vst.msk [vmem:[#allocation2 + $0x77] sm:$0x1] %vm1061_vm6, %v4080_v16  ;;  %1092 = vst.msk [vmem:[#allocation2 + $0xf7] sm:$0x1] %vm1061_vm6, %v4080_v16  ;;  %v1380_v36 = vld [vmem:[#allocation2 + $0xe0] sm:$0xff]  ;;  %v1282_v34 = vpop.permute.xlu1 %1281 }
 0x268   : > { %v1250_v32 = vpop.permute.xlu0 %1249  ;;  %v1364_v33 = vld [vmem:[#allocation2 + $0x60] sm:$0xff]  ;;  %3247 = vmatprep.mubr.msk.f32.mxu1 %vm1391_vm9, %v1380_v36  ;;  %1349 = vst.msk [vmem:[#allocation2 + $0xe7] sm:$0xfe] %vm1319_vm8, %v1282_v34 }
 0x269   : > { %1333 = vst.msk [vmem:[#allocation2 + $0x67] sm:$0xfe] %vm1319_vm8, %v1250_v32  ;;  %3223 = vmatprep.mubr.msk.f32.mxu0 %vm1391_vm9, %v1364_v33 }
 0x26b   : > { %v858_v11 = vpop.permute.xlu1 %857 }
 0x26c   : > { %v830_v54 = vpop.permute.xlu0 %829  ;;  %v5307_v20 = vpop.f32.mrf.mxu0  ;;  %915 = vst.msk [vmem:[#allocation2 + $0xf8] sm:$0xff] %vm792_vm3, %v858_v11 }
 0x26d   : > { %901 = vst.msk [vmem:[#allocation2 + $0x78] sm:$0xff] %vm792_vm3, %v830_v54  ;;  %v1719_v31 = vadd.f32 %v5307_v20, %v4927_v2  ;;  %2472 = vrot.lane.b32.xlu0 %v5307_v20, %s4081_s2 }
 0x26e   : > { %1044 = vst.msk [vmem:[#allocation2 + $0x78] sm:$0x1] %vm1028_vm5, %v4080_v16  ;;  %1060 = vst.msk [vmem:[#allocation2 + $0xf8] sm:$0x1] %vm1028_vm5, %v4080_v16  ;;  %v5322_v55 = vpop.f32.mrf.mxu0 }
 0x26f   : > { %1077 = vst.msk [vmem:[#allocation2 + $0x7f] sm:$0x1] %vm1061_vm6, %v4080_v16  ;;  %1093 = vst.msk [vmem:[#allocation2 + $0xff] sm:$0x1] %vm1061_vm6, %v4080_v16  ;;  %v3042_v63 = vmul.f32 -1.442695, %v1719_v31  ;;  %v1718_v43 = vadd.f32 %v4927_v2, %v5322_v55  ;;  %2470 = vrot.lane.b32.xlu1 %v5322_v55, %s4081_s2  ;;  %v1155_v44 = vpop.permute.xlu1 %1154 }
 0x270   : > { %v1123_v14 = vpop.permute.xlu0 %1122  ;;  %v1365_v23 = vld [vmem:[#allocation2 + $0x68] sm:$0xff]  ;;  %1221 = vst.msk [vmem:[#allocation2 + $0xf1] sm:$0x7f] %vm1190_vm7, %v1155_v44 }
 0x271   : > { %v1381_v47 = vld [vmem:[#allocation2 + $0xe8] sm:$0xff]  ;;  %1205 = vst.msk [vmem:[#allocation2 + $0x71] sm:$0x7f] %vm1190_vm7, %v1123_v14  ;;  %3224 = vmatmul.mubr.msk.f32.gmra.mxu0 %vm1391_vm9, %v1365_v23  ;;  %v5330_v16 = vpop.f32.mrf.mxu1  ;;  %3415 = vpow2.f32 %v3042_v63  ;;  %v3041_v41 = vmul.f32 -1.442695, %v1718_v43 }
 0x272   : > { %3248 = vmatmul.mubr.msk.f32.gmra.mxu1 %vm1391_vm9, %v1381_v47  ;;  %v1735_v19 = vadd.f32 %v5330_v16, %v4927_v2 }
 0x273   : > { %v5336_v48 = vpop.f32.mrf.mxu1  ;;  %3417 = vpow2.f32 %v3041_v41  ;;  %v1157_v56 = vpop.permute.xlu1 %1156 }
 0x274   : > { %v3058_v49 = vmul.f32 -1.442695, %v1735_v19  ;;  %v1734_v40 = vadd.f32 %v4927_v2, %v5336_v48  ;;  %v1125_v37 = vpop.permute.xlu0 %1124  ;;  %1222 = vst.msk [vmem:[#allocation2 + $0xf9] sm:$0x7f] %vm1190_vm7, %v1157_v56 }
 0x275   : > { %1206 = vst.msk [vmem:[#allocation2 + $0x79] sm:$0x7f] %vm1190_vm7, %v1125_v37 }
 0x276   : > { %3419 = vpow2.f32 %v3058_v49  ;;  %v3057_v57 = vmul.f32 -1.442695, %v1734_v40 }
 0x277   : > { %v1284_v50 = vpop.permute.xlu1 %1283 }
 0x278   : > { %3421 = vpow2.f32 %v3057_v57  ;;  %v1252_v58 = vpop.permute.xlu0 %1251  ;;  %1350 = vst.msk [vmem:[#allocation2 + $0xef] sm:$0xfe] %vm1319_vm8, %v1284_v50 }
 0x279   : > { %1334 = vst.msk [vmem:[#allocation2 + $0x6f] sm:$0xfe] %vm1319_vm8, %v1252_v58 }
 0x27b   : > { %v1286_v59 = vpop.permute.xlu1 %1285 }
 0x27c   : > { %v1254_v26 = vpop.permute.xlu0 %1253  ;;  %1351 = vst.msk [vmem:[#allocation2 + $0xf7] sm:$0xfe] %vm1319_vm8, %v1286_v59 }
 0x27d   : > { %1335 = vst.msk [vmem:[#allocation2 + $0x77] sm:$0xfe] %vm1319_vm8, %v1254_v26 }
 0x27e   : > { %v3416_v22 = vpop.eup %3415 }
 0x27f   : > { %v1847_v60 = vadd.f32 1.0, %v3416_v22  ;;  %v1382_v35 = vld [vmem:[#allocation2 + $0xf0] sm:$0xff] }
 0x280   : > { %v1366_v61 = vld [vmem:[#allocation2 + $0x70] sm:$0xff]  ;;  %v3418_v62 = vpop.eup %3417  ;;  %3250 = vmatprep.mubr.msk.f32.mxu1 %vm1391_vm9, %v1382_v35 }
 0x281   : > { %3226 = vmatprep.mubr.msk.f32.mxu0 %vm1391_vm9, %v1366_v61  ;;  %3423 = vrcp.f32 %v1847_v60  ;;  %v1846_v0 = vadd.f32 1.0, %v3418_v62 }
 0x283   : > { %v3420_v51 = vpop.eup %3419  ;;  %3425 = vrcp.f32 %v1846_v0  ;;  %v1383_v1 = vld [vmem:[#allocation2 + $0xf8] sm:$0xff] }
 0x284   : > { %v1367_v25 = vld [vmem:[#allocation2 + $0x78] sm:$0xff]  ;;  %v1863_v6 = vadd.f32 1.0, %v3420_v51  ;;  %3251 = vmatmul.mubr.msk.f32.gmra.mxu1 %vm1391_vm9, %v1383_v1 }
 0x285   : > { %v3422_v5 = vpop.eup %3421  ;;  %3227 = vmatmul.mubr.msk.f32.gmra.mxu0 %vm1391_vm9, %v1367_v25 }
 0x286   : > { %v1862_v42 = vadd.f32 1.0, %v3422_v5  ;;  %3427 = vrcp.f32 %v1863_v6 }
 0x288   : > { %3429 = vrcp.f32 %v1862_v42 }
 0x28e   : > { %v3424_v45 = vpop.eup %3423 }
 0x28f   : > { %v1947_v7 = vmul.f32 %v3424_v45, %v4930_v3 }
 0x290   : > { %v3426_v8 = vpop.eup %3425  ;;  %v5351_v21 = vpop.f32.mrf.mxu0 }
 0x291   : > { %v1721_v39 = vadd.f32 %v5351_v21, %v4927_v2  ;;  %2476 = vrot.lane.b32.xlu0 %v5351_v21, %s4081_s2  ;;  %v5358_v9 = vadd.f32 %v4933_v4, %v1947_v7  ;;  %v1946_v10 = vmul.f32 %v3426_v8, %v4930_v3 }
 0x292   : > { %v5361_v12 = vpop.f32.mrf.mxu0 }
 0x293   : > { %v3044_v30 = vmul.f32 -1.442695, %v1721_v39  ;;  %v1720_v53 = vadd.f32 %v4927_v2, %v5361_v12  ;;  %2474 = vrot.lane.b32.xlu1 %v5361_v12, %s4081_s2  ;;  %v5370_v13 = vadd.f32 %v4933_v4, %v1946_v10  ;;  %v3428_v38 = vpop.eup %3427 }
 0x294   : > { %v1963_v28 = vmul.f32 %v3428_v38, %v4930_v3 }
 0x295   : > { %v5367_v15 = vpop.f32.mrf.mxu1  ;;  %3431 = vpow2.f32 %v3044_v30  ;;  %v3043_v17 = vmul.f32 -1.442695, %v1720_v53  ;;  %v3430_v29 = vpop.eup %3429 }
 0x296   : > { %v1737_v18 = vadd.f32 %v5367_v15, %v4927_v2  ;;  %v1962_v32 = vmul.f32 %v3430_v29, %v4930_v3  ;;  %v5381_v33 = vadd.f32 %v4933_v4, %v1963_v28 }
 0x297   : > { %v5374_v52 = vpop.f32.mrf.mxu1  ;;  %3433 = vpow2.f32 %v3043_v17 }
 0x298   : > { %v3060_v24 = vmul.f32 -1.442695, %v1737_v18  ;;  %v1736_v27 = vadd.f32 %v4927_v2, %v5374_v52  ;;  %v5384_v36 = vadd.f32 %v4933_v4, %v1962_v32 }
 0x29a   : > { %3435 = vpow2.f32 %v3060_v24  ;;  %v3059_v46 = vmul.f32 -1.442695, %v1736_v27 }
 0x29c   : > { %3437 = vpow2.f32 %v3059_v46 }
 0x2a2   : > { %v3432_v34 = vpop.eup %3431 }
 0x2a3   : > { %v1849_v54 = vadd.f32 1.0, %v3432_v34 }
 0x2a4   : > { %v3434_v11 = vpop.eup %3433 }
 0x2a5   : > { %3439 = vrcp.f32 %v1849_v54  ;;  %v1848_v31 = vadd.f32 1.0, %v3434_v11 }
 0x2a7   : > { %v3436_v63 = vpop.eup %3435  ;;  %3441 = vrcp.f32 %v1848_v31 }
 0x2a8   : > { %v1865_v43 = vadd.f32 1.0, %v3436_v63 }
 0x2a9   : > { %v3438_v14 = vpop.eup %3437 }
 0x2aa   : > { %3443 = vrcp.f32 %v1865_v43  ;;  %v1864_v23 = vadd.f32 1.0, %v3438_v14 }
 0x2ac   : > { %3445 = vrcp.f32 %v1864_v23 }
 0x2b0   : > { %v5386_v44 = vpop.f32.mrf.mxu0 }
 0x2b1   : > { %v1723_v47 = vadd.f32 %v5386_v44, %v4927_v2  ;;  %2480 = vrot.lane.b32.xlu0 %v5386_v44, %s4081_s2 }
 0x2b2   : > { %v3440_v41 = vpop.eup %3439  ;;  %v5392_v19 = vpop.f32.mrf.mxu0 }
 0x2b3   : > { %v3046_v49 = vmul.f32 -1.442695, %v1723_v47  ;;  %v1722_v40 = vadd.f32 %v4927_v2, %v5392_v19  ;;  %2478 = vrot.lane.b32.xlu1 %v5392_v19, %s4081_s2  ;;  %v1949_v57 = vmul.f32 %v3440_v41, %v4930_v3 }
 0x2b4   : > { %v3442_v37 = vpop.eup %3441 }
 0x2b5   : > { %v5398_v56 = vpop.f32.mrf.mxu1  ;;  %3447 = vpow2.f32 %v3046_v49  ;;  %v3045_v58 = vmul.f32 -1.442695, %v1722_v40  ;;  %v5406_v22 = vadd.f32 %v4933_v4, %v1949_v57  ;;  %v1948_v60 = vmul.f32 %v3442_v37, %v4930_v3 }
 0x2b6   : > { %v1739_v50 = vadd.f32 %v5398_v56, %v4927_v2 }
 0x2b7   : > { %v3444_v26 = vpop.eup %3443  ;;  %v5403_v59 = vpop.f32.mrf.mxu1  ;;  %3449 = vpow2.f32 %v3045_v58  ;;  %v5412_v0 = vadd.f32 %v4933_v4, %v1948_v60 }
 0x2b8   : > { %v3062_v61 = vmul.f32 -1.442695, %v1739_v50  ;;  %v1738_v35 = vadd.f32 %v4927_v2, %v5403_v59  ;;  %v1965_v25 = vmul.f32 %v3444_v26, %v4930_v3 }
 0x2b9   : > { %v3446_v62 = vpop.eup %3445 }
 0x2ba   : > { %3451 = vpow2.f32 %v3062_v61  ;;  %v3061_v51 = vmul.f32 -1.442695, %v1738_v35  ;;  %v1964_v1 = vmul.f32 %v3446_v62, %v4930_v3  ;;  %v5417_v5 = vadd.f32 %v4933_v4, %v1965_v25 }
 0x2bc   : > { %3453 = vpow2.f32 %v3061_v51  ;;  %v5420_v6 = vadd.f32 %v4933_v4, %v1964_v1 }
 0x2c2   : > { %v3448_v42 = vpop.eup %3447 }
 0x2c3   : > { %v1851_v45 = vadd.f32 1.0, %v3448_v42 }
 0x2c4   : > { %v3450_v7 = vpop.eup %3449 }
 0x2c5   : > { %3455 = vrcp.f32 %v1851_v45  ;;  %v1850_v8 = vadd.f32 1.0, %v3450_v7 }
 0x2c7   : > { %v3452_v39 = vpop.eup %3451  ;;  %3457 = vrcp.f32 %v1850_v8 }
 0x2c8   : > { %v1867_v10 = vadd.f32 1.0, %v3452_v39 }
 0x2c9   : > { %v3454_v30 = vpop.eup %3453 }
 0x2ca   : > { %3459 = vrcp.f32 %v1867_v10  ;;  %v1866_v53 = vadd.f32 1.0, %v3454_v30 }
 0x2cc   : > { %3461 = vrcp.f32 %v1866_v53  ;;  %v5422_v38 = vpop.f32.mrf.mxu0 }
 0x2cd   : > { %v1725_v17 = vadd.f32 %v5422_v38, %v4927_v2  ;;  %2484 = vrot.lane.b32.xlu0 %v5422_v38, %s4081_s2 }
 0x2ce   : > { %v5428_v18 = vpop.f32.mrf.mxu0 }
 0x2cf   : > { %v3048_v29 = vmul.f32 -1.442695, %v1725_v17  ;;  %v1724_v24 = vadd.f32 %v4927_v2, %v5428_v18  ;;  %2482 = vrot.lane.b32.xlu1 %v5428_v18, %s4081_s2 }
 0x2d1   : > { %v5434_v27 = vpop.f32.mrf.mxu1  ;;  %3463 = vpow2.f32 %v3048_v29  ;;  %v3047_v28 = vmul.f32 -1.442695, %v1724_v24 }
 0x2d2   : > { %v1741_v46 = vadd.f32 %v5434_v27, %v4927_v2  ;;  %v3456_v32 = vpop.eup %3455 }
 0x2d3   : > { %v5438_v34 = vpop.f32.mrf.mxu1  ;;  %3465 = vpow2.f32 %v3047_v28  ;;  %v1951_v63 = vmul.f32 %v3456_v32, %v4930_v3 }
 0x2d4   : > { %v3064_v54 = vmul.f32 -1.442695, %v1741_v46  ;;  %v1740_v11 = vadd.f32 %v4927_v2, %v5438_v34  ;;  %v3458_v31 = vpop.eup %3457 }
 0x2d5   : > { %v1950_v14 = vmul.f32 %v3458_v31, %v4930_v3  ;;  %v5445_v47 = vadd.f32 %v4933_v4, %v1951_v63 }
 0x2d6   : > { %3467 = vpow2.f32 %v3064_v54  ;;  %v3063_v43 = vmul.f32 -1.442695, %v1740_v11 }
 0x2d7   : > { %v3460_v23 = vpop.eup %3459  ;;  %v5448_v41 = vadd.f32 %v4933_v4, %v1950_v14 }
 0x2d8   : > { %3469 = vpow2.f32 %v3063_v43  ;;  %v1967_v49 = vmul.f32 %v3460_v23, %v4930_v3 }
 0x2d9   : > { %v3462_v40 = vpop.eup %3461 }
 0x2da   : > { %v5452_v37 = vadd.f32 %v4933_v4, %v1967_v49  ;;  %v1966_v57 = vmul.f32 %v3462_v40, %v4930_v3 }
 0x2dc   : > { %v5456_v58 = vadd.f32 %v4933_v4, %v1966_v57 }
 0x2de   : > { %6124 = vst [vmem:[#allocation27_spill] sm:$0xff] %v5456_v58  ;;  %v3464_v50 = vpop.eup %3463 }
 0x2df   : > { %v1853_v26 = vadd.f32 1.0, %v3464_v50 }
 0x2e0   : > { %v3466_v60 = vpop.eup %3465 }
 0x2e1   : > { %3471 = vrcp.f32 %v1853_v26  ;;  %v1852_v61 = vadd.f32 1.0, %v3466_v60 }
 0x2e3   : > { %v3468_v35 = vpop.eup %3467  ;;  %3473 = vrcp.f32 %v1852_v61 }
 0x2e4   : > { %v1869_v62 = vadd.f32 1.0, %v3468_v35 }
 0x2e5   : > { %v3470_v51 = vpop.eup %3469 }
 0x2e6   : > { %3475 = vrcp.f32 %v1869_v62  ;;  %v1868_v25 = vadd.f32 1.0, %v3470_v51 }
 0x2e8   : > { %3477 = vrcp.f32 %v1868_v25 }
 0x2ec   : > { %v5458_v1 = vpop.f32.mrf.mxu0 }
 0x2ed   : > { %v1727_v42 = vadd.f32 %v5458_v1, %v4927_v2  ;;  %2488 = vrot.lane.b32.xlu0 %v5458_v1, %s4081_s2 }
 0x2ee   : > { %v3472_v45 = vpop.eup %3471  ;;  %v5464_v7 = vpop.f32.mrf.mxu0 }
 0x2ef   : > { %v3050_v8 = vmul.f32 -1.442695, %v1727_v42  ;;  %v1726_v39 = vadd.f32 %v4927_v2, %v5464_v7  ;;  %2486 = vrot.lane.b32.xlu1 %v5464_v7, %s4081_s2  ;;  %v1953_v53 = vmul.f32 %v3472_v45, %v4930_v3 }
 0x2f0   : > { %v3474_v10 = vpop.eup %3473 }
 0x2f1   : > { %v5470_v30 = vpop.f32.mrf.mxu1  ;;  %3479 = vpow2.f32 %v3050_v8  ;;  %v3049_v17 = vmul.f32 -1.442695, %v1726_v39  ;;  %v5478_v46 = vadd.f32 %v4933_v4, %v1953_v53  ;;  %v1952_v32 = vmul.f32 %v3474_v10, %v4930_v3 }
 0x2f2   : > { %v1743_v29 = vadd.f32 %v5470_v30, %v4927_v2 }
 0x2f3   : > { %v3476_v24 = vpop.eup %3475  ;;  %v5475_v28 = vpop.f32.mrf.mxu1  ;;  %3481 = vpow2.f32 %v3049_v17  ;;  %v5484_v63 = vadd.f32 %v4933_v4, %v1952_v32 }
 0x2f4   : > { %v3066_v54 = vmul.f32 -1.442695, %v1743_v29  ;;  %v1742_v11 = vadd.f32 %v4927_v2, %v5475_v28  ;;  %v1969_v14 = vmul.f32 %v3476_v24, %v4930_v3 }
 0x2f5   : > { %v3478_v31 = vpop.eup %3477 }
 0x2f6   : > { %3483 = vpow2.f32 %v3066_v54  ;;  %v3065_v43 = vmul.f32 -1.442695, %v1742_v11  ;;  %v1968_v23 = vmul.f32 %v3478_v31, %v4930_v3  ;;  %v5489_v49 = vadd.f32 %v4933_v4, %v1969_v14 }
 0x2f8   : > { %3485 = vpow2.f32 %v3065_v43  ;;  %6125 = vst [vmem:[#allocation28_spill] sm:$0xff] %v5489_v49  ;;  %v5492_v40 = vadd.f32 %v4933_v4, %v1968_v23 }
 0x2fa   : > { %6126 = vst [vmem:[#allocation29_spill] sm:$0xff] %v5492_v40 }
 0x2fe   : > { %v3480_v57 = vpop.eup %3479 }
 0x2ff   : > { %v1855_v50 = vadd.f32 1.0, %v3480_v57 }
 0x300   : > { %v3482_v26 = vpop.eup %3481 }
 0x301   : > { %3487 = vrcp.f32 %v1855_v50  ;;  %v1854_v60 = vadd.f32 1.0, %v3482_v26 }
 0x303   : > { %v3484_v61 = vpop.eup %3483  ;;  %3489 = vrcp.f32 %v1854_v60 }
 0x304   : > { %v1871_v35 = vadd.f32 1.0, %v3484_v61 }
 0x305   : > { %v3486_v62 = vpop.eup %3485 }
 0x306   : > { %v1870_v51 = vadd.f32 1.0, %v3486_v62  ;;  %3491 = vrcp.f32 %v1871_v35 }
 0x308   : > { %3493 = vrcp.f32 %v1870_v51 }
 0x30e   : > { %v3488_v25 = vpop.eup %3487 }
 0x30f   : > { %v1955_v42 = vmul.f32 %v3488_v25, %v4930_v3 }
 0x310   : > { %v3490_v45 = vpop.eup %3489  ;;  %v5497_v39 = vpop.f32.mrf.mxu1 }
 0x311   : > { %v5495_v8 = vpop.f32.mrf.mxu0  ;;  %v1745_v53 = vadd.f32 %v5497_v39, %v4927_v2  ;;  %v5510_v24 = vadd.f32 %v4933_v4, %v1955_v42  ;;  %v1954_v32 = vmul.f32 %v3490_v45, %v4930_v3 }
 0x312   : > { %v1729_v10 = vadd.f32 %v5495_v8, %v4927_v2  ;;  %2492 = vrot.lane.b32.xlu0 %v5495_v8, %s4081_s2  ;;  %v5507_v29 = vpop.f32.mrf.mxu1 }
 0x313   : > { %v5505_v17 = vpop.f32.mrf.mxu0  ;;  %v3492_v54 = vpop.eup %3491  ;;  %v1744_v14 = vadd.f32 %v4927_v2, %v5507_v29  ;;  %v3068_v57 = vmul.f32 -1.442695, %v1745_v53  ;;  %v5520_v50 = vadd.f32 %v4933_v4, %v1954_v32 }
 0x314   : > { %v3052_v11 = vmul.f32 -1.442695, %v1729_v10  ;;  %v1728_v31 = vadd.f32 %v4927_v2, %v5505_v17  ;;  %2490 = vrot.lane.b32.xlu1 %v5505_v17, %s4081_s2  ;;  %v1971_v60 = vmul.f32 %v3492_v54, %v4930_v3 }
 0x315   : > { %v3494_v43 = vpop.eup %3493  ;;  %v3067_v26 = vmul.f32 -1.442695, %v1744_v14 }
 0x316   : > { %3495 = vpow2.f32 %v3052_v11  ;;  %v3051_v23 = vmul.f32 -1.442695, %v1728_v31  ;;  %v1970_v61 = vmul.f32 %v3494_v43, %v4930_v3  ;;  %v5525_v35 = vadd.f32 %v4933_v4, %v1971_v60  ;;  %v5530_v11 = vpop.permute.xlu0 %2211 }
 0x317   : > { %v2215_v14 = vadd.f32 %v5307_v20, %v5530_v11 }
 0x318   : > { %3497 = vpow2.f32 %v3051_v23  ;;  %6127 = vst [vmem:[#allocation30_spill] sm:$0xff] %v5525_v35  ;;  %v5528_v62 = vadd.f32 %v4933_v4, %v1970_v61 }
 0x319   : > { %3499 = vpow2.f32 %v3068_v57 }
 0x31a   : > { %6128 = vst [vmem:[#allocation31_spill] sm:$0xff] %v5528_v62  ;;  %3501 = vpow2.f32 %v3067_v26 }
 0x323   : > { %v3496_v51 = vpop.eup %3495 }
 0x324   : > { %v1857_v25 = vadd.f32 1.0, %v3496_v51  ;;  %v2214_v51 = vadd.f32 %v5530_v11, %v5322_v55 }
 0x325   : > { %v3498_v42 = vpop.eup %3497 }
 0x326   : > { %3503 = vrcp.f32 %v1857_v25  ;;  %v1856_v45 = vadd.f32 1.0, %v3498_v42  ;;  %v3500_v10 = vpop.eup %3499  ;;  %v3105_v35 = vmul.f32 -1.442695, %v2214_v51  ;;  %v2217_v51 = vadd.f32 %v5351_v21, %v5530_v11 }
 0x327   : > { %v1873_v53 = vadd.f32 1.0, %v3500_v10  ;;  %v3502_v32 = vpop.eup %3501  ;;  %v3106_v10 = vmul.f32 -1.442695, %v2215_v14 }
 0x328   : > { %3505 = vrcp.f32 %v1856_v45  ;;  %v1872_v54 = vadd.f32 1.0, %v3502_v32 }
 0x329   : > { %3507 = vrcp.f32 %v1873_v53 }
 0x32a   : > { %3509 = vrcp.f32 %v1872_v54 }
 0x331   : > { %v5532_v31 = vpop.f32.mrf.mxu0 }
 0x332   : > { %v5534_v43 = vpop.f32.mrf.mxu1  ;;  %v1731_v23 = vadd.f32 %v5532_v31, %v4927_v2  ;;  %2496 = vrot.lane.b32.xlu0 %v5532_v31, %s4081_s2 }
 0x333   : > { %v1747_v57 = vadd.f32 %v5534_v43, %v4927_v2  ;;  %v3504_v26 = vpop.eup %3503  ;;  %v5544_v60 = vpop.f32.mrf.mxu0 }
 0x334   : > { %v5546_v61 = vpop.f32.mrf.mxu1  ;;  %v3054_v25 = vmul.f32 -1.442695, %v1731_v23  ;;  %v1730_v20 = vadd.f32 %v4927_v2, %v5544_v60  ;;  %2494 = vrot.lane.b32.xlu1 %v5544_v60, %s4081_s2  ;;  %v1957_v54 = vmul.f32 %v3504_v26, %v4930_v3 }
 0x335   : > { %v3506_v42 = vpop.eup %3505  ;;  %v1746_v45 = vadd.f32 %v4927_v2, %v5546_v61  ;;  %v3070_v32 = vmul.f32 -1.442695, %v1747_v57 }
 0x336   : > { %3511 = vpow2.f32 %v3054_v25  ;;  %v3053_v53 = vmul.f32 -1.442695, %v1730_v20  ;;  %v3508_v62 = vpop.eup %3507  ;;  %v1956_v55 = vmul.f32 %v3506_v42, %v4930_v3  ;;  %v5559_v40 = vadd.f32 %v4933_v4, %v1957_v54 }
 0x337   : > { %v3069_v23 = vmul.f32 -1.442695, %v1746_v45  ;;  %v1973_v49 = vmul.f32 %v3508_v62, %v4930_v3  ;;  %v3510_v58 = vpop.eup %3509  ;;  %v2216_v62 = vadd.f32 %v5530_v11, %v5361_v12  ;;  %v3108_v20 = vmul.f32 -1.442695, %v2217_v51 }
 0x338   : > { %3513 = vpow2.f32 %v3053_v53  ;;  %v5563_v14 = vadd.f32 %v4933_v4, %v1956_v55  ;;  %v1972_v26 = vmul.f32 %v3510_v58, %v4930_v3  ;;  %v2219_v45 = vadd.f32 %v5386_v44, %v5530_v11 }
 0x339   : > { %3515 = vpow2.f32 %v3106_v10  ;;  %v5566_v57 = vadd.f32 %v4933_v4, %v1973_v49  ;;  %v3107_v42 = vmul.f32 -1.442695, %v2216_v62 }
 0x33a   : > { %3517 = vpow2.f32 %v3070_v32  ;;  %v5572_v25 = vadd.f32 %v4933_v4, %v1972_v26  ;;  %v3110_v53 = vmul.f32 -1.442695, %v2219_v45 }
 0x33b   : > { %3519 = vpow2.f32 %v3105_v35 }
 0x33c   : > { %3521 = vpow2.f32 %v3069_v23 }
 0x33d   : > { %3523 = vpow2.f32 %v3108_v20 }
 0x33e   : > { %3525 = vpow2.f32 %v3107_v42  ;;  %v2218_v42 = vadd.f32 %v5530_v11, %v5392_v19 }
 0x343   : > { %v3512_v49 = vpop.eup %3511 }
 0x344   : > { %v1859_v10 = vadd.f32 1.0, %v3512_v49  ;;  %v5584_v12 = vpop.f32.mrf.mxu1 }
 0x345   : > { %v3514_v58 = vpop.eup %3513  ;;  %v5578_v21 = vpop.f32.mrf.mxu0  ;;  %v1749_v23 = vadd.f32 %v5584_v12, %v4927_v2 }
 0x346   : > { %v3516_v35 = vpop.eup %3515  ;;  %3527 = vrcp.f32 %v1859_v10  ;;  %v1858_v32 = vadd.f32 1.0, %v3514_v58  ;;  %v1733_v54 = vadd.f32 %v5578_v21, %v4927_v2  ;;  %2500 = vrot.lane.b32.xlu0 %v5578_v21, %s4081_s2  ;;  %v2221_v58 = vadd.f32 %v5422_v38, %v5530_v11 }
 0x347   : > { %v3518_v44 = vpop.eup %3517  ;;  %v5586_v55 = vpop.f32.mrf.mxu0  ;;  %v2343_v49 = vadd.f32 1.0, %v3516_v35  ;;  %v3109_v35 = vmul.f32 -1.442695, %v2218_v42 }
 0x348   : > { %v3520_v26 = vpop.eup %3519  ;;  %3529 = vrcp.f32 %v1858_v32  ;;  %v1875_v51 = vadd.f32 1.0, %v3518_v44  ;;  %v3056_v62 = vmul.f32 -1.442695, %v1733_v54  ;;  %2498 = vrot.lane.b32.xlu1 %v5586_v55, %s4081_s2  ;;  %v1732_v45 = vadd.f32 %v4927_v2, %v5586_v55  ;;  %v5600_v32 = vpop.f32.mrf.mxu1 }
 0x349   : > { %v3522_v20 = vpop.eup %3521  ;;  %3531 = vpow2.f32 %v3110_v53  ;;  %v2342_v54 = vadd.f32 1.0, %v3520_v26  ;;  %v1748_v19 = vadd.f32 %v4927_v2, %v5600_v32  ;;  %v2220_v44 = vadd.f32 %v5530_v11, %v5428_v18 }
 0x34a   : > { %3533 = vrcp.f32 %v1875_v51  ;;  %v1874_v10 = vadd.f32 1.0, %v3522_v20  ;;  %2504 = vrot.lane.b32.xlu0 %v5330_v16, %s4081_s2  ;;  %v3055_v53 = vmul.f32 -1.442695, %v1732_v45  ;;  %v3072_v51 = vmul.f32 -1.442695, %v1749_v23  ;;  %v3524_v26 = vpop.eup %3523 }
 0x34b   : > { %3535 = vpow2.f32 %v3056_v62  ;;  %v3112_v38 = vmul.f32 -1.442695, %v2221_v58  ;;  %v2223_v62 = vadd.f32 %v5458_v1, %v5530_v11  ;;  %v3071_v2 = vmul.f32 -1.442695, %v1748_v19  ;;  %v3526_v18 = vpop.eup %3525 }
 0x34c   : > { %2502 = vrot.lane.b32.xlu1 %v5336_v48, %s4081_s2  ;;  %3537 = vrcp.f32 %v2343_v49  ;;  %v3111_v20 = vmul.f32 -1.442695, %v2220_v44  ;;  %v2222_v23 = vadd.f32 %v5530_v11, %v5464_v7  ;;  %v2345_v45 = vadd.f32 1.0, %v3524_v26 }
 0x34d   : > { %3539 = vrcp.f32 %v1874_v10  ;;  %v2225_v1 = vadd.f32 %v5495_v8, %v5530_v11  ;;  %v3114_v49 = vmul.f32 -1.442695, %v2223_v62  ;;  %v2224_v19 = vadd.f32 %v5530_v11, %v5505_v17 }
 0x34e   : > { %2508 = vrot.lane.b32.xlu0 %v5367_v15, %s4081_s2  ;;  %3541 = vrcp.f32 %v2342_v54  ;;  %v2344_v54 = vadd.f32 1.0, %v3526_v18 }
 0x34f   : > { %3543 = vpow2.f32 %v3055_v53  ;;  %v3113_v53 = vmul.f32 -1.442695, %v2222_v23  ;;  %v3115_v23 = vmul.f32 -1.442695, %v2224_v19  ;;  %v2228_v19 = vadd.f32 %v5530_v11, %v5586_v55 }
 0x350   : > { %2506 = vrot.lane.b32.xlu1 %v5374_v52, %s4081_s2  ;;  %3545 = vpow2.f32 %v3109_v35 }
 0x351   : > { %3547 = vpow2.f32 %v3072_v51  ;;  %v3116_v51 = vmul.f32 -1.442695, %v2225_v1 }
 0x352   : > { %2512 = vrot.lane.b32.xlu0 %v5398_v56, %s4081_s2  ;;  %3549 = vpow2.f32 %v3112_v38  ;;  %v2227_v38 = vadd.f32 %v5532_v31, %v5530_v11 }
 0x353   : > { %v3528_v42 = vpop.eup %3527  ;;  %3551 = vpow2.f32 %v3071_v2 }
 0x354   : > { %2510 = vrot.lane.b32.xlu1 %v5403_v59, %s4081_s2  ;;  %v1959_v10 = vmul.f32 %v3528_v42, %v4930_v3  ;;  %3553 = vpow2.f32 %v3111_v20  ;;  %v2226_v20 = vadd.f32 %v5530_v11, %v5544_v60  ;;  %v3118_v1 = vmul.f32 -1.442695, %v2227_v38 }
 0x355   : > { %v3530_v58 = vpop.eup %3529  ;;  %3555 = vrcp.f32 %v2345_v45 }
 0x356   : > { %v3532_v7 = vpop.eup %3531  ;;  %2516 = vrot.lane.b32.xlu0 %v5434_v27, %s4081_s2  ;;  %v5628_v8 = vadd.f32 %v4933_v4, %v1959_v10  ;;  %v1958_v35 = vmul.f32 %v3530_v58, %v4930_v3  ;;  %3557 = vpow2.f32 %v3114_v49  ;;  %v2229_v49 = vadd.f32 %v5578_v21, %v5530_v11 }
 0x357   : > { %v3534_v44 = vpop.eup %3533  ;;  %3559 = vrcp.f32 %v2344_v54  ;;  %v2347_v2 = vadd.f32 1.0, %v3532_v7  ;;  %v3117_v54 = vmul.f32 -1.442695, %v2226_v20 }
 0x358   : > { %2514 = vrot.lane.b32.xlu1 %v5438_v34, %s4081_s2  ;;  %v5636_v17 = vadd.f32 %v4933_v4, %v1958_v35  ;;  %v1975_v26 = vmul.f32 %v3534_v44, %v4930_v3  ;;  %v3536_v62 = vpop.eup %3535  ;;  %3561 = vpow2.f32 %v3113_v53  ;;  %v3120_v44 = vmul.f32 -1.442695, %v2229_v49 }
 0x359   : > { %v5641_v18 = vpop.eup %3537  ;;  %v1861_v31 = vadd.f32 1.0, %v3536_v62  ;;  %3563 = vpow2.f32 %v3116_v51  ;;  %v2231_v51 = vadd.f32 %v5330_v16, %v5530_v11  ;;  %v2233_v16 = vadd.f32 %v5367_v15, %v5530_v11 }
 0x35a   : > { %2520 = vrot.lane.b32.xlu0 %v5470_v30, %s4081_s2  ;;  %v5646_v42 = vadd.f32 %v4933_v4, %v1975_v26  ;;  %v3540_v45 = vpop.eup %3539 }
 0x35b   : > { %v5650_v10 = vpop.eup %3541  ;;  %3565 = vrcp.f32 %v1861_v31  ;;  %v1974_v60 = vmul.f32 %v3540_v45, %v4930_v3  ;;  %v3122_v45 = vmul.f32 -1.442695, %v2231_v51 }
 0x35c   : > { %2518 = vrot.lane.b32.xlu1 %v5475_v28, %s4081_s2  ;;  %v3544_v58 = vpop.eup %3543  ;;  %3567 = vrcp.f32 %v2347_v2  ;;  %v2230_v2 = vadd.f32 %v5530_v11, %v5336_v48  ;;  %v2232_v48 = vadd.f32 %v5530_v11, %v5374_v52 }
 0x35d   : > { %v3546_v7 = vpop.eup %3545  ;;  %3569 = vpow2.f32 %v3115_v23  ;;  %v1860_v53 = vadd.f32 1.0, %v3544_v58  ;;  %v5660_v21 = vadd.f32 %v4933_v4, %v1974_v60  ;;  %v3119_v23 = vmul.f32 -1.442695, %v2228_v19 }
 0x35e   : > { %2524 = vrot.lane.b32.xlu0 %v5497_v39, %s4081_s2  ;;  %v3548_v35 = vpop.eup %3547  ;;  %3571 = vpow2.f32 %v3118_v1  ;;  %v2346_v55 = vadd.f32 1.0, %v3546_v7  ;;  %v3121_v58 = vmul.f32 -1.442695, %v2230_v2  ;;  %v2235_v19 = vadd.f32 %v5398_v56, %v5530_v11 }
 0x35f   : > { %v3550_v38 = vpop.eup %3549  ;;  %3573 = vrcp.f32 %v1860_v53  ;;  %v1877_v26 = vadd.f32 1.0, %v3548_v35  ;;  %v3124_v53 = vmul.f32 -1.442695, %v2233_v16  ;;  %v3123_v51 = vmul.f32 -1.442695, %v2232_v48 }
 0x360   : > { %2522 = vrot.lane.b32.xlu1 %v5507_v29, %s4081_s2  ;;  %v3552_v62 = vpop.eup %3551  ;;  %3575 = vpow2.f32 %v3117_v54  ;;  %v2349_v49 = vadd.f32 1.0, %v3550_v38  ;;  %v2234_v38 = vadd.f32 %v5530_v11, %v5403_v59  ;;  %v3126_v2 = vmul.f32 -1.442695, %v2235_v19 }
 0x361   : > { %v3554_v20 = vpop.eup %3553  ;;  %3577 = vrcp.f32 %v1877_v26  ;;  %v1876_v31 = vadd.f32 1.0, %v3552_v62 }
 0x362   : > { %2528 = vrot.lane.b32.xlu0 %v5534_v43, %s4081_s2  ;;  %3579 = vpow2.f32 %v3120_v44  ;;  %v3556_v1 = vpop.eup %3555  ;;  %v2348_v7 = vadd.f32 1.0, %v3554_v20  ;;  %v2237_v20 = vadd.f32 %v5434_v27, %v5530_v11 }
 0x363   : > { %3581 = vrcp.f32 %v1876_v31  ;;  %v3558_v60 = vpop.eup %3557 }
 0x364   : > { %2526 = vrot.lane.b32.xlu1 %v5546_v61, %s4081_s2  ;;  %3583 = vrcp.f32 %v2346_v55  ;;  %v3560_v54 = vpop.eup %3559  ;;  %v2351_v44 = vadd.f32 1.0, %v3558_v60 }
 0x365   : > { %3585 = vpow2.f32 %v3119_v23  ;;  %v3562_v15 = vpop.eup %3561 }
 0x366   : > { %2532 = vrot.lane.b32.xlu0 %v5584_v12, %s4081_s2  ;;  %3587 = vpow2.f32 %v3122_v45  ;;  %v3564_v35 = vpop.eup %3563  ;;  %v2350_v62 = vadd.f32 1.0, %v3562_v15  ;;  %v2236_v45 = vadd.f32 %v5530_v11, %v5438_v34 }
 0x367   : > { %3589 = vrcp.f32 %v2349_v49  ;;  %v2353_v31 = vadd.f32 1.0, %v3564_v35 }
 0x368   : > { %2530 = vrot.lane.b32.xlu1 %v5600_v32, %s4081_s2  ;;  %v3566_v52 = vpop.eup %3565  ;;  %3591 = vpow2.f32 %v3121_v58  ;;  %v3128_v58 = vmul.f32 -1.442695, %v2237_v20  ;;  %v3127_v35 = vmul.f32 -1.442695, %v2236_v45  ;;  %v2240_v20 = vadd.f32 %v5530_v11, %v5507_v29 }
 0x369   : > { %v3568_v26 = vpop.eup %3567  ;;  %3593 = vrcp.f32 %v2348_v7  ;;  %v1961_v56 = vmul.f32 %v3566_v52, %v4930_v3 }
 0x36a   : > { %2632 = vrot.lane.b32.xlu0 %v5641_v18, %s4082_s9  ;;  %v3570_v55 = vpop.eup %3569  ;;  %3595 = vpow2.f32 %v3124_v53  ;;  %v3125_v18 = vmul.f32 -1.442695, %v2234_v38  ;;  %v3131_v29 = vmul.f32 -1.442695, %v2240_v20 }
 0x36b   : > { %v3572_v23 = vpop.eup %3571  ;;  %3597 = vrcp.f32 %v2351_v44  ;;  %v5692_v59 = vadd.f32 %v4933_v4, %v1961_v56  ;;  %v2352_v60 = vadd.f32 1.0, %v3570_v55  ;;  %v2241_v56 = vadd.f32 %v5497_v39, %v5530_v11 }
 0x36c   : > { %2630 = vrot.lane.b32.xlu1 %v5650_v10, %s4082_s9  ;;  %v3574_v16 = vpop.eup %3573  ;;  %3599 = vpow2.f32 %v3123_v51  ;;  %v2239_v10 = vadd.f32 %v5470_v30, %v5530_v11  ;;  %v2355_v15 = vadd.f32 1.0, %v3572_v23 }
 0x36d   : > { %v3576_v49 = vpop.eup %3575  ;;  %3601 = vrcp.f32 %v2350_v62  ;;  %v1960_v27 = vmul.f32 %v3574_v16, %v4930_v3 }
 0x36e   : > { %2636 = vrot.lane.b32.xlu0 %v3556_v1, %s4082_s9  ;;  %v3578_v48 = vpop.eup %3577  ;;  %3603 = vpow2.f32 %v3126_v2  ;;  %v2238_v1 = vadd.f32 %v5530_v11, %v5475_v28  ;;  %v2354_v52 = vadd.f32 1.0, %v3576_v49  ;;  %v3130_v38 = vmul.f32 -1.442695, %v2239_v10 }
 0x36f   : > { %v3580_v7 = vpop.eup %3579  ;;  %3605 = vrcp.f32 %v2353_v31  ;;  %v5702_v34 = vadd.f32 %v4933_v4, %v1960_v27  ;;  %v1977_v53 = vmul.f32 %v3578_v48, %v4930_v3  ;;  %v2242_v27 = vadd.f32 %v5530_v11, %v5546_v61 }
 0x370   : > { %2634 = vrot.lane.b32.xlu1 %v3560_v54, %s4082_s9  ;;  %v3582_v19 = vpop.eup %3581  ;;  %3607 = vpow2.f32 %v3125_v18  ;;  %v2357_v55 = vadd.f32 1.0, %v3580_v7  ;;  %v3132_v18 = vmul.f32 -1.442695, %v2241_v56  ;;  %v2245_v7 = vadd.f32 %v5584_v12, %v5530_v11 }
 0x371   : > { %v3584_v44 = vpop.eup %3583  ;;  %3609 = vrcp.f32 %v2352_v60  ;;  %v1976_v30 = vmul.f32 %v3582_v19, %v4930_v3  ;;  %v5710_v54 = vadd.f32 %v4933_v4, %v1977_v53  ;;  %v3133_v61 = vmul.f32 -1.442695, %v2242_v27 }
 0x372   : > { %2640 = vrot.lane.b32.xlu0 %v3568_v26, %s4082_s9  ;;  %v3586_v51 = vpop.eup %3585  ;;  %3611 = vpow2.f32 %v3128_v58  ;;  %v3129_v26 = vmul.f32 -1.442695, %v2238_v1 }
 0x373   : > { %v3588_v62 = vpop.eup %3587  ;;  %3613 = vrcp.f32 %v2355_v15  ;;  %v5716_v28 = vadd.f32 %v4933_v4, %v1976_v30  ;;  %v2356_v23 = vadd.f32 1.0, %v3586_v51  ;;  %v2243_v4 = vadd.f32 %v5534_v43, %v5530_v11 }
 0x374   : > { %2638 = vrot.lane.b32.xlu1 %v3584_v44, %s4082_s9  ;;  %v3590_v3 = vpop.eup %3589  ;;  %3615 = vpow2.f32 %v3127_v35  ;;  %v2359_v39 = vadd.f32 1.0, %v3588_v62  ;;  %v2244_v35 = vadd.f32 %v5530_v11, %v5600_v32  ;;  %v3136_v30 = vmul.f32 -1.442695, %v2245_v7 }
 0x375   : > { %v3592_v2 = vpop.eup %3591  ;;  %3617 = vrcp.f32 %v2354_v52  ;;  %v3134_v43 = vmul.f32 -1.442695, %v2243_v4 }
 0x376   : > { %2644 = vrot.lane.b32.xlu0 %v3590_v3, %s4082_s9  ;;  %v3594_v31 = vpop.eup %3593  ;;  %3619 = vpow2.f32 %v3130_v38  ;;  %v2358_v49 = vadd.f32 1.0, %v3592_v2  ;;  %v3135_v62 = vmul.f32 -1.442695, %v2244_v35 }
 0x377   : > { %v3596_v16 = vpop.eup %3595  ;;  %3621 = vrcp.f32 %v2357_v55 }
 0x378   : > { %2642 = vrot.lane.b32.xlu1 %v3594_v31, %s4082_s9  ;;  %v3598_v45 = vpop.eup %3597  ;;  %3623 = vpow2.f32 %v3129_v26  ;;  %v2361_v58 = vadd.f32 1.0, %v3596_v16 }
 0x379   : > { %v3600_v60 = vpop.eup %3599  ;;  %3625 = vrcp.f32 %v2356_v23 }
 0x37a   : > { %2648 = vrot.lane.b32.xlu0 %v3598_v45, %s4082_s9  ;;  %v3602_v48 = vpop.eup %3601  ;;  %3627 = vrcp.f32 %v2359_v39  ;;  %v2360_v53 = vadd.f32 1.0, %v3600_v60 }
 0x37b   : > { %v3604_v10 = vpop.eup %3603  ;;  %3629 = vpow2.f32 %v3132_v18 }
 0x37c   : > { %2646 = vrot.lane.b32.xlu1 %v3602_v48, %s4082_s9  ;;  %v3606_v15 = vpop.eup %3605  ;;  %3631 = vrcp.f32 %v2358_v49  ;;  %v2363_v44 = vadd.f32 1.0, %v3604_v10 }
 0x37d   : > { %v3608_v19 = vpop.eup %3607  ;;  %3633 = vpow2.f32 %v3131_v29 }
 0x37e   : > { %2652 = vrot.lane.b32.xlu0 %v3606_v15, %s4082_s9  ;;  %v3610_v1 = vpop.eup %3609  ;;  %3635 = vrcp.f32 %v2361_v58  ;;  %v2362_v51 = vadd.f32 1.0, %v3608_v19 }
 0x37f   : > { %v3612_v52 = vpop.eup %3611  ;;  %3637 = vpow2.f32 %v3134_v43 }
 0x380   : > { %2650 = vrot.lane.b32.xlu1 %v3610_v1, %s4082_s9  ;;  %v3614_v12 = vpop.eup %3613  ;;  %3639 = vrcp.f32 %v2360_v53  ;;  %v2365_v32 = vadd.f32 1.0, %v3612_v52  ;;  %v5747_v52 = vpop.permute.xlu0 %2472 }
 0x381   : > { %v3616_v38 = vpop.eup %3615  ;;  %3641 = vpow2.f32 %v3133_v61 }
 0x382   : > { %2656 = vrot.lane.b32.xlu0 %v3614_v12, %s4082_s9  ;;  %v3618_v56 = vpop.eup %3617  ;;  %3643 = vrcp.f32 %v2363_v44  ;;  %v2364_v26 = vadd.f32 1.0, %v3616_v38  ;;  %v5750_v12 = vpop.permute.xlu1 %2470 }
 0x383   : > { %v3620_v11 = vpop.eup %3619  ;;  %3645 = vpow2.f32 %v3136_v30 }
 0x384   : > { %2654 = vrot.lane.b32.xlu1 %v3618_v56, %s4082_s9  ;;  %v3622_v55 = vpop.eup %3621  ;;  %3647 = vrcp.f32 %v2362_v51  ;;  %v2367_v23 = vadd.f32 1.0, %v3620_v11  ;;  %v5753_v38 = vpop.permute.xlu0 %2476 }
 0x385   : > { %v3624_v3 = vpop.eup %3623  ;;  %3649 = vpow2.f32 %v3135_v62 }
 0x386   : > { %2660 = vrot.lane.b32.xlu0 %v3622_v55, %s4082_s9  ;;  %v3626_v2 = vpop.eup %3625  ;;  %3651 = vrcp.f32 %v2365_v32  ;;  %v2366_v16 = vadd.f32 1.0, %v3624_v3  ;;  %v5756_v56 = vpop.permute.xlu1 %2474 }
 0x387   : > { %v3628_v20 = vpop.eup %3627  ;;  %3653 = vrcp.f32 %v2364_v26 }
 0x388   : > { %2658 = vrot.lane.b32.xlu1 %v3626_v2, %s4082_s9  ;;  %v3630_v31 = vpop.eup %3629  ;;  %3655 = vrcp.f32 %v2367_v23  ;;  %v5759_v32 = vpop.permute.xlu0 %2480 }
 0x389   : > { %v3632_v39 = vpop.eup %3631  ;;  %v2369_v45 = vadd.f32 1.0, %v3630_v31  ;;  %3657 = vrcp.f32 %v2366_v16  ;;  %v3074_v16 = vmul.f32 -1.442695, %v5358_v9  ;;  %v3078_v9 = vmul.f32 -1.442695, %v5445_v47 }
 0x38a   : > { %2664 = vrot.lane.b32.xlu0 %v3628_v20, %s4082_s9  ;;  %v3634_v18 = vpop.eup %3633  ;;  %v5762_v3 = vpop.permute.xlu1 %2478  ;;  %v3079_v47 = vmul.f32 -1.442695, %v5484_v63 }
 0x38b   : > { %v3636_v4 = vpop.eup %3635  ;;  %v2368_v29 = vadd.f32 1.0, %v3634_v18  ;;  %3659 = vrcp.f32 %v2369_v45 }
 0x38c   : > { %2662 = vrot.lane.b32.xlu1 %v3632_v39, %s4082_s9  ;;  %v3638_v49 = vpop.eup %3637  ;;  %v5765_v2 = vpop.permute.xlu0 %2484 }
 0x38d   : > { %v3640_v60 = vpop.eup %3639  ;;  %v2371_v58 = vadd.f32 1.0, %v3638_v49  ;;  %3661 = vrcp.f32 %v2368_v29 }
 0x38e   : > { %2668 = vrot.lane.b32.xlu0 %v3636_v4, %s4082_s9  ;;  %v3642_v27 = vpop.eup %3641  ;;  %v5768_v20 = vpop.permute.xlu1 %2482  ;;  %v3073_v4 = vmul.f32 -1.442695, %v5370_v13  ;;  %v3077_v13 = vmul.f32 -1.442695, %v5448_v41 }
 0x38f   : > { %v3644_v48 = vpop.eup %3643  ;;  %v2370_v7 = vadd.f32 1.0, %v3642_v27  ;;  %3663 = vrcp.f32 %v2371_v58  ;;  %v3075_v27 = vmul.f32 -1.442695, %v5412_v0  ;;  %v3090_v0 = vmul.f32 -1.442695, %v5381_v33 }
 0x390   : > { %2666 = vrot.lane.b32.xlu1 %v3640_v60, %s4082_s9  ;;  %v3646_v10 = vpop.eup %3645  ;;  %v5770_v23 = vpop.permute.xlu0 %2488  ;;  %v3076_v60 = vmul.f32 -1.442695, %v5406_v22  ;;  %v3081_v33 = vmul.f32 -1.442695, %v5520_v50 }
 0x391   : > { %v3648_v43 = vpop.eup %3647  ;;  %v2373_v53 = vadd.f32 1.0, %v3646_v10  ;;  %3665 = vrcp.f32 %v2370_v7 }
 0x392   : > { %2672 = vrot.lane.b32.xlu0 %v3644_v48, %s4082_s9  ;;  %v3650_v15 = vpop.eup %3649  ;;  %v5772_v31 = vpop.permute.xlu1 %2486 }
 0x393   : > { %v3652_v19 = vpop.eup %3651  ;;  %v2372_v61 = vadd.f32 1.0, %v3650_v15  ;;  %3667 = vrcp.f32 %v2373_v53  ;;  %v3089_v53 = vmul.f32 -1.442695, %v5384_v36  ;;  %v3084_v36 = vmul.f32 -1.442695, %v5559_v40 }
 0x394   : > { %2670 = vrot.lane.b32.xlu1 %v3648_v43, %s4082_s9  ;;  %v3654_v35 = vpop.eup %3653  ;;  %v5774_v39 = vpop.permute.xlu0 %2492  ;;  %v3080_v43 = vmul.f32 -1.442695, %v5478_v46 }
 0x395   : > { %v3656_v1 = vpop.eup %3655  ;;  %3669 = vrcp.f32 %v2372_v61  ;;  %v3082_v61 = vmul.f32 -1.442695, %v5510_v24 }
 0x396   : > { %2676 = vrot.lane.b32.xlu0 %v3652_v19, %s4082_s9  ;;  %v3658_v44 = vpop.eup %3657  ;;  %v5777_v18 = vpop.permute.xlu1 %2490  ;;  %3671 = vpow2.f32 %v3074_v16 }
 0x397   : > { %3673 = vpow2.f32 %v3073_v4 }
 0x398   : > { %2674 = vrot.lane.b32.xlu1 %v3654_v35, %s4082_s9  ;;  %v3660_v30 = vpop.eup %3659  ;;  %3675 = vpow2.f32 %v3076_v60 }
 0x399   : > { %3677 = vpow2.f32 %v3075_v27 }
 0x39a   : > { %2680 = vrot.lane.b32.xlu0 %v3656_v1, %s4082_s9  ;;  %v3662_v51 = vpop.eup %3661  ;;  %3679 = vpow2.f32 %v3078_v9  ;;  %v3088_v9 = vmul.f32 -1.442695, %v5692_v59 }
 0x39b   : > { %3681 = vpow2.f32 %v3077_v13 }
 0x39c   : > { %2678 = vrot.lane.b32.xlu1 %v3658_v44, %s4082_s9  ;;  %v3664_v62 = vpop.eup %3663  ;;  %3683 = vpow2.f32 %v3080_v43 }
 0x39d   : > { %3685 = vpow2.f32 %v3090_v0  ;;  %v3087_v0 = vmul.f32 -1.442695, %v5702_v34 }
 0x39e   : > { %2684 = vrot.lane.b32.xlu0 %v3660_v30, %s4082_s9  ;;  %v3666_v11 = vpop.eup %3665  ;;  %3687 = vpow2.f32 %v3079_v47  ;;  %v3092_v30 = vmul.f32 -1.442695, %v5417_v5  ;;  %v3085_v5 = vmul.f32 -1.442695, %v5636_v17 }
 0x39f   : > { %3689 = vpow2.f32 %v3089_v53 }
 0x3a0   : > { %2682 = vrot.lane.b32.xlu1 %v3662_v51, %s4082_s9  ;;  %v3668_v55 = vpop.eup %3667  ;;  %3691 = vpow2.f32 %v3082_v61  ;;  %v3091_v61 = vmul.f32 -1.442695, %v5420_v6 }
 0x3a2   : > { %2688 = vrot.lane.b32.xlu0 %v3664_v62, %s4082_s9  ;;  %v3670_v26 = vpop.eup %3669  ;;  %v3083_v62 = vmul.f32 -1.442695, %v5563_v14 }
 0x3a3   : > { %v3672_v15 = vpop.eup %3671 }
 0x3a4   : > { %2686 = vrot.lane.b32.xlu1 %v3666_v11, %s4082_s9  ;;  %v5780_v45 = vpop.permute.xlu0 %2496  ;;  %v3674_v41 = vpop.eup %3673  ;;  %v2111_v35 = vadd.f32 1.0, %v3672_v15 }
 0x3a5   : > { %v2110_v1 = vadd.f32 1.0, %v3674_v41  ;;  %v3676_v63 = vpop.eup %3675 }
 0x3a6   : > { %2692 = vrot.lane.b32.xlu0 %v3668_v55, %s4082_s9  ;;  %v5782_v49 = vpop.permute.xlu1 %2494  ;;  %3693 = vrcp.f32 %v2111_v35  ;;  %v3678_v24 = vpop.eup %3677  ;;  %v2113_v11 = vadd.f32 1.0, %v3676_v63 }
 0x3a7   : > { %3695 = vpow2.f32 %v3081_v33  ;;  %v3680_v55 = vpop.eup %3679  ;;  %v2112_v16 = vadd.f32 1.0, %v3678_v24 }
 0x3a8   : > { %2690 = vrot.lane.b32.xlu1 %v3670_v26, %s4082_s9  ;;  %3697 = vrcp.f32 %v2110_v1  ;;  %v3086_v26 = vmul.f32 -1.442695, %v5628_v8  ;;  %v3682_v4 = vpop.eup %3681  ;;  %v2115_v60 = vadd.f32 1.0, %v3680_v55 }
 0x3a9   : > { %3699 = vpow2.f32 %v3084_v36  ;;  %v3684_v14 = vpop.eup %3683  ;;  %v2114_v13 = vadd.f32 1.0, %v3682_v4  ;;  %v3094_v4 = vmul.f32 -1.442695, %v5452_v37 }
 0x3aa   : > { %3701 = vpow2.f32 %v3092_v30  ;;  %v3686_v8 = vpop.eup %3685  ;;  %v2117_v47 = vadd.f32 1.0, %v3684_v14 }
 0x3ab   : > { %3703 = vpow2.f32 %v3083_v62  ;;  %v3688_v15 = vpop.eup %3687  ;;  %v2127_v63 = vadd.f32 1.0, %v3686_v8 }
 0x3ac   : > { %3705 = vrcp.f32 %v2113_v11  ;;  %v3690_v53 = vpop.eup %3689  ;;  %v2116_v33 = vadd.f32 1.0, %v3688_v15  ;;  %v6129_v15 = vld [vmem:[#allocation27_spill] sm:$0xff] }
 0x3ad   : > { %3707 = vpow2.f32 %v3086_v26  ;;  %v3692_v41 = vpop.eup %3691  ;;  %v2126_v62 = vadd.f32 1.0, %v3690_v53 }
 0x3ae   : > { %3709 = vrcp.f32 %v2112_v16  ;;  %v2119_v30 = vadd.f32 1.0, %v3692_v41 }
 0x3af   : > { %3711 = vpow2.f32 %v3085_v5 }
 0x3b0   : > { %3713 = vrcp.f32 %v2115_v60 }
 0x3b1   : > { %3715 = vpow2.f32 %v3088_v9 }
 0x3b2   : > { %3717 = vrcp.f32 %v2114_v13 }
 0x3b3   : > { %v3694_v35 = vpop.eup %3693  ;;  %3719 = vpow2.f32 %v3087_v0 }
 0x3b4   : > { %v3696_v1 = vpop.eup %3695  ;;  %3721 = vrcp.f32 %v2117_v47  ;;  %v2567_v6 = vadd.f32 %v3694_v35, %v5747_v52  ;;  %v3093_v47 = vmul.f32 -1.442695, %v6129_v15 }
 0x3b5   : > { %v3698_v36 = vpop.eup %3697  ;;  %3723 = vpow2.f32 %v3091_v61  ;;  %v2118_v26 = vadd.f32 1.0, %v3696_v1  ;;  %v3799_v61 = vld [vmem:[#allocation2 + $0x8] sm:$0xff] }
 0x3b6   : > { %v3700_v24 = vpop.eup %3699  ;;  %3725 = vrcp.f32 %v2116_v33  ;;  %v2566_v14 = vadd.f32 %v3698_v36, %v5750_v12  ;;  %v6130_v1 = vld [vmem:[#allocation28_spill] sm:$0xff] }
 0x3b7   : > { %v5838_v55 = vpop.eup %3701  ;;  %3727 = vrcp.f32 %v2127_v63  ;;  %v2121_v9 = vadd.f32 1.0, %v3700_v24  ;;  %v3096_v63 = vmul.f32 -1.442695, %v6130_v1  ;;  %v3800_v24 = vld [vmem:[#allocation2] sm:$0xff] }
 0x3b8   : > { %v5785_v29 = vpop.permute.xlu0 %2500  ;;  %v3704_v16 = vpop.eup %3703  ;;  %3729 = vrcp.f32 %v2119_v30 }
 0x3b9   : > { %v3706_v60 = vpop.eup %3705  ;;  %3731 = vrcp.f32 %v2126_v62  ;;  %v2120_v41 = vadd.f32 1.0, %v3704_v16  ;;  %v6131_v16 = vld [vmem:[#allocation29_spill] sm:$0xff] }
 0x3ba   : > { %v5788_v48 = vpop.permute.xlu1 %2498  ;;  %v3708_v8 = vpop.eup %3707  ;;  %v2569_v0 = vadd.f32 %v3706_v60, %v5753_v38  ;;  %3733 = vrcp.f32 %v2118_v26 }
 0x3bb   : > { %v3710_v53 = vpop.eup %3709  ;;  %3735 = vpow2.f32 %v3094_v4  ;;  %v2123_v38 = vadd.f32 1.0, %v3708_v8  ;;  %v3095_v4 = vmul.f32 -1.442695, %v6131_v16 }
 0x3bc   : > { %v5791_v58 = vpop.permute.xlu0 %2504  ;;  %v3712_v33 = vpop.eup %3711  ;;  %v2568_v12 = vadd.f32 %v3710_v53, %v5756_v56  ;;  %3737 = vrcp.f32 %v2121_v9  ;;  %v3801_v9 = vld [vmem:[#allocation2 + $0x18] sm:$0xff] }
 0x3bd   : > { %v3714_v30 = vpop.eup %3713  ;;  %3739 = vpow2.f32 %v3093_v47 }
 0x3be   : > { %v5794_v10 = vpop.permute.xlu1 %2502  ;;  %v3716_v26 = vpop.eup %3715  ;;  %v2571_v56 = vadd.f32 %v3714_v30, %v5759_v32  ;;  %3741 = vrcp.f32 %v2120_v41  ;;  %v3802_v41 = vld [vmem:[#allocation2 + $0x10] sm:$0xff]  ;;  %v3803_v30 = vld [vmem:[#allocation2 + $0x28] sm:$0xff] }
 0x3bf   : > { %v3718_v60 = vpop.eup %3717  ;;  %3743 = vpow2.f32 %v3096_v63 }
 0x3c0   : > { %v5797_v22 = vpop.permute.xlu0 %2508  ;;  %v3720_v15 = vpop.eup %3719  ;;  %3745 = vrcp.f32 %v2123_v38 }
 0x3c1   : > { %v3722_v47 = vpop.eup %3721  ;;  %3747 = vpow2.f32 %v3095_v4  ;;  %v2124_v63 = vadd.f32 1.0, %v3720_v15  ;;  %v3804_v4 = vld [vmem:[#allocation2 + $0x20] sm:$0xff] }
 0x3c2   : > { %v5800_v7 = vpop.permute.xlu1 %2506 }
 0x3c4   : > { %v5804_v19 = vpop.permute.xlu0 %2512 }
 0x3c6   : > { %v5807_v46 = vpop.permute.xlu1 %2510 }
 0x3c8   : > { %v5810_v44 = vpop.permute.xlu0 %2516 }
 0x3ca   : > { %v5814_v51 = vpop.permute.xlu1 %2514 }
 0x3cc   : > { %v5817_v50 = vpop.permute.xlu0 %2520 }
 0x3ce   : > { %v5820_v40 = vpop.permute.xlu1 %2518 }
 0x3d0   : > { %v5823_v27 = vpop.permute.xlu0 %2524 }
 0x3d2   : > { %v5826_v43 = vpop.permute.xlu1 %2522 }
 0x3d4   : > { %v5829_v17 = vpop.permute.xlu0 %2528 }
 0x3d6   : > { %v5832_v59 = vpop.permute.xlu1 %2526 }
 0x3d8   : > { %v5834_v34 = vpop.permute.xlu0 %2532 }
 0x3da   : > { %v5836_v11 = vpop.permute.xlu1 %2530 }
 0x3dc   : > { %v2633_v5 = vpop.permute.xlu0 %2632 }
 0x3dd   : > { %v2727_v13 = vadd.f32 %v2633_v5, %v2567_v6 }
 0x3de   : > { %v2631_v52 = vpop.permute.xlu1 %2630 }
 0x3df   : > { %v2759_v37 = vmul.f32 %v3799_v61, %v2727_v13  ;;  %v2726_v35 = vadd.f32 %v2631_v52, %v2566_v14  ;;  %v2122_v14 = vadd.f32 1.0, %v3712_v33  ;;  %v2570_v52 = vadd.f32 %v3718_v60, %v5762_v3  ;;  %v3724_v3 = vpop.eup %3723 }
 0x3e0   : > { %v2637_v36 = vpop.permute.xlu0 %2636  ;;  %v2125_v61 = vadd.f32 1.0, %v3716_v26  ;;  %v2573_v33 = vadd.f32 %v3722_v47, %v5765_v2  ;;  %v3100_v26 = vmul.f32 -1.442695, %v5566_v57 }
 0x3e1   : > { %2791 = vst.msk [vmem:[%s5849_s8 + $0x8] sm:$0xff] %vm451_vm0, %v2759_v37  ;;  %v2758_v62 = vmul.f32 %v3800_v24, %v2726_v35  ;;  %v2729_v6 = vadd.f32 %v2637_v36, %v2569_v0  ;;  %v6132_v0 = vld [vmem:[#allocation30_spill] sm:$0xff]  ;;  %3749 = vrcp.f32 %v2122_v14 }
 0x3e2   : > { %v2635_v5 = vpop.permute.xlu1 %2634  ;;  %v3098_v53 = vmul.f32 -1.442695, %v6132_v0 }
 0x3e3   : > { %2790 = vst.msk [vmem:[%s5849_s8] sm:$0xff] %vm451_vm0, %v2758_v62  ;;  %v2761_v13 = vmul.f32 %v3801_v9, %v2729_v6  ;;  %v2728_v8 = vadd.f32 %v2635_v5, %v2568_v12  ;;  %v6133_v12 = vld [vmem:[#allocation31_spill] sm:$0xff]  ;;  %v3726_v62 = vpop.eup %3725  ;;  %v2129_v6 = vadd.f32 1.0, %v5838_v55  ;;  %v2128_v9 = vadd.f32 1.0, %v3724_v3 }
 0x3e4   : > { %v2641_v32 = vpop.permute.xlu0 %2640  ;;  %v3097_v1 = vmul.f32 -1.442695, %v6133_v12  ;;  %3751 = vpow2.f32 %v3098_v53  ;;  %v2572_v16 = vadd.f32 %v3726_v62, %v5768_v20  ;;  %v3099_v55 = vmul.f32 -1.442695, %v5572_v25  ;;  %v3805_v20 = vld [vmem:[#allocation2 + $0x38] sm:$0xff]  ;;  %v3808_v62 = vld [vmem:[#allocation2 + $0x40] sm:$0xff] }
 0x3e5   : > { %2793 = vst.msk [vmem:[%s5849_s8 + $0x18] sm:$0xff] %vm451_vm0, %v2761_v13  ;;  %v2760_v37 = vmul.f32 %v3802_v41, %v2728_v8  ;;  %v2731_v35 = vadd.f32 %v2641_v32, %v2571_v56  ;;  %v5867_v56 = vpop.eup %3727  ;;  %3753 = vrcp.f32 %v2125_v61  ;;  %v3102_v53 = vmul.f32 -1.442695, %v5646_v42  ;;  %v3806_v61 = vld [vmem:[#allocation2 + $0x30] sm:$0xff] }
 0x3e6   : > { %v2639_v36 = vpop.permute.xlu1 %2638  ;;  %v3730_v14 = vpop.eup %3729  ;;  %3755 = vpow2.f32 %v3097_v1  ;;  %v3807_v1 = vld [vmem:[#allocation2 + $0x48] sm:$0xff] }
 0x3e7   : > { %2792 = vst.msk [vmem:[%s5849_s8 + $0x10] sm:$0xff] %vm451_vm0, %v2760_v37  ;;  %v2763_v38 = vmul.f32 %v3803_v30, %v2731_v35  ;;  %v2730_v24 = vadd.f32 %v2639_v36, %v2570_v52  ;;  %v5873_v57 = vpop.eup %3731  ;;  %v2575_v8 = vadd.f32 %v3730_v14, %v5770_v23  ;;  %3757 = vrcp.f32 %v2124_v63 }
 0x3e8   : > { %v2645_v2 = vpop.permute.xlu0 %2644  ;;  %v3734_v0 = vpop.eup %3733  ;;  %3759 = vrcp.f32 %v2129_v6  ;;  %v3101_v35 = vmul.f32 -1.442695, %v5660_v21  ;;  %v3104_v21 = vmul.f32 -1.442695, %v5710_v54 }
 0x3e9   : > { %2795 = vst.msk [vmem:[%s5849_s8 + $0x28] sm:$0xff] %vm451_vm0, %v2763_v38  ;;  %v2762_v5 = vmul.f32 %v3804_v4, %v2730_v24  ;;  %v2733_v60 = vadd.f32 %v2645_v2, %v2573_v33  ;;  %v3736_v47 = vpop.eup %3735  ;;  %v2574_v25 = vadd.f32 %v3734_v0, %v5772_v31  ;;  %3761 = vpow2.f32 %v3100_v26 }
 0x3ea   : > { %v2643_v13 = vpop.permute.xlu1 %2642  ;;  %v3738_v37 = vpop.eup %3737  ;;  %3763 = vrcp.f32 %v2128_v9  ;;  %v2131_v63 = vadd.f32 1.0, %v3736_v47 }
 0x3eb   : > { %2794 = vst.msk [vmem:[%s5849_s8 + $0x20] sm:$0xff] %vm451_vm0, %v2762_v5  ;;  %v2765_v15 = vmul.f32 %v3805_v20, %v2733_v60  ;;  %v2732_v52 = vadd.f32 %v2643_v13, %v2572_v16  ;;  %v3740_v12 = vpop.eup %3739  ;;  %v2577_v42 = vadd.f32 %v3738_v37, %v5774_v39  ;;  %3765 = vpow2.f32 %v3099_v55 }
 0x3ec   : > { %v2649_v32 = vpop.permute.xlu0 %2648  ;;  %v3742_v3 = vpop.eup %3741  ;;  %3767 = vpow2.f32 %v3102_v53  ;;  %v2130_v2 = vadd.f32 1.0, %v3740_v12  ;;  %v3103_v60 = vmul.f32 -1.442695, %v5716_v28  ;;  %v3812_v12 = vld [vmem:[#allocation2 + $0x60] sm:$0xff] }
 0x3ed   : > { %2797 = vst.msk [vmem:[%s5849_s8 + $0x38] sm:$0xff] %vm451_vm0, %v2765_v15  ;;  %v2764_v23 = vmul.f32 %v3806_v61, %v2732_v52  ;;  %v2735_v41 = vadd.f32 %v2649_v32, %v2575_v8  ;;  %v3744_v38 = vpop.eup %3743  ;;  %v2576_v24 = vadd.f32 %v3742_v3, %v5777_v18  ;;  %3769 = vpow2.f32 %v3101_v35  ;;  %v3809_v18 = vld [vmem:[#allocation2 + $0x58] sm:$0xff]  ;;  %v3810_v15 = vld [vmem:[#allocation2 + $0x50] sm:$0xff] }
 0x3ee   : > { %v2647_v33 = vpop.permute.xlu1 %2646  ;;  %v3746_v26 = vpop.eup %3745  ;;  %3771 = vrcp.f32 %v2131_v63  ;;  %v2133_v55 = vadd.f32 1.0, %v3744_v38  ;;  %v2583_v63 = vadd.f32 %v5867_v56, %v5791_v58 }
 0x3ef   : > { %2796 = vst.msk [vmem:[%s5849_s8 + $0x30] sm:$0xff] %vm451_vm0, %v2764_v23  ;;  %v2767_v31 = vmul.f32 %v3807_v1, %v2735_v41  ;;  %v2734_v36 = vadd.f32 %v2647_v33, %v2574_v25  ;;  %v3748_v4 = vpop.eup %3747  ;;  %v2579_v5 = vadd.f32 %v3746_v26, %v5780_v45  ;;  %3773 = vpow2.f32 %v3104_v21  ;;  %v3811_v25 = vld [vmem:[#allocation2 + $0x68] sm:$0xff]  ;;  %v3814_v26 = vld [vmem:[#allocation2 + $0x70] sm:$0xff] }
 0x3f0   : > { %v2653_v30 = vpop.permute.xlu0 %2652  ;;  %v3750_v9 = vpop.eup %3749  ;;  %3775 = vrcp.f32 %v2130_v2  ;;  %v2132_v0 = vadd.f32 1.0, %v3748_v4 }
 0x3f1   : > { %2799 = vst.msk [vmem:[%s5849_s8 + $0x48] sm:$0xff] %vm451_vm0, %v2767_v31  ;;  %v2766_v39 = vmul.f32 %v3808_v62, %v2734_v36  ;;  %v2737_v6 = vadd.f32 %v2653_v30, %v2577_v42  ;;  %v3752_v8 = vpop.eup %3751  ;;  %v2578_v20 = vadd.f32 %v3750_v9, %v5782_v49  ;;  %3777 = vpow2.f32 %v3103_v60  ;;  %v3813_v30 = vld [vmem:[#allocation2 + $0x78] sm:$0xff]  ;;  %v3815_v60 = vld [vmem:[#allocation2 + $0x88] sm:$0xff] }
 0x3f2   : > { %v2651_v16 = vpop.permute.xlu1 %2650  ;;  %v3754_v28 = vpop.eup %3753  ;;  %v2135_v41 = vadd.f32 1.0, %v3752_v8  ;;  %3779 = vrcp.f32 %v2133_v55  ;;  %v3816_v55 = vld [vmem:[#allocation2 + $0x80] sm:$0xff] }
 0x3f3   : > { %2798 = vst.msk [vmem:[%s5849_s8 + $0x40] sm:$0xff] %vm451_vm0, %v2766_v39  ;;  %v2769_v14 = vmul.f32 %v3809_v18, %v2737_v6  ;;  %v2736_v54 = vadd.f32 %v2651_v16, %v2576_v24  ;;  %v3756_v32 = vpop.eup %3755  ;;  %v2581_v47 = vadd.f32 %v3754_v28, %v5785_v29  ;;  %3781 = vrcp.f32 %v2132_v0  ;;  %v3817_v28 = vld [vmem:[#allocation2 + $0x98] sm:$0xff] }
 0x3f4   : > { %v2657_v13 = vpop.permute.xlu0 %2656  ;;  %v3758_v23 = vpop.eup %3757  ;;  %v2134_v31 = vadd.f32 1.0, %v3756_v32  ;;  %3783 = vrcp.f32 %v2135_v41  ;;  %v2582_v39 = vadd.f32 %v5873_v57, %v5794_v10 }
 0x3f5   : > { %2801 = vst.msk [vmem:[%s5849_s8 + $0x58] sm:$0xff] %vm451_vm0, %v2769_v14  ;;  %v2768_v45 = vmul.f32 %v3810_v15, %v2736_v54  ;;  %v2739_v52 = vadd.f32 %v2657_v13, %v2579_v5  ;;  %v3760_v35 = vpop.eup %3759  ;;  %v2580_v33 = vadd.f32 %v3758_v23, %v5788_v48 }
 0x3f6   : > { %v2655_v53 = vpop.permute.xlu1 %2654  ;;  %v3762_v29 = vpop.eup %3761  ;;  %3785 = vrcp.f32 %v2134_v31  ;;  %v2585_v4 = vadd.f32 %v3760_v35, %v5797_v22 }
 0x3f7   : > { %2800 = vst.msk [vmem:[%s5849_s8 + $0x50] sm:$0xff] %vm451_vm0, %v2768_v45  ;;  %v2771_v61 = vmul.f32 %v3811_v25, %v2739_v52  ;;  %v2738_v49 = vadd.f32 %v2655_v53, %v2578_v20  ;;  %v3764_v3 = vpop.eup %3763  ;;  %v2137_v6 = vadd.f32 1.0, %v3762_v29 }
 0x3f8   : > { %v2661_v37 = vpop.permute.xlu0 %2660  ;;  %v3766_v24 = vpop.eup %3765  ;;  %v2584_v9 = vadd.f32 %v3764_v3, %v5800_v7 }
 0x3f9   : > { %2803 = vst.msk [vmem:[%s5849_s8 + $0x68] sm:$0xff] %vm451_vm0, %v2771_v61  ;;  %v2770_v42 = vmul.f32 %v3812_v12, %v2738_v49  ;;  %v2741_v1 = vadd.f32 %v2661_v37, %v2581_v47  ;;  %v3768_v62 = vpop.eup %3767  ;;  %v2136_v5 = vadd.f32 1.0, %v3766_v24  ;;  %3787 = vrcp.f32 %v2137_v6  ;;  %v3818_v61 = vld [vmem:[#allocation2 + $0x90] sm:$0xff] }
 0x3fa   : > { %v2659_v36 = vpop.permute.xlu1 %2658  ;;  %v3770_v16 = vpop.eup %3769  ;;  %v2139_v10 = vadd.f32 1.0, %v3768_v62 }
 0x3fb   : > { %2802 = vst.msk [vmem:[%s5849_s8 + $0x60] sm:$0xff] %vm451_vm0, %v2770_v42  ;;  %v2773_v38 = vmul.f32 %v3813_v30, %v2741_v1  ;;  %v2740_v48 = vadd.f32 %v2659_v36, %v2580_v33  ;;  %v3772_v54 = vpop.eup %3771  ;;  %v2138_v20 = vadd.f32 1.0, %v3770_v16  ;;  %3789 = vrcp.f32 %v2136_v5  ;;  %v3819_v33 = vld [vmem:[#allocation2 + $0xa8] sm:$0xff]  ;;  %v3820_v36 = vld [vmem:[#allocation2 + $0xa0] sm:$0xff] }
 0x3fc   : > { %v2665_v21 = vpop.permute.xlu0 %2664  ;;  %v3774_v22 = vpop.eup %3773  ;;  %v2587_v52 = vadd.f32 %v3772_v54, %v5804_v19  ;;  %3791 = vrcp.f32 %v2139_v10 }
 0x3fd   : > { %2805 = vst.msk [vmem:[%s5849_s8 + $0x78] sm:$0xff] %vm451_vm0, %v2773_v38  ;;  %v2772_v2 = vmul.f32 %v3814_v26, %v2740_v48  ;;  %v2743_v58 = vadd.f32 %v2665_v21, %v2583_v63  ;;  %v3776_v45 = vpop.eup %3775  ;;  %v2141_v25 = vadd.f32 1.0, %v3774_v22  ;;  %3793 = vrcp.f32 %v2138_v20  ;;  %v3821_v48 = vld [vmem:[#allocation2 + $0xb8] sm:$0xff]  ;;  %v3826_v20 = vld [vmem:[#allocation2 + $0xd0] sm:$0xff] }
 0x3fe   : > { %v2663_v56 = vpop.permute.xlu1 %2662  ;;  %v3778_v53 = vpop.eup %3777  ;;  %v2586_v47 = vadd.f32 %v3776_v45, %v5807_v46 }
 0x3ff   : > { %2804 = vst.msk [vmem:[%s5849_s8 + $0x70] sm:$0xff] %vm451_vm0, %v2772_v2  ;;  %v2775_v18 = vmul.f32 %v3815_v60, %v2743_v58  ;;  %v2742_v14 = vadd.f32 %v2663_v56, %v2582_v39  ;;  %v3780_v19 = vpop.eup %3779  ;;  %v2140_v35 = vadd.f32 1.0, %v3778_v53  ;;  %3795 = vrcp.f32 %v2141_v25  ;;  %v3822_v39 = vld [vmem:[#allocation2 + $0xb0] sm:$0xff]  ;;  %v3828_v25 = vld [vmem:[#allocation2 + $0xe0] sm:$0xff] }
 0x400   : > { %v2669_v57 = vpop.permute.xlu0 %2668  ;;  %v2589_v37 = vadd.f32 %v3780_v19, %v5810_v44  ;;  %v3782_v46 = vpop.eup %3781 }
 0x401   : > { %2807 = vst.msk [vmem:[%s5849_s8 + $0x88] sm:$0xff] %vm451_vm0, %v2775_v18  ;;  %v2774_v13 = vmul.f32 %v3816_v55, %v2742_v14  ;;  %v2745_v8 = vadd.f32 %v2669_v57, %v2585_v4  ;;  %v3784_v29 = vpop.eup %3783  ;;  %v2588_v31 = vadd.f32 %v3782_v46, %v5814_v51  ;;  %3797 = vrcp.f32 %v2140_v35  ;;  %v3824_v14 = vld [vmem:[#allocation2 + $0xc0] sm:$0xff]  ;;  %v3825_v55 = vld [vmem:[#allocation2 + $0xd8] sm:$0xff] }
 0x402   : > { %v2667_v15 = vpop.permute.xlu1 %2666  ;;  %v2591_v38 = vadd.f32 %v3784_v29, %v5817_v50  ;;  %v3823_v50 = vld [vmem:[#allocation2 + $0xc8] sm:$0xff] }
 0x403   : > { %2806 = vst.msk [vmem:[%s5849_s8 + $0x80] sm:$0xff] %vm451_vm0, %v2774_v13  ;;  %v2777_v0 = vmul.f32 %v3817_v28, %v2745_v8  ;;  %v2744_v7 = vadd.f32 %v2667_v15, %v2584_v9  ;;  %v3786_v30 = vpop.eup %3785 }
 0x404   : > { %v2673_v32 = vpop.permute.xlu0 %2672  ;;  %v2590_v51 = vadd.f32 %v3786_v30, %v5820_v40 }
 0x405   : > { %2809 = vst.msk [vmem:[%s5849_s8 + $0x98] sm:$0xff] %vm451_vm0, %v2777_v0  ;;  %v2776_v49 = vmul.f32 %v3818_v61, %v2744_v7  ;;  %v2747_v23 = vadd.f32 %v2673_v32, %v2587_v52  ;;  %v3827_v0 = vld [vmem:[#allocation2 + $0xe8] sm:$0xff] }
 0x406   : > { %v2671_v41 = vpop.permute.xlu1 %2670  ;;  %v3788_v2 = vpop.eup %3787 }
 0x407   : > { %2808 = vst.msk [vmem:[%s5849_s8 + $0x90] sm:$0xff] %vm451_vm0, %v2776_v49  ;;  %v2779_v12 = vmul.f32 %v3819_v33, %v2747_v23  ;;  %v2746_v42 = vadd.f32 %v2671_v41, %v2586_v47  ;;  %v2593_v56 = vadd.f32 %v3788_v2, %v5823_v27  ;;  %v3829_v23 = vld [vmem:[#allocation2 + $0xf8] sm:$0xff] }
 0x408   : > { %v2677_v1 = vpop.permute.xlu0 %2676  ;;  %v3790_v5 = vpop.eup %3789 }
 0x409   : > { %2811 = vst.msk [vmem:[%s5849_s8 + $0xa8] sm:$0xff] %vm451_vm0, %v2779_v12  ;;  %v2778_v3 = vmul.f32 %v3820_v36, %v2746_v42  ;;  %v2749_v63 = vadd.f32 %v2677_v1, %v2589_v37  ;;  %v3792_v40 = vpop.eup %3791  ;;  %v2592_v18 = vadd.f32 %v3790_v5, %v5826_v43 }
 0x40a   : > { %v2675_v44 = vpop.permute.xlu1 %2674  ;;  %v3794_v54 = vpop.eup %3793  ;;  %v2595_v9 = vadd.f32 %v3792_v40, %v5829_v17 }
 0x40b   : > { %2810 = vst.msk [vmem:[%s5849_s8 + $0xa0] sm:$0xff] %vm451_vm0, %v2778_v3  ;;  %v2781_v24 = vmul.f32 %v3821_v48, %v2749_v63  ;;  %v2748_v21 = vadd.f32 %v2675_v44, %v2588_v31  ;;  %v2594_v43 = vadd.f32 %v3794_v54, %v5832_v59 }
 0x40c   : > { %v2681_v62 = vpop.permute.xlu0 %2680  ;;  %v3796_v52 = vpop.eup %3795 }
 0x40d   : > { %2813 = vst.msk [vmem:[%s5849_s8 + $0xb8] sm:$0xff] %vm451_vm0, %v2781_v24  ;;  %v2780_v6 = vmul.f32 %v3822_v39, %v2748_v21  ;;  %v2751_v26 = vadd.f32 %v2681_v62, %v2591_v38  ;;  %v2597_v28 = vadd.f32 %v3796_v52, %v5834_v34 }
 0x40e   : > { %v2679_v58 = vpop.permute.xlu1 %2678  ;;  %v3798_v59 = vpop.eup %3797 }
 0x40f   : > { %2812 = vst.msk [vmem:[%s5849_s8 + $0xb0] sm:$0xff] %vm451_vm0, %v2780_v6  ;;  %v2783_v16 = vmul.f32 %v3823_v50, %v2751_v26  ;;  %v2750_v4 = vadd.f32 %v2679_v58, %v2590_v51  ;;  %v2596_v47 = vadd.f32 %v3798_v59, %v5836_v11  ;;  %v3830_v11 = vld [vmem:[#allocation2 + $0xf0] sm:$0xff] }
 0x410   : > { %v2685_v60 = vpop.permute.xlu0 %2684 }
 0x411   : > { %2815 = vst.msk [vmem:[%s5849_s8 + $0xc8] sm:$0xff] %vm451_vm0, %v2783_v16  ;;  %v2782_v10 = vmul.f32 %v3824_v14, %v2750_v4  ;;  %v2753_v57 = vadd.f32 %v2685_v60, %v2593_v56 }
 0x412   : > { %v2683_v27 = vpop.permute.xlu1 %2682 }
 0x413   : > { %2814 = vst.msk [vmem:[%s5849_s8 + $0xc0] sm:$0xff] %vm451_vm0, %v2782_v10  ;;  %v2785_v13 = vmul.f32 %v3825_v55, %v2753_v57  ;;  %v2752_v8 = vadd.f32 %v2683_v27, %v2592_v18 }
 0x414   : > { %v2689_v22 = vpop.permute.xlu0 %2688 }
 0x415   : > { %2817 = vst.msk [vmem:[%s5849_s8 + $0xd8] sm:$0xff] %vm451_vm0, %v2785_v13  ;;  %v2784_v15 = vmul.f32 %v3826_v20, %v2752_v8  ;;  %v2755_v45 = vadd.f32 %v2689_v22, %v2595_v9 }
 0x416   : > { %v2687_v17 = vpop.permute.xlu1 %2686 }
 0x417   : > { %2816 = vst.msk [vmem:[%s5849_s8 + $0xd0] sm:$0xff] %vm451_vm0, %v2784_v15  ;;  %v2787_v7 = vmul.f32 %v3827_v0, %v2755_v45  ;;  %v2754_v53 = vadd.f32 %v2687_v17, %v2594_v43 }
 0x418   : > { %v2693_v32 = vpop.permute.xlu0 %2692 }
 0x419   : > { %2819 = vst.msk [vmem:[%s5849_s8 + $0xe8] sm:$0xff] %vm451_vm0, %v2787_v7  ;;  %v2786_v61 = vmul.f32 %v3828_v25, %v2754_v53  ;;  %v2757_v49 = vadd.f32 %v2693_v32, %v2597_v28 }
 0x41a   : > { %v2691_v34 = vpop.permute.xlu1 %2690 }
 0x41b   : > { %2818 = vst.msk [vmem:[%s5849_s8 + $0xe0] sm:$0xff] %vm451_vm0, %v2786_v61  ;;  %v2789_v19 = vmul.f32 %v3829_v23, %v2757_v49  ;;  %v2756_v41 = vadd.f32 %v2691_v34, %v2596_v47 }
 0x41d   : > { %2821 = vst.msk [vmem:[%s5849_s8 + $0xf8] sm:$0xff] %vm451_vm0, %v2789_v19  ;;  %v2788_v37 = vmul.f32 %v3830_v11, %v2756_v41 }
 0x41f   : > { %2820 = vst.msk [vmem:[%s5849_s8 + $0xf0] sm:$0xff] %vm451_vm0, %v2788_v37 }
 0x420   : > { %3928 = shalt.err (!%p3925_p6)
}
 0x421   : > { %s3929_s26 = scalar_lea.hbm %s5965_s3, 4096  ;;  %s3933_s9 = scalar_lea.hbm %s6135_s1, 16384 }
 0x422   : > { %p3930_p10 = scmp.ne.s32.totalorder %s5965_s3, %s3929_s26  ;;  %p3934_p2 = scmp.lt.s32.totalorder %s5965_s3, %s6135_s1 }
 0x423   : > { %p3935_p4 = scmp.lt.s32.totalorder %s3933_s9, %s3929_s26 }
 0x424   : > { %p3931_p13 = pnand %p3930_p10, %p6136_p7 }
 0x425   : > { %p3936_p11 = por %p3935_p4, %p3934_p2 }
 0x426   : > { %p3932_p0 = pneg %p3931_p13 }
 0x428   : > { %p3937_p12 = pnand %p3936_p11, %p3932_p0 }
 0x42a   : > { %3940 = shalt.err (!%p3937_p12)
}
 0x42b   : > { %s4084_s29 = smov 128  }
 0x42c   : > { %3273 = dma.vmem_to_hbm [thread:$0]  (%p6136_p7), %s5958_s22, 4096, %s5965_s3, %s2823_s11, %s4084_s29, %s4084_s29, %s4074_s13  }
 0x42d PF: > { %p3290_p9 = scmp.ge.s32.totalorder %s4067_s6, 2  ;;  %s2854_s12 = sand.u32 1, %s4039_s24  }
 0x42e   : > { %p6137_p3 = scmp.ne.s32.totalorder %s6101_s17, 0  ;;  %s2855_s7 = scalar_lea.sflag [#allocation5], %s2854_s12 }
 0x430   : > { %p3286_p1 = pnand %p3290_p9, %p6137_p3 }
 0x432   : > { %p3287_p8 = pneg %p3286_p1 }
 0x434   : > { %4010 = dma.done.wait (%p3287_p8), %s2855_s7, 4096  }
 0x435   : > { %4012 = vsyncadd (%p3287_p8), %s2855_s7, 4294963200  ;;  %s24_s6 = sadd.s32 1, %s4067_s6   ;;  %s6139_s21 = sld [smem:[#allocation14_spill]] }
 0x436   : > { %p5998_p5 = scmp.ge.s32.totalorder %s24_s6, 6   ;;  %s6140_s22 = sld [smem:[#allocation15_spill]] }
 0x437   : > { %s6141_s23 = sld [smem:[#allocation25_spill]]  ;;  %s6148_s18 = smov %s4019_s19 }
 0x438   : > { %s6142_s0 = sld [smem:[#allocation16_spill]]  ;;  %s6149_s19 = smov %s4023_s20 }
 0x439   : > { %s6143_s26 = sld [smem:[#allocation26_spill]]  ;;  %s6150_s20 = smov %s4353_s5 }
 0x43a   : > { %s6144_s27 = sld [smem:[#allocation19_spill]]  ;;  %s6151_s24 = smov %s4043_s25 }
 0x43b   : > { %s6145_s28 = sld [smem:[#allocation20_spill]]  ;;  %23 = sbr.rel (!%p5998_p5) target bundleno = 19 (0x13), region = 113 }
 0x43c   : > { %s6146_s29 = sld [smem:[#allocation21_spill]] }
 0x43d   : > { %s6147_s30 = sld [smem:[#allocation22_spill]] }
 0x43e   : > { %s6152_s25 = smov %s6142_s0 }
 0x440   :  { %2860 = vsyncpa [#allocation4], 1 }
 0x441   :  { %2862 = vsyncpa [#allocation4 + $0x1], 1 }
 0x442   :  { %2863 = vsyncpa [#allocation7], 1 }
 0x443   :  { %2865 = vsyncpa [#allocation7 + $0x1], 1 }
 0x444   :  { %2866 = vsyncpa [#allocation5], 1 }
 0x445   :  { %2868 = vsyncpa [#allocation5 + $0x1], 1 }

</bundles_post_ra>
